<compile_context>
chip_gen: v5e
topology: v5e:2x2
jax: 0.10.0
libtpu: 0.0.40
codegen_flags: <defaults>
</compile_context>

<pallas_src>
import functools
import math

import jax
import jax.numpy as jnp
from jax.experimental import pallas as pl
from jax.experimental.pallas import tpu as pltpu


def _round_up(x, m):
    return ((x + m - 1) // m) * m


# ----------------------------------------------------------------------------
# Pallas kernels
# ----------------------------------------------------------------------------
def _matmul_bias_act_kernel(x_ref, w_ref, b_ref, o_ref, *, act):
    acc = jnp.dot(x_ref[...], w_ref[...], preferred_element_type=jnp.float32)
    acc = acc + b_ref[...]                      # (TM,N) + (1,N) broadcast
    if act == "relu":
        acc = jnp.maximum(acc, 0.0)
    elif act == "tanh":
        acc = jnp.tanh(acc)
    o_ref[...] = acc.astype(o_ref.dtype)


def matmul_bias_act(x, w, b, act="none", tm=512):
    """x:(M,K) @ w:(K,N) + b:(N,), fused activation.

    M-tiled grid (parallel), bf16 MXU inputs, f32 accumulate/epilogue.
    """
    M, K = x.shape
    N = w.shape[1]

    # Pad K to a multiple of 16 (bf16 sublane packing); zeros don't change the result.
    Kp = _round_up(K, 16)
    if Kp != K:
        x = jnp.pad(x, ((0, 0), (0, Kp - K)))
        w = jnp.pad(w, ((0, Kp - K), (0, 0)))

    tile_m = min(tm, _round_up(M, 16))
    Mp = _round_up(M, tile_m)
    if Mp != M:
        x = jnp.pad(x, ((0, Mp - M), (0, 0)))

    xb = x.astype(jnp.bfloat16)
    wb = w.astype(jnp.bfloat16)
    b2 = b.reshape(1, N).astype(jnp.float32)

    flops = 2 * Mp * Kp * N
    transc = Mp * N if act == "tanh" else 0
    bytes_acc = Mp * Kp * 2 + Kp * N * 2 + N * 4 + Mp * N * 4

    kernel = functools.partial(_matmul_bias_act_kernel, act=act)
    out = pl.pallas_call(
        kernel,
        out_shape=jax.ShapeDtypeStruct((Mp, N), jnp.float32),
        grid=(Mp // tile_m,),
        in_specs=[
            pl.BlockSpec((tile_m, Kp), lambda i: (i, 0)),
            pl.BlockSpec((Kp, N), lambda i: (0, 0)),
            pl.BlockSpec((1, N), lambda i: (0, 0)),
        ],
        out_specs=pl.BlockSpec((tile_m, N), lambda i: (i, 0)),
        compiler_params=pltpu.CompilerParams(
            dimension_semantics=("parallel",)),
        cost_estimate=pl.CostEstimate(
            flops=flops, transcendentals=transc, bytes_accessed=bytes_acc),
    )(xb, wb, b2)
    if Mp != M:
        out = out[:M]
    return out


def _fused_fc_kernel(h2_ref, eps_ref,
                     w1_ref, b1_ref, wml_ref, bml_ref,
                     w2_ref, b2_ref, w3_ref, b3_ref,
                     h5_ref, z_ref, mu_ref, logvar_ref, *, latent_dim):
    """fc1 -> [fc_mu|fc_logvar] -> reparameterize -> fc2 -> fc3, all VMEM-resident."""
    f32 = jnp.float32
    bf16 = jnp.bfloat16

    h3 = jnp.dot(h2_ref[...], w1_ref[...], preferred_element_type=f32) + b1_ref[...]
    h3 = jnp.maximum(h3, 0.0)

    # concatenated mu/logvar matmul: one N = 2*latent_dim pass over the MXU
    ml = jnp.dot(h3.astype(bf16), wml_ref[...], preferred_element_type=f32) + bml_ref[...]
    mu = ml[:, :latent_dim]
    logvar = ml[:, latent_dim:]

    std = jnp.exp(0.5 * logvar)
    z = mu + eps_ref[...] * std

    h4 = jnp.dot(z.astype(bf16), w2_ref[...], preferred_element_type=f32) + b2_ref[...]
    h4 = jnp.maximum(h4, 0.0)

    h5 = jnp.dot(h4.astype(bf16), w3_ref[...], preferred_element_type=f32) + b3_ref[...]
    h5 = jnp.maximum(h5, 0.0)

    h5_ref[...] = h5
    z_ref[...] = z
    mu_ref[...] = mu
    logvar_ref[...] = logvar


def fused_fc(h2_flat, eps, w1, b1, wml, bml, w2, b2, w3, b3, latent_dim):
    B = h2_flat.shape[0]
    D_in, H = w1.shape            # 3136, 128
    D_out = w3.shape[1]           # 3136
    L = latent_dim
    bf = jnp.bfloat16

    flops = 2 * B * (D_in * H + H * 2 * L + L * H + H * D_out)
    bytes_acc = 2 * (D_in * H + H * 2 * L + L * H + H * D_out) \
        + 4 * (B * (D_in + 4 * L + D_out) + 2 * H + 2 * L + D_out)

    kernel = functools.partial(_fused_fc_kernel, latent_dim=L)
    return pl.pallas_call(
        kernel,
        out_shape=(
            jax.ShapeDtypeStruct((B, D_out), jnp.float32),   # h5
            jax.ShapeDtypeStruct((B, L), jnp.float32),       # z
            jax.ShapeDtypeStruct((B, L), jnp.float32),       # mu
            jax.ShapeDtypeStruct((B, L), jnp.float32),       # logvar
        ),
        cost_estimate=pl.CostEstimate(
            flops=flops, transcendentals=B * L, bytes_accessed=bytes_acc),
    )(h2_flat.astype(bf), eps.astype(jnp.float32),
      w1.astype(bf), b1.reshape(1, H).astype(jnp.float32),
      wml.astype(bf), bml.reshape(1, 2 * L).astype(jnp.float32),
      w2.astype(bf), b2.reshape(1, H).astype(jnp.float32),
      w3.astype(bf), b3.reshape(1, D_out).astype(jnp.float32))


# ----------------------------------------------------------------------------
# Conv layers (NHWC internally, layout plumbing only outside the kernels)
# ----------------------------------------------------------------------------
def conv2d_nhwc(x, w, b, stride, pad, act):
    """x: (B,H,W,C) NHWC, w: (O,C,kh,kw) PyTorch layout."""
    B, H, W, C = x.shape
    O, _, kh, kw = w.shape
    xp = jnp.pad(x, ((0, 0), (pad, pad), (pad, pad), (0, 0)))
    Hp, Wp = H + 2 * pad, W + 2 * pad
    Ho = (Hp - kh) // stride + 1
    Wo = (Wp - kw) // stride + 1
    taps = [xp[:, i:i + stride * Ho:stride, j:j + stride * Wo:stride, :]
            for i in range(kh) for j in range(kw)]
    patches = jnp.stack(taps, axis=3).reshape(B * Ho * Wo, kh * kw * C)  # K order (i,j,c)
    w2 = jnp.transpose(w, (2, 3, 1, 0)).reshape(kh * kw * C, O)          # same K order
    out = matmul_bias_act(patches, w2, b, act)
    return out.reshape(B, Ho, Wo, O)


def conv_transpose2d_s2_nhwc(x, w_t, b, act):
    """ConvTranspose2d(k=3, stride=2, padding=1, output_padding=1), NHWC.

    Sub-pixel (phase) decomposition: each output-parity phase (r,q) is a small
    conv over the 2x2 input neighborhood; all four phases are computed by one
    matmul with N = 4*Cout and then pixel-shuffled. No zero-dilation waste.
    """
    B, H, W, Cin = x.shape
    _, Cout, kh, kw = w_t.shape   # (Cin, Cout, 3, 3)

    # 2x2 neighborhood patches (m+1 / n+1 taps zero-padded at the boundary).
    xp = jnp.pad(x, ((0, 0), (0, 1), (0, 1), (0, 0)))
    taps = [xp[:, di:di + H, dj:dj + W, :] for di in range(2) for dj in range(2)]
    patches = jnp.stack(taps, axis=3).reshape(B * H * W, 4 * Cin)   # K order (di,dj,ci)

    # S[r, d, u]: output phase r, input tap offset d -> kernel row u (zero if unused)
    S = jnp.array([[[0., 1., 0.], [0., 0., 0.]],
                   [[0., 0., 1.], [1., 0., 0.]]], dtype=jnp.float32)
    # W_eff[di,dj,ci, r,q,co] = sum_{u,v} S[r,di,u] S[q,dj,v] w_t[ci,co,u,v]
    w_eff = jnp.einsum('rdu,qev,iouv->deirqo', S, S, w_t.astype(jnp.float32))
    w_eff = w_eff.reshape(4 * Cin, 4 * Cout)
    b_eff = jnp.tile(b, 4)                                           # (r,q,co) order

    out = matmul_bias_act(patches, w_eff, b_eff, act)                # (B*H*W, 4*Cout)
    out = out.reshape(B, H, W, 2, 2, Cout)
    out = out.transpose(0, 1, 3, 2, 4, 5).reshape(B, 2 * H, 2 * W, Cout)  # pixel shuffle
    return out
    # TODO(synk): pad/pad_before derived for the square 3x3/stride-2 case only.


# ----------------------------------------------------------------------------
# Parameter init (deterministic, PyTorch-like uniform(-1/sqrt(fan_in), ...))
# ----------------------------------------------------------------------------
def _uniform(key, shape, fan_in):
    bound = 1.0 / math.sqrt(fan_in)
    return jax.random.uniform(key, shape, jnp.float32, -bound, bound)


def init_params(latent_dim=20):
    keys = jax.random.split(jax.random.PRNGKey(42), 20)
    p = {}
    p["enc_conv1_w"] = _uniform(keys[0], (32, 3, 3, 3), 3 * 9)
    p["enc_conv1_b"] = _uniform(keys[1], (32,), 3 * 9)
    p["enc_conv2_w"] = _uniform(keys[2], (64, 32, 3, 3), 32 * 9)
    p["enc_conv2_b"] = _uniform(keys[3], (64,), 32 * 9)
    p["fc1_w"] = _uniform(keys[4], (64 * 7 * 7, 128), 64 * 7 * 7)     # (K, N)
    p["fc1_b"] = _uniform(keys[5], (128,), 64 * 7 * 7)
    p["fc_mu_w"] = _uniform(keys[6], (128, latent_dim), 128)
    p["fc_mu_b"] = _uniform(keys[7], (latent_dim,), 128)
    p["fc_logvar_w"] = _uniform(keys[8], (128, latent_dim), 128)
    p["fc_logvar_b"] = _uniform(keys[9], (latent_dim,), 128)
    p["fc2_w"] = _uniform(keys[10], (latent_dim, 128), latent_dim)
    p["fc2_b"] = _uniform(keys[11], (128,), latent_dim)
    p["fc3_w"] = _uniform(keys[12], (128, 64 * 7 * 7), 128)
    p["fc3_b"] = _uniform(keys[13], (64 * 7 * 7,), 128)
    p["dec_deconv1_w"] = _uniform(keys[14], (64, 32, 3, 3), 32 * 9)   # (Cin,Cout,kh,kw)
    p["dec_deconv1_b"] = _uniform(keys[15], (32,), 32 * 9)
    p["dec_deconv2_w"] = _uniform(keys[16], (32, 3, 3, 3), 3 * 9)
    p["dec_deconv2_b"] = _uniform(keys[17], (3,), 3 * 9)
    return p


# ----------------------------------------------------------------------------
# Forward pass
# ----------------------------------------------------------------------------
def vae_forward(params, x, eps):
    B = x.shape[0]
    L = eps.shape[1]

    # NCHW -> NHWC once at the boundary; convs run lane-dense NHWC internally.
    x_nhwc = jnp.transpose(x, (0, 2, 3, 1))

    # ---- encode ----
    h1 = conv2d_nhwc(x_nhwc, params["enc_conv1_w"], params["enc_conv1_b"], 2, 1, "relu")  # (B,14,14,32)
    h2 = conv2d_nhwc(h1, params["enc_conv2_w"], params["enc_conv2_b"], 2, 1, "relu")      # (B,7,7,64)
    # PyTorch flattens NCHW (c,h,w)-major; keep that ordering so fc1_w layout matches.
    h2_flat = jnp.transpose(h2, (0, 3, 1, 2)).reshape(B, 64 * 7 * 7)

    # ---- fused FC middle (fc1 -> mu/logvar -> reparameterize -> fc2 -> fc3) ----
    # TODO(synk): torch.randn_like is nondeterministic; eps comes from a fixed PRNGKey.
    wml = jnp.concatenate([params["fc_mu_w"], params["fc_logvar_w"]], axis=1)   # (128, 2L)
    bml = jnp.concatenate([params["fc_mu_b"], params["fc_logvar_b"]], axis=0)   # (2L,)
    h5, z, mu, logvar = fused_fc(
        h2_flat, eps,
        params["fc1_w"], params["fc1_b"], wml, bml,
        params["fc2_w"], params["fc2_b"], params["fc3_w"], params["fc3_b"],
        latent_dim=L)

    # ---- decode ----
    h5_nhwc = h5.reshape(B, 64, 7, 7).transpose(0, 2, 3, 1)                       # (B,7,7,64)
    h6 = conv_transpose2d_s2_nhwc(h5_nhwc, params["dec_deconv1_w"],
                                  params["dec_deconv1_b"], "relu")                # (B,14,14,32)
    rec = conv_transpose2d_s2_nhwc(h6, params["dec_deconv2_w"],
                                   params["dec_deconv2_b"], "tanh")               # (B,28,28,3)
    recon_x = jnp.transpose(rec, (0, 3, 1, 2))                                    # back to NCHW
    return recon_x, z, mu, logvar


# ----------------------------------------------------------------------------
if __name__ == "__main__":
    latent_dim = 20
    B = 2
    params = init_params(latent_dim)

    key = jax.random.PRNGKey(0)
    kx, keps = jax.random.split(key)
    x = jax.random.normal(kx, (B, 3, 28, 28), jnp.float32)     # NCHW, 28x28 required by fc1 (64*7*7)
    eps = jax.random.normal(keps, (B, latent_dim), jnp.float32)

    recon_x, z, mu, logvar = jax.jit(vae_forward)(params, x, eps)
    jax.block_until_ready((recon_x, z, mu, logvar))

    assert recon_x.shape == (B, 3, 28, 28)
    assert z.shape == (B, latent_dim)
    assert mu.shape == (B, latent_dim)
    assert logvar.shape == (B, latent_dim)
    assert bool(jnp.isfinite(recon_x).all()) and bool(jnp.isfinite(z).all())
    print("KERNEL_OK")
</pallas_src>

<mosaic_0001>
module attributes {stable_mosaic.version = 11 : i64} {
  func.func @_matmul_bias_act_kernel(%arg0: i32, %arg1: memref<400x32xbf16, #tpu.memory_space<vmem>>, %arg2: memref<32x32xbf16, #tpu.memory_space<vmem>>, %arg3: memref<1x32xf32, #tpu.memory_space<vmem>>, %arg4: memref<400x32xf32, #tpu.memory_space<vmem>>) attributes {dimension_semantics = [#tpu.dimension_semantics<parallel>], iteration_bounds = array<i64: 1>, scalar_prefetch = 0 : i64, scratch_operands = 0 : i64, tpu.core_type = #tpu.core_type<tc>, window_params = [{transform_indices = @transform_0, window_bounds = array<i64: 400, 32>}, {pipeline_mode = #tpu.pipeline_mode<synchronous>, transform_indices = @transform_1, window_bounds = array<i64: 32, 32>}, {pipeline_mode = #tpu.pipeline_mode<synchronous>, transform_indices = @transform_2, window_bounds = array<i64: 1, 32>}, {transform_indices = @transform_3, window_bounds = array<i64: 400, 32>}]} {
    %c0 = arith.constant 0 : index
    %c0_0 = arith.constant 0 : index
    %0 = vector.load %arg1[%c0, %c0_0] : memref<400x32xbf16, #tpu.memory_space<vmem>>, vector<400x32xbf16>
    %c0_1 = arith.constant 0 : index
    %c0_2 = arith.constant 0 : index
    %1 = vector.load %arg2[%c0_1, %c0_2] : memref<32x32xbf16, #tpu.memory_space<vmem>>, vector<32x32xbf16>
    %cst = arith.constant dense<0.000000e+00> : vector<400x32xf32>
    %2 = tpu.matmul %0, %1, %cst {dimension_numbers = #tpu.dot_dimension_numbers<[1], [0], [0], [1], [0, 0, 1, 1], [], []>} : vector<400x32xbf16>, vector<32x32xbf16>, vector<400x32xf32> -> vector<400x32xf32>
    %c0_3 = arith.constant 0 : index
    %c0_4 = arith.constant 0 : index
    %3 = vector.load %arg3[%c0_3, %c0_4] : memref<1x32xf32, #tpu.memory_space<vmem>>, vector<1x32xf32>
    %4 = vector.broadcast %3 : vector<1x32xf32> to vector<400x32xf32>
    %5 = arith.addf %2, %4 : vector<400x32xf32>
    %cst_5 = arith.constant 0.000000e+00 : f32
    %6 = vector.broadcast %cst_5 : f32 to vector<400x32xf32>
    %7 = arith.maximumf %5, %6 : vector<400x32xf32>
    %c0_6 = arith.constant 0 : index
    %c0_7 = arith.constant 0 : index
    %8 = vector.load %arg4[%c0_6, %c0_7] : memref<400x32xf32, #tpu.memory_space<vmem>>, vector<400x32xf32>
    tpu.vector_store %arg4[%c0_6, %c0_7], %7 {strides = array<i32>} : memref<400x32xf32, #tpu.memory_space<vmem>>, vector<400x32xf32>,
    return
  }
  func.func @transform_0(%arg0: i32) -> (i32, i32) {
    %c0_i32 = arith.constant 0 : i32
    %c0_i32_0 = arith.constant 0 : i32
    return %arg0, %c0_i32 : i32, i32
  }
  func.func @transform_1(%arg0: i32) -> (i32, i32) {
    %c0_i32 = arith.constant 0 : i32
    %c0_i32_0 = arith.constant 0 : i32
    %c0_i32_1 = arith.constant 0 : i32
    return %c0_i32, %c0_i32_0 : i32, i32
  }
  func.func @transform_2(%arg0: i32) -> (i32, i32) {
    %c0_i32 = arith.constant 0 : i32
    %c0_i32_0 = arith.constant 0 : i32
    %c0_i32_1 = arith.constant 0 : i32
    return %c0_i32, %c0_i32_0 : i32, i32
  }
  func.func @transform_3(%arg0: i32) -> (i32, i32) {
    %c0_i32 = arith.constant 0 : i32
    %c0_i32_0 = arith.constant 0 : i32
    return %arg0, %c0_i32 : i32, i32
  }
}

module attributes {stable_mosaic.version = 11 : i64} {
  func.func @_matmul_bias_act_kernel(%arg0: i32, %arg1: memref<112x288xbf16, #tpu.memory_space<vmem>>, %arg2: memref<288x64xbf16, #tpu.memory_space<vmem>>, %arg3: memref<1x64xf32, #tpu.memory_space<vmem>>, %arg4: memref<112x64xf32, #tpu.memory_space<vmem>>) attributes {dimension_semantics = [#tpu.dimension_semantics<parallel>], iteration_bounds = array<i64: 1>, scalar_prefetch = 0 : i64, scratch_operands = 0 : i64, tpu.core_type = #tpu.core_type<tc>, window_params = [{transform_indices = @transform_0, window_bounds = array<i64: 112, 288>}, {pipeline_mode = #tpu.pipeline_mode<synchronous>, transform_indices = @transform_1, window_bounds = array<i64: 288, 64>}, {pipeline_mode = #tpu.pipeline_mode<synchronous>, transform_indices = @transform_2, window_bounds = array<i64: 1, 64>}, {transform_indices = @transform_3, window_bounds = array<i64: 112, 64>}]} {
    %c0 = arith.constant 0 : index
    %c0_0 = arith.constant 0 : index
    %0 = vector.load %arg1[%c0, %c0_0] : memref<112x288xbf16, #tpu.memory_space<vmem>>, vector<112x288xbf16>
    %c0_1 = arith.constant 0 : index
    %c0_2 = arith.constant 0 : index
    %1 = vector.load %arg2[%c0_1, %c0_2] : memref<288x64xbf16, #tpu.memory_space<vmem>>, vector<288x64xbf16>
    %cst = arith.constant dense<0.000000e+00> : vector<112x64xf32>
    %2 = tpu.matmul %0, %1, %cst {dimension_numbers = #tpu.dot_dimension_numbers<[1], [0], [0], [1], [0, 0, 1, 1], [], []>} : vector<112x288xbf16>, vector<288x64xbf16>, vector<112x64xf32> -> vector<112x64xf32>
    %c0_3 = arith.constant 0 : index
    %c0_4 = arith.constant 0 : index
    %3 = vector.load %arg3[%c0_3, %c0_4] : memref<1x64xf32, #tpu.memory_space<vmem>>, vector<1x64xf32>
    %4 = vector.broadcast %3 : vector<1x64xf32> to vector<112x64xf32>
    %5 = arith.addf %2, %4 : vector<112x64xf32>
    %cst_5 = arith.constant 0.000000e+00 : f32
    %6 = vector.broadcast %cst_5 : f32 to vector<112x64xf32>
    %7 = arith.maximumf %5, %6 : vector<112x64xf32>
    %c0_6 = arith.constant 0 : index
    %c0_7 = arith.constant 0 : index
    %8 = vector.load %arg4[%c0_6, %c0_7] : memref<112x64xf32, #tpu.memory_space<vmem>>, vector<112x64xf32>
    tpu.vector_store %arg4[%c0_6, %c0_7], %7 {strides = array<i32>} : memref<112x64xf32, #tpu.memory_space<vmem>>, vector<112x64xf32>,
    return
  }
  func.func @transform_0(%arg0: i32) -> (i32, i32) {
    %c0_i32 = arith.constant 0 : i32
    %c0_i32_0 = arith.constant 0 : i32
    return %arg0, %c0_i32 : i32, i32
  }
  func.func @transform_1(%arg0: i32) -> (i32, i32) {
    %c0_i32 = arith.constant 0 : i32
    %c0_i32_0 = arith.constant 0 : i32
    %c0_i32_1 = arith.constant 0 : i32
    return %c0_i32, %c0_i32_0 : i32, i32
  }
  func.func @transform_2(%arg0: i32) -> (i32, i32) {
    %c0_i32 = arith.constant 0 : i32
    %c0_i32_0 = arith.constant 0 : i32
    %c0_i32_1 = arith.constant 0 : i32
    return %c0_i32, %c0_i32_0 : i32, i32
  }
  func.func @transform_3(%arg0: i32) -> (i32, i32) {
    %c0_i32 = arith.constant 0 : i32
    %c0_i32_0 = arith.constant 0 : i32
    return %arg0, %c0_i32 : i32, i32
  }
}

module attributes {stable_mosaic.version = 11 : i64} {
  func.func @_fused_fc_kernel(%arg0: memref<2x3136xbf16, #tpu.memory_space<vmem>>, %arg1: memref<2x20xf32, #tpu.memory_space<vmem>>, %arg2: memref<3136x128xbf16, #tpu.memory_space<vmem>>, %arg3: memref<1x128xf32, #tpu.memory_space<vmem>>, %arg4: memref<128x40xbf16, #tpu.memory_space<vmem>>, %arg5: memref<1x40xf32, #tpu.memory_space<vmem>>, %arg6: memref<20x128xbf16, #tpu.memory_space<vmem>>, %arg7: memref<1x128xf32, #tpu.memory_space<vmem>>, %arg8: memref<128x3136xbf16, #tpu.memory_space<vmem>>, %arg9: memref<1x3136xf32, #tpu.memory_space<vmem>>, %arg10: memref<2x3136xf32, #tpu.memory_space<vmem>>, %arg11: memref<2x20xf32, #tpu.memory_space<vmem>>, %arg12: memref<2x20xf32, #tpu.memory_space<vmem>>, %arg13: memref<2x20xf32, #tpu.memory_space<vmem>>) attributes {dimension_semantics = [], scalar_prefetch = 0 : i64, scratch_operands = 0 : i64, tpu.core_type = #tpu.core_type<tc>} {
    %c0 = arith.constant 0 : index
    %c0_0 = arith.constant 0 : index
    %0 = vector.load %arg0[%c0, %c0_0] : memref<2x3136xbf16, #tpu.memory_space<vmem>>, vector<2x3136xbf16>
    %c0_1 = arith.constant 0 : index
    %c0_2 = arith.constant 0 : index
    %1 = vector.load %arg2[%c0_1, %c0_2] : memref<3136x128xbf16, #tpu.memory_space<vmem>>, vector<3136x128xbf16>
    %cst = arith.constant dense<0.000000e+00> : vector<2x128xf32>
    %2 = tpu.matmul %0, %1, %cst {dimension_numbers = #tpu.dot_dimension_numbers<[1], [0], [0], [1], [0, 0, 1, 1], [], []>} : vector<2x3136xbf16>, vector<3136x128xbf16>, vector<2x128xf32> -> vector<2x128xf32>
    %c0_3 = arith.constant 0 : index
    %c0_4 = arith.constant 0 : index
    %3 = vector.load %arg3[%c0_3, %c0_4] : memref<1x128xf32, #tpu.memory_space<vmem>>, vector<1x128xf32>
    %4 = vector.broadcast %3 : vector<1x128xf32> to vector<2x128xf32>
    %5 = arith.addf %2, %4 : vector<2x128xf32>
    %cst_5 = arith.constant 0.000000e+00 : f32
    %6 = vector.broadcast %cst_5 : f32 to vector<2x128xf32>
    %7 = arith.maximumf %5, %6 : vector<2x128xf32>
    %8 = arith.truncf %7 : vector<2x128xf32> to vector<2x128xbf16>
    %c0_6 = arith.constant 0 : index
    %c0_7 = arith.constant 0 : index
    %9 = vector.load %arg4[%c0_6, %c0_7] : memref<128x40xbf16, #tpu.memory_space<vmem>>, vector<128x40xbf16>
    %cst_8 = arith.constant dense<0.000000e+00> : vector<2x40xf32>
    %10 = tpu.matmul %8, %9, %cst_8 {dimension_numbers = #tpu.dot_dimension_numbers<[1], [0], [0], [1], [0, 0, 1, 1], [], []>} : vector<2x128xbf16>, vector<128x40xbf16>, vector<2x40xf32> -> vector<2x40xf32>
    %c0_9 = arith.constant 0 : index
    %c0_10 = arith.constant 0 : index
    %11 = vector.load %arg5[%c0_9, %c0_10] : memref<1x40xf32, #tpu.memory_space<vmem>>, vector<1x40xf32>
    %12 = vector.broadcast %11 : vector<1x40xf32> to vector<2x40xf32>
    %13 = arith.addf %10, %12 : vector<2x40xf32>
    %14 = vector.extract_strided_slice %13 {offsets = [0, 0], sizes = [2, 20], strides = [1, 1]} : vector<2x40xf32> to vector<2x20xf32>
    %15 = vector.extract_strided_slice %13 {offsets = [0, 20], sizes = [2, 20], strides = [1, 1]} : vector<2x40xf32> to vector<2x20xf32>
    %cst_11 = arith.constant 5.000000e-01 : f32
    %16 = vector.broadcast %cst_11 : f32 to vector<2x20xf32>
    %17 = arith.mulf %16, %15 : vector<2x20xf32>
    %18 = math.exp %17 : vector<2x20xf32>
    %c0_12 = arith.constant 0 : index
    %c0_13 = arith.constant 0 : index
    %19 = vector.load %arg1[%c0_12, %c0_13] : memref<2x20xf32, #tpu.memory_space<vmem>>, vector<2x20xf32>
    %20 = arith.mulf %19, %18 : vector<2x20xf32>
    %21 = arith.addf %14, %20 : vector<2x20xf32>
    %22 = arith.truncf %21 : vector<2x20xf32> to vector<2x20xbf16>
    %c0_14 = arith.constant 0 : index
    %c0_15 = arith.constant 0 : index
    %23 = vector.load %arg6[%c0_14, %c0_15] : memref<20x128xbf16, #tpu.memory_space<vmem>>, vector<20x128xbf16>
    %cst_16 = arith.constant dense<0.000000e+00> : vector<2x128xf32>
    %24 = tpu.matmul %22, %23, %cst_16 {dimension_numbers = #tpu.dot_dimension_numbers<[1], [0], [0], [1], [0, 0, 1, 1], [], []>} : vector<2x20xbf16>, vector<20x128xbf16>, vector<2x128xf32> -> vector<2x128xf32>
    %c0_17 = arith.constant 0 : index
    %c0_18 = arith.constant 0 : index
    %25 = vector.load %arg7[%c0_17, %c0_18] : memref<1x128xf32, #tpu.memory_space<vmem>>, vector<1x128xf32>
    %26 = vector.broadcast %25 : vector<1x128xf32> to vector<2x128xf32>
    %27 = arith.addf %24, %26 : vector<2x128xf32>
    %cst_19 = arith.constant 0.000000e+00 : f32
    %28 = vector.broadcast %cst_19 : f32 to vector<2x128xf32>
    %29 = arith.maximumf %27, %28 : vector<2x128xf32>
    %30 = arith.truncf %29 : vector<2x128xf32> to vector<2x128xbf16>
    %c0_20 = arith.constant 0 : index
    %c0_21 = arith.constant 0 : index
    %31 = vector.load %arg8[%c0_20, %c0_21] : memref<128x3136xbf16, #tpu.memory_space<vmem>>, vector<128x3136xbf16>
    %cst_22 = arith.constant dense<0.000000e+00> : vector<2x3136xf32>
    %32 = tpu.matmul %30, %31, %cst_22 {dimension_numbers = #tpu.dot_dimension_numbers<[1], [0], [0], [1], [0, 0, 1, 1], [], []>} : vector<2x128xbf16>, vector<128x3136xbf16>, vector<2x3136xf32> -> vector<2x3136xf32>
    %c0_23 = arith.constant 0 : index
    %c0_24 = arith.constant 0 : index
    %33 = vector.load %arg9[%c0_23, %c0_24] : memref<1x3136xf32, #tpu.memory_space<vmem>>, vector<1x3136xf32>
    %34 = vector.broadcast %33 : vector<1x3136xf32> to vector<2x3136xf32>
    %35 = arith.addf %32, %34 : vector<2x3136xf32>
    %cst_25 = arith.constant 0.000000e+00 : f32
    %36 = vector.broadcast %cst_25 : f32 to vector<2x3136xf32>
    %37 = arith.maximumf %35, %36 : vector<2x3136xf32>
    %c0_26 = arith.constant 0 : index
    %c0_27 = arith.constant 0 : index
    %38 = vector.load %arg10[%c0_26, %c0_27] : memref<2x3136xf32, #tpu.memory_space<vmem>>, vector<2x3136xf32>
    tpu.vector_store %arg10[%c0_26, %c0_27], %37 {strides = array<i32>} : memref<2x3136xf32, #tpu.memory_space<vmem>>, vector<2x3136xf32>,
    %c0_28 = arith.constant 0 : index
    %c0_29 = arith.constant 0 : index
    %39 = vector.load %arg11[%c0_28, %c0_29] : memref<2x20xf32, #tpu.memory_space<vmem>>, vector<2x20xf32>
    tpu.vector_store %arg11[%c0_28, %c0_29], %21 {strides = array<i32>} : memref<2x20xf32, #tpu.memory_space<vmem>>, vector<2x20xf32>,
    %c0_30 = arith.constant 0 : index
    %c0_31 = arith.constant 0 : index
    %40 = vector.load %arg12[%c0_30, %c0_31] : memref<2x20xf32, #tpu.memory_space<vmem>>, vector<2x20xf32>
    tpu.vector_store %arg12[%c0_30, %c0_31], %14 {strides = array<i32>} : memref<2x20xf32, #tpu.memory_space<vmem>>, vector<2x20xf32>,
    %c0_32 = arith.constant 0 : index
    %c0_33 = arith.constant 0 : index
    %41 = vector.load %arg13[%c0_32, %c0_33] : memref<2x20xf32, #tpu.memory_space<vmem>>, vector<2x20xf32>
    tpu.vector_store %arg13[%c0_32, %c0_33], %15 {strides = array<i32>} : memref<2x20xf32, #tpu.memory_space<vmem>>, vector<2x20xf32>,
    return
  }
}

module attributes {stable_mosaic.version = 11 : i64} {
  func.func @_matmul_bias_act_kernel(%arg0: i32, %arg1: memref<112x256xbf16, #tpu.memory_space<vmem>>, %arg2: memref<256x128xbf16, #tpu.memory_space<vmem>>, %arg3: memref<1x128xf32, #tpu.memory_space<vmem>>, %arg4: memref<112x128xf32, #tpu.memory_space<vmem>>) attributes {dimension_semantics = [#tpu.dimension_semantics<parallel>], iteration_bounds = array<i64: 1>, scalar_prefetch = 0 : i64, scratch_operands = 0 : i64, tpu.core_type = #tpu.core_type<tc>, window_params = [{transform_indices = @transform_0, window_bounds = array<i64: 112, 256>}, {pipeline_mode = #tpu.pipeline_mode<synchronous>, transform_indices = @transform_1, window_bounds = array<i64: 256, 128>}, {pipeline_mode = #tpu.pipeline_mode<synchronous>, transform_indices = @transform_2, window_bounds = array<i64: 1, 128>}, {transform_indices = @transform_3, window_bounds = array<i64: 112, 128>}]} {
    %c0 = arith.constant 0 : index
    %c0_0 = arith.constant 0 : index
    %0 = vector.load %arg1[%c0, %c0_0] : memref<112x256xbf16, #tpu.memory_space<vmem>>, vector<112x256xbf16>
    %c0_1 = arith.constant 0 : index
    %c0_2 = arith.constant 0 : index
    %1 = vector.load %arg2[%c0_1, %c0_2] : memref<256x128xbf16, #tpu.memory_space<vmem>>, vector<256x128xbf16>
    %cst = arith.constant dense<0.000000e+00> : vector<112x128xf32>
    %2 = tpu.matmul %0, %1, %cst {dimension_numbers = #tpu.dot_dimension_numbers<[1], [0], [0], [1], [0, 0, 1, 1], [], []>} : vector<112x256xbf16>, vector<256x128xbf16>, vector<112x128xf32> -> vector<112x128xf32>
    %c0_3 = arith.constant 0 : index
    %c0_4 = arith.constant 0 : index
    %3 = vector.load %arg3[%c0_3, %c0_4] : memref<1x128xf32, #tpu.memory_space<vmem>>, vector<1x128xf32>
    %4 = vector.broadcast %3 : vector<1x128xf32> to vector<112x128xf32>
    %5 = arith.addf %2, %4 : vector<112x128xf32>
    %cst_5 = arith.constant 0.000000e+00 : f32
    %6 = vector.broadcast %cst_5 : f32 to vector<112x128xf32>
    %7 = arith.maximumf %5, %6 : vector<112x128xf32>
    %c0_6 = arith.constant 0 : index
    %c0_7 = arith.constant 0 : index
    %8 = vector.load %arg4[%c0_6, %c0_7] : memref<112x128xf32, #tpu.memory_space<vmem>>, vector<112x128xf32>
    tpu.vector_store %arg4[%c0_6, %c0_7], %7 {strides = array<i32>} : memref<112x128xf32, #tpu.memory_space<vmem>>, vector<112x128xf32>,
    return
  }
  func.func @transform_0(%arg0: i32) -> (i32, i32) {
    %c0_i32 = arith.constant 0 : i32
    %c0_i32_0 = arith.constant 0 : i32
    return %arg0, %c0_i32 : i32, i32
  }
  func.func @transform_1(%arg0: i32) -> (i32, i32) {
    %c0_i32 = arith.constant 0 : i32
    %c0_i32_0 = arith.constant 0 : i32
    %c0_i32_1 = arith.constant 0 : i32
    return %c0_i32, %c0_i32_0 : i32, i32
  }
  func.func @transform_2(%arg0: i32) -> (i32, i32) {
    %c0_i32 = arith.constant 0 : i32
    %c0_i32_0 = arith.constant 0 : i32
    %c0_i32_1 = arith.constant 0 : i32
    return %c0_i32, %c0_i32_0 : i32, i32
  }
  func.func @transform_3(%arg0: i32) -> (i32, i32) {
    %c0_i32 = arith.constant 0 : i32
    %c0_i32_0 = arith.constant 0 : i32
    return %arg0, %c0_i32 : i32, i32
  }
}

module attributes {stable_mosaic.version = 11 : i64} {
  func.func @_matmul_bias_act_kernel(%arg0: i32, %arg1: memref<400x128xbf16, #tpu.memory_space<vmem>>, %arg2: memref<128x12xbf16, #tpu.memory_space<vmem>>, %arg3: memref<1x12xf32, #tpu.memory_space<vmem>>, %arg4: memref<400x12xf32, #tpu.memory_space<vmem>>) attributes {dimension_semantics = [#tpu.dimension_semantics<parallel>], iteration_bounds = array<i64: 1>, scalar_prefetch = 0 : i64, scratch_operands = 0 : i64, tpu.core_type = #tpu.core_type<tc>, window_params = [{transform_indices = @transform_0, window_bounds = array<i64: 400, 128>}, {pipeline_mode = #tpu.pipeline_mode<synchronous>, transform_indices = @transform_1, window_bounds = array<i64: 128, 12>}, {pipeline_mode = #tpu.pipeline_mode<synchronous>, transform_indices = @transform_2, window_bounds = array<i64: 1, 12>}, {transform_indices = @transform_3, window_bounds = array<i64: 400, 12>}]} {
    %c0 = arith.constant 0 : index
    %c0_0 = arith.constant 0 : index
    %0 = vector.load %arg1[%c0, %c0_0] : memref<400x128xbf16, #tpu.memory_space<vmem>>, vector<400x128xbf16>
    %c0_1 = arith.constant 0 : index
    %c0_2 = arith.constant 0 : index
    %1 = vector.load %arg2[%c0_1, %c0_2] : memref<128x12xbf16, #tpu.memory_space<vmem>>, vector<128x12xbf16>
    %cst = arith.constant dense<0.000000e+00> : vector<400x12xf32>
    %2 = tpu.matmul %0, %1, %cst {dimension_numbers = #tpu.dot_dimension_numbers<[1], [0], [0], [1], [0, 0, 1, 1], [], []>} : vector<400x128xbf16>, vector<128x12xbf16>, vector<400x12xf32> -> vector<400x12xf32>
    %c0_3 = arith.constant 0 : index
    %c0_4 = arith.constant 0 : index
    %3 = vector.load %arg3[%c0_3, %c0_4] : memref<1x12xf32, #tpu.memory_space<vmem>>, vector<1x12xf32>
    %4 = vector.broadcast %3 : vector<1x12xf32> to vector<400x12xf32>
    %5 = arith.addf %2, %4 : vector<400x12xf32>
    %6 = math.tanh %5 : vector<400x12xf32>
    %c0_5 = arith.constant 0 : index
    %c0_6 = arith.constant 0 : index
    %7 = vector.load %arg4[%c0_5, %c0_6] : memref<400x12xf32, #tpu.memory_space<vmem>>, vector<400x12xf32>
    tpu.vector_store %arg4[%c0_5, %c0_6], %6 {strides = array<i32>} : memref<400x12xf32, #tpu.memory_space<vmem>>, vector<400x12xf32>,
    return
  }
  func.func @transform_0(%arg0: i32) -> (i32, i32) {
    %c0_i32 = arith.constant 0 : i32
    %c0_i32_0 = arith.constant 0 : i32
    return %arg0, %c0_i32 : i32, i32
  }
  func.func @transform_1(%arg0: i32) -> (i32, i32) {
    %c0_i32 = arith.constant 0 : i32
    %c0_i32_0 = arith.constant 0 : i32
    %c0_i32_1 = arith.constant 0 : i32
    return %c0_i32, %c0_i32_0 : i32, i32
  }
  func.func @transform_2(%arg0: i32) -> (i32, i32) {
    %c0_i32 = arith.constant 0 : i32
    %c0_i32_0 = arith.constant 0 : i32
    %c0_i32_1 = arith.constant 0 : i32
    return %c0_i32, %c0_i32_0 : i32, i32
  }
  func.func @transform_3(%arg0: i32) -> (i32, i32) {
    %c0_i32 = arith.constant 0 : i32
    %c0_i32_0 = arith.constant 0 : i32
    return %arg0, %c0_i32 : i32, i32
  }
}

</mosaic_0001>

<bundles_post_ra>
// kernel: vae_forward.5
= control target key start
LH: loop header
LB: loop body
LE: loop exit
PB: predicated region body
PF: predicated region fallthrough
CT: control target
= control target key end

     0   :  { %vm210_vm0 = vcmask 261120   ;;  %s1072_s1 = inlined_call_operand.vmem [shape: bf16[32,32], index: 1, kind: input, shape index: {}]   ;;  %s1073_s0 = inlined_call_operand.vmem [shape: bf16[400,32], index: 0, kind: input, shape index: {}]   ;;  %s1074_s2 = inlined_call_operand.vmem [shape: f32[1,32], index: 2, kind: input, shape index: {}]   ;;  %s1075_s3 = inlined_call_operand.vmem [shape: f32[400,32], index: 3, kind: output, shape index: {}]  }
   0x1   :  { %v683_v0 = vld [vmem:[%s1072_s1 + $0x8] sm:$0xff]  ;;  %v682_v1 = vld [vmem:[%s1072_s1] sm:$0xff]  ;;  %v663_v2 = vld [vmem:[%s1073_s0 + $0x30] sm:$0xff] }
   0x2   :  { %684 = vmatpush.bf16.msra.mxu1 %v683_v0  ;;  %685 = vmatpush.bf16.msra.mxu2 %v683_v0  ;;  %v670_v3 = vld [vmem:[%s1073_s0 + $0x68] sm:$0xff]  ;;  %v657_v4 = vld [vmem:[%s1073_s0] sm:$0xff]  ;;  %v664_v6 = vld [vmem:[%s1073_s0 + $0x38] sm:$0xff] }
   0x3   :  { %292 = vmatpush.bf16.msra.mxu0 %v683_v0  ;;  %686 = vmatpush.bf16.msra.mxu3 %v683_v0  ;;  %v677_v5 = vld [vmem:[%s1073_s0 + $0xa0] sm:$0xff]  ;;  %v671_v7 = vld [vmem:[%s1073_s0 + $0x70] sm:$0xff]  ;;  %v658_v8 = vld [vmem:[%s1073_s0 + $0x8] sm:$0xff] }
   0x4   :  { %v678_v9 = vld [vmem:[%s1073_s0 + $0xa8] sm:$0xff]  ;;  %v665_v10 = vld [vmem:[%s1073_s0 + $0x40] sm:$0xff]  ;;  %v672_v11 = vld [vmem:[%s1073_s0 + $0x78] sm:$0xff] }
   0x5   :  { %v659_v12 = vld [vmem:[%s1073_s0 + $0x10] sm:$0xff]  ;;  %v666_v14 = vld [vmem:[%s1073_s0 + $0x48] sm:$0xff]  ;;  %v673_v15 = vld [vmem:[%s1073_s0 + $0x80] sm:$0xff] }
   0x6   :  { %687 = vmatpush.bf16.msra.mxu1 %v682_v1  ;;  %688 = vmatpush.bf16.msra.mxu2 %v682_v1  ;;  %v679_v13 = vld [vmem:[%s1073_s0 + $0xb0] sm:$0xff]  ;;  %v660_v16 = vld [vmem:[%s1073_s0 + $0x18] sm:$0xff]  ;;  %v674_v19 = vld [vmem:[%s1073_s0 + $0x88] sm:$0xff] }
   0x7   :  { %293 = vmatpush.bf16.msra.mxu0 %v682_v1  ;;  %689 = vmatpush.bf16.msra.mxu3 %v682_v1  ;;  %v680_v17 = vld [vmem:[%s1073_s0 + $0xb8] sm:$0xff]  ;;  %v667_v18 = vld [vmem:[%s1073_s0 + $0x50] sm:$0xff]  ;;  %v661_v20 = vld [vmem:[%s1073_s0 + $0x20] sm:$0xff] }
   0x8   :  { %v681_v21 = vld [vmem:[%s1073_s0 + $0xc0] sm:$0xff]  ;;  %v668_v22 = vld [vmem:[%s1073_s0 + $0x58] sm:$0xff]  ;;  %v675_v23 = vld [vmem:[%s1073_s0 + $0x90] sm:$0xff] }
   0x9   :  { %638 = vmatmul.msk.bf16.vlgmr.msra.gmra.mxu1 %vm210_vm0, %v663_v2  ;;  %645 = vmatmul.msk.bf16.vlgmr.msra.gmra.mxu2 %vm210_vm0, %v670_v3  ;;  %v662_v24 = vld [vmem:[%s1073_s0 + $0x28] sm:$0xff]  ;;  %v669_v25 = vld [vmem:[%s1073_s0 + $0x60] sm:$0xff]  ;;  %v676_v26 = vld [vmem:[%s1073_s0 + $0x98] sm:$0xff] }
   0xa   :  { %632 = vmatmul.msk.bf16.vlgmr.msra.gmra.mxu0 %vm210_vm0, %v657_v4  ;;  %652 = vmatmul.msk.bf16.vlgmr.msra.gmra.mxu3 %vm210_vm0, %v677_v5  ;;  %v820_v27 = vld [vmem:[%s1074_s2] ss:$0 sm:$0xff] }
  0x19   :  { %639 = vmatmul.msk.bf16.gmra.mxu1 %vm210_vm0, %v664_v6  ;;  %646 = vmatmul.msk.bf16.gmra.mxu2 %vm210_vm0, %v671_v7 }
  0x1a   :  { %633 = vmatmul.msk.bf16.gmra.mxu0 %vm210_vm0, %v658_v8  ;;  %653 = vmatmul.msk.bf16.gmra.mxu3 %vm210_vm0, %v678_v9 }
  0x29   :  { %640 = vmatmul.msk.bf16.gmra.mxu1 %vm210_vm0, %v665_v10  ;;  %647 = vmatmul.msk.bf16.gmra.mxu2 %vm210_vm0, %v672_v11 }
  0x2a   :  { %634 = vmatmul.msk.bf16.gmra.mxu0 %vm210_vm0, %v659_v12  ;;  %654 = vmatmul.msk.bf16.gmra.mxu3 %vm210_vm0, %v679_v13 }
  0x39   :  { %641 = vmatmul.msk.bf16.gmra.mxu1 %vm210_vm0, %v666_v14  ;;  %648 = vmatmul.msk.bf16.gmra.mxu2 %vm210_vm0, %v673_v15 }
  0x3a   :  { %635 = vmatmul.msk.bf16.gmra.mxu0 %vm210_vm0, %v660_v16  ;;  %655 = vmatmul.msk.bf16.gmra.mxu3 %vm210_vm0, %v680_v17 }
  0x49   :  { %642 = vmatmul.msk.bf16.gmra.mxu1 %vm210_vm0, %v667_v18  ;;  %649 = vmatmul.msk.bf16.gmra.mxu2 %vm210_vm0, %v674_v19 }
  0x4a   :  { %636 = vmatmul.msk.bf16.gmra.mxu0 %vm210_vm0, %v661_v20  ;;  %656 = vmatmul.msk.bf16.gmra.mxu3 %vm210_vm0, %v681_v21 }
  0x59   :  { %643 = vmatmul.msk.bf16.gmra.mxu1 %vm210_vm0, %v668_v22  ;;  %650 = vmatmul.msk.bf16.gmra.mxu2 %vm210_vm0, %v675_v23 }
  0x5a   :  { %637 = vmatmul.msk.bf16.gmra.mxu0 %vm210_vm0, %v662_v24 }
  0x69   :  { %644 = vmatmul.msk.bf16.gmra.mxu1 %vm210_vm0, %v669_v25  ;;  %651 = vmatmul.msk.bf16.gmra.mxu2 %vm210_vm0, %v676_v26 }
  0x86   :  { %v325_v28 = vpop.f32.mrf.mxu1 }
  0x87   :  { %v326_v29 = vadd.f32 %v820_v27, %v325_v28  ;;  %v295_v30 = vpop.f32.mrf.mxu0 }
  0x88   :  { %v296_v31 = vadd.f32 %v820_v27, %v295_v30 }
  0x89   :  { %v432_v32 = vmax.f32 %v326_v29, 0.0 }
  0x8a   :  { %v420_v33 = vmax.f32 %v296_v31, 0.0 }
  0x8b   :  { %482 = vst.msk [vmem:[%s1075_s3 + $0x60] sm:$0xff] %vm210_vm0, %v432_v32 }
  0x8c   :  { %v360_v34 = vpop.f32.mrf.mxu2  ;;  %470 = vst.msk [vmem:[%s1075_s3] sm:$0xff] %vm210_vm0, %v420_v33 }
  0x8d   :  { %v361_v35 = vadd.f32 %v820_v27, %v360_v34  ;;  %v395_v36 = vpop.f32.mrf.mxu3 }
  0x8e   :  { %v327_v37 = vpop.f32.mrf.mxu1  ;;  %v396_v38 = vadd.f32 %v820_v27, %v395_v36 }
  0x8f   :  { %v446_v39 = vmax.f32 %v361_v35, 0.0  ;;  %v328_v40 = vadd.f32 %v820_v27, %v327_v37  ;;  %v297_v41 = vpop.f32.mrf.mxu0 }
  0x90   :  { %v298_v42 = vadd.f32 %v820_v27, %v297_v41  ;;  %v460_v43 = vmax.f32 %v396_v38, 0.0 }
  0x91   :  { %496 = vst.msk [vmem:[%s1075_s3 + $0xd0] sm:$0xff] %vm210_vm0, %v446_v39  ;;  %v433_v44 = vmax.f32 %v328_v40, 0.0 }
  0x92   :  { %v421_v45 = vmax.f32 %v298_v42, 0.0  ;;  %510 = vst.msk [vmem:[%s1075_s3 + $0x140] sm:$0xff] %vm210_vm0, %v460_v43 }
  0x93   :  { %483 = vst.msk [vmem:[%s1075_s3 + $0x68] sm:$0xff] %vm210_vm0, %v433_v44 }
  0x94   :  { %v362_v46 = vpop.f32.mrf.mxu2  ;;  %471 = vst.msk [vmem:[%s1075_s3 + $0x8] sm:$0xff] %vm210_vm0, %v421_v45 }
  0x95   :  { %v363_v47 = vadd.f32 %v820_v27, %v362_v46  ;;  %v397_v48 = vpop.f32.mrf.mxu3 }
  0x96   :  { %v330_v49 = vpop.f32.mrf.mxu1  ;;  %v398_v50 = vadd.f32 %v820_v27, %v397_v48 }
  0x97   :  { %v447_v51 = vmax.f32 %v363_v47, 0.0  ;;  %v331_v52 = vadd.f32 %v820_v27, %v330_v49  ;;  %v300_v53 = vpop.f32.mrf.mxu0 }
  0x98   :  { %v301_v54 = vadd.f32 %v820_v27, %v300_v53  ;;  %v461_v55 = vmax.f32 %v398_v50, 0.0 }
  0x99   :  { %497 = vst.msk [vmem:[%s1075_s3 + $0xd8] sm:$0xff] %vm210_vm0, %v447_v51  ;;  %v434_v56 = vmax.f32 %v331_v52, 0.0 }
  0x9a   :  { %v422_v57 = vmax.f32 %v301_v54, 0.0  ;;  %511 = vst.msk [vmem:[%s1075_s3 + $0x148] sm:$0xff] %vm210_vm0, %v461_v55 }
  0x9b   :  { %484 = vst.msk [vmem:[%s1075_s3 + $0x70] sm:$0xff] %vm210_vm0, %v434_v56 }
  0x9c   :  { %v365_v58 = vpop.f32.mrf.mxu2  ;;  %472 = vst.msk [vmem:[%s1075_s3 + $0x10] sm:$0xff] %vm210_vm0, %v422_v57 }
  0x9d   :  { %v366_v59 = vadd.f32 %v820_v27, %v365_v58  ;;  %v400_v60 = vpop.f32.mrf.mxu3 }
  0x9e   :  { %v332_v61 = vpop.f32.mrf.mxu1  ;;  %v401_v62 = vadd.f32 %v820_v27, %v400_v60 }
  0x9f   :  { %v448_v63 = vmax.f32 %v366_v59, 0.0  ;;  %v333_v0 = vadd.f32 %v820_v27, %v332_v61  ;;  %v302_v1 = vpop.f32.mrf.mxu0 }
  0xa0   :  { %v303_v2 = vadd.f32 %v820_v27, %v302_v1  ;;  %v462_v3 = vmax.f32 %v401_v62, 0.0 }
  0xa1   :  { %498 = vst.msk [vmem:[%s1075_s3 + $0xe0] sm:$0xff] %vm210_vm0, %v448_v63  ;;  %v435_v4 = vmax.f32 %v333_v0, 0.0 }
  0xa2   :  { %v423_v5 = vmax.f32 %v303_v2, 0.0  ;;  %512 = vst.msk [vmem:[%s1075_s3 + $0x150] sm:$0xff] %vm210_vm0, %v462_v3 }
  0xa3   :  { %485 = vst.msk [vmem:[%s1075_s3 + $0x78] sm:$0xff] %vm210_vm0, %v435_v4 }
  0xa4   :  { %v367_v6 = vpop.f32.mrf.mxu2  ;;  %473 = vst.msk [vmem:[%s1075_s3 + $0x18] sm:$0xff] %vm210_vm0, %v423_v5 }
  0xa5   :  { %v368_v7 = vadd.f32 %v820_v27, %v367_v6  ;;  %v402_v8 = vpop.f32.mrf.mxu3 }
  0xa6   :  { %v335_v9 = vpop.f32.mrf.mxu1  ;;  %v403_v10 = vadd.f32 %v820_v27, %v402_v8 }
  0xa7   :  { %v449_v11 = vmax.f32 %v368_v7, 0.0  ;;  %v336_v12 = vadd.f32 %v820_v27, %v335_v9  ;;  %v305_v13 = vpop.f32.mrf.mxu0 }
  0xa8   :  { %v306_v14 = vadd.f32 %v820_v27, %v305_v13  ;;  %v463_v15 = vmax.f32 %v403_v10, 0.0 }
  0xa9   :  { %499 = vst.msk [vmem:[%s1075_s3 + $0xe8] sm:$0xff] %vm210_vm0, %v449_v11  ;;  %v436_v16 = vmax.f32 %v336_v12, 0.0 }
  0xaa   :  { %v424_v17 = vmax.f32 %v306_v14, 0.0  ;;  %513 = vst.msk [vmem:[%s1075_s3 + $0x158] sm:$0xff] %vm210_vm0, %v463_v15 }
  0xab   :  { %486 = vst.msk [vmem:[%s1075_s3 + $0x80] sm:$0xff] %vm210_vm0, %v436_v16 }
  0xac   :  { %v370_v18 = vpop.f32.mrf.mxu2  ;;  %474 = vst.msk [vmem:[%s1075_s3 + $0x20] sm:$0xff] %vm210_vm0, %v424_v17 }
  0xad   :  { %v371_v19 = vadd.f32 %v820_v27, %v370_v18  ;;  %v405_v20 = vpop.f32.mrf.mxu3 }
  0xae   :  { %v337_v21 = vpop.f32.mrf.mxu1  ;;  %v406_v22 = vadd.f32 %v820_v27, %v405_v20 }
  0xaf   :  { %v450_v23 = vmax.f32 %v371_v19, 0.0  ;;  %v338_v24 = vadd.f32 %v820_v27, %v337_v21  ;;  %v307_v25 = vpop.f32.mrf.mxu0 }
  0xb0   :  { %v308_v26 = vadd.f32 %v820_v27, %v307_v25  ;;  %v464_v28 = vmax.f32 %v406_v22, 0.0 }
  0xb1   :  { %500 = vst.msk [vmem:[%s1075_s3 + $0xf0] sm:$0xff] %vm210_vm0, %v450_v23  ;;  %v437_v29 = vmax.f32 %v338_v24, 0.0 }
  0xb2   :  { %v425_v30 = vmax.f32 %v308_v26, 0.0  ;;  %514 = vst.msk [vmem:[%s1075_s3 + $0x160] sm:$0xff] %vm210_vm0, %v464_v28 }
  0xb3   :  { %487 = vst.msk [vmem:[%s1075_s3 + $0x88] sm:$0xff] %vm210_vm0, %v437_v29 }
  0xb4   :  { %v372_v31 = vpop.f32.mrf.mxu2  ;;  %475 = vst.msk [vmem:[%s1075_s3 + $0x28] sm:$0xff] %vm210_vm0, %v425_v30 }
  0xb5   :  { %v373_v32 = vadd.f32 %v820_v27, %v372_v31  ;;  %v407_v33 = vpop.f32.mrf.mxu3 }
  0xb6   :  { %v340_v34 = vpop.f32.mrf.mxu1  ;;  %v408_v35 = vadd.f32 %v820_v27, %v407_v33 }
  0xb7   :  { %v451_v36 = vmax.f32 %v373_v32, 0.0  ;;  %v341_v37 = vadd.f32 %v820_v27, %v340_v34  ;;  %v310_v38 = vpop.f32.mrf.mxu0 }
  0xb8   :  { %v311_v39 = vadd.f32 %v820_v27, %v310_v38  ;;  %v465_v40 = vmax.f32 %v408_v35, 0.0 }
  0xb9   :  { %501 = vst.msk [vmem:[%s1075_s3 + $0xf8] sm:$0xff] %vm210_vm0, %v451_v36  ;;  %v438_v41 = vmax.f32 %v341_v37, 0.0 }
  0xba   :  { %v426_v42 = vmax.f32 %v311_v39, 0.0  ;;  %515 = vst.msk [vmem:[%s1075_s3 + $0x168] sm:$0xff] %vm210_vm0, %v465_v40 }
  0xbb   :  { %488 = vst.msk [vmem:[%s1075_s3 + $0x90] sm:$0xff] %vm210_vm0, %v438_v41 }
  0xbc   :  { %v375_v43 = vpop.f32.mrf.mxu2  ;;  %476 = vst.msk [vmem:[%s1075_s3 + $0x30] sm:$0xff] %vm210_vm0, %v426_v42 }
  0xbd   :  { %v376_v44 = vadd.f32 %v820_v27, %v375_v43  ;;  %v410_v45 = vpop.f32.mrf.mxu3 }
  0xbe   :  { %v342_v46 = vpop.f32.mrf.mxu1  ;;  %v411_v47 = vadd.f32 %v820_v27, %v410_v45 }
  0xbf   :  { %v452_v48 = vmax.f32 %v376_v44, 0.0  ;;  %v343_v49 = vadd.f32 %v820_v27, %v342_v46  ;;  %v312_v50 = vpop.f32.mrf.mxu0 }
  0xc0   :  { %v313_v51 = vadd.f32 %v820_v27, %v312_v50  ;;  %v466_v52 = vmax.f32 %v411_v47, 0.0 }
  0xc1   :  { %502 = vst.msk [vmem:[%s1075_s3 + $0x100] sm:$0xff] %vm210_vm0, %v452_v48  ;;  %v439_v53 = vmax.f32 %v343_v49, 0.0 }
  0xc2   :  { %v427_v54 = vmax.f32 %v313_v51, 0.0  ;;  %516 = vst.msk [vmem:[%s1075_s3 + $0x170] sm:$0xff] %vm210_vm0, %v466_v52 }
  0xc3   :  { %489 = vst.msk [vmem:[%s1075_s3 + $0x98] sm:$0xff] %vm210_vm0, %v439_v53 }
  0xc4   :  { %v377_v55 = vpop.f32.mrf.mxu2  ;;  %477 = vst.msk [vmem:[%s1075_s3 + $0x38] sm:$0xff] %vm210_vm0, %v427_v54 }
  0xc5   :  { %v378_v56 = vadd.f32 %v820_v27, %v377_v55  ;;  %v412_v57 = vpop.f32.mrf.mxu3 }
  0xc6   :  { %v345_v58 = vpop.f32.mrf.mxu1  ;;  %v413_v59 = vadd.f32 %v820_v27, %v412_v57 }
  0xc7   :  { %v453_v60 = vmax.f32 %v378_v56, 0.0  ;;  %v346_v61 = vadd.f32 %v820_v27, %v345_v58  ;;  %v315_v62 = vpop.f32.mrf.mxu0 }
  0xc8   :  { %v316_v63 = vadd.f32 %v820_v27, %v315_v62  ;;  %v467_v0 = vmax.f32 %v413_v59, 0.0 }
  0xc9   :  { %503 = vst.msk [vmem:[%s1075_s3 + $0x108] sm:$0xff] %vm210_vm0, %v453_v60  ;;  %v440_v1 = vmax.f32 %v346_v61, 0.0 }
  0xca   :  { %v428_v2 = vmax.f32 %v316_v63, 0.0  ;;  %517 = vst.msk [vmem:[%s1075_s3 + $0x178] sm:$0xff] %vm210_vm0, %v467_v0 }
  0xcb   :  { %490 = vst.msk [vmem:[%s1075_s3 + $0xa0] sm:$0xff] %vm210_vm0, %v440_v1 }
  0xcc   :  { %v380_v3 = vpop.f32.mrf.mxu2  ;;  %478 = vst.msk [vmem:[%s1075_s3 + $0x40] sm:$0xff] %vm210_vm0, %v428_v2 }
  0xcd   :  { %v381_v4 = vadd.f32 %v820_v27, %v380_v3  ;;  %v415_v5 = vpop.f32.mrf.mxu3 }
  0xce   :  { %v347_v6 = vpop.f32.mrf.mxu1  ;;  %v416_v7 = vadd.f32 %v820_v27, %v415_v5 }
  0xcf   :  { %v454_v8 = vmax.f32 %v381_v4, 0.0  ;;  %v348_v9 = vadd.f32 %v820_v27, %v347_v6  ;;  %v317_v10 = vpop.f32.mrf.mxu0 }
  0xd0   :  { %v318_v11 = vadd.f32 %v820_v27, %v317_v10  ;;  %v468_v12 = vmax.f32 %v416_v7, 0.0 }
  0xd1   :  { %504 = vst.msk [vmem:[%s1075_s3 + $0x110] sm:$0xff] %vm210_vm0, %v454_v8  ;;  %v441_v13 = vmax.f32 %v348_v9, 0.0 }
  0xd2   :  { %v429_v14 = vmax.f32 %v318_v11, 0.0  ;;  %518 = vst.msk [vmem:[%s1075_s3 + $0x180] sm:$0xff] %vm210_vm0, %v468_v12 }
  0xd3   :  { %491 = vst.msk [vmem:[%s1075_s3 + $0xa8] sm:$0xff] %vm210_vm0, %v441_v13 }
  0xd4   :  { %v382_v15 = vpop.f32.mrf.mxu2  ;;  %479 = vst.msk [vmem:[%s1075_s3 + $0x48] sm:$0xff] %vm210_vm0, %v429_v14 }
  0xd5   :  { %v383_v16 = vadd.f32 %v820_v27, %v382_v15  ;;  %v417_v17 = vpop.f32.mrf.mxu3 }
  0xd6   :  { %v350_v18 = vpop.f32.mrf.mxu1  ;;  %v418_v19 = vadd.f32 %v820_v27, %v417_v17 }
  0xd7   :  { %v455_v20 = vmax.f32 %v383_v16, 0.0  ;;  %v351_v21 = vadd.f32 %v820_v27, %v350_v18  ;;  %v320_v22 = vpop.f32.mrf.mxu0 }
  0xd8   :  { %v321_v23 = vadd.f32 %v820_v27, %v320_v22  ;;  %v469_v24 = vmax.f32 %v418_v19, 0.0 }
  0xd9   :  { %505 = vst.msk [vmem:[%s1075_s3 + $0x118] sm:$0xff] %vm210_vm0, %v455_v20  ;;  %v442_v25 = vmax.f32 %v351_v21, 0.0 }
  0xda   :  { %v430_v26 = vmax.f32 %v321_v23, 0.0  ;;  %519 = vst.msk [vmem:[%s1075_s3 + $0x188] sm:$0xff] %vm210_vm0, %v469_v24 }
  0xdb   :  { %492 = vst.msk [vmem:[%s1075_s3 + $0xb0] sm:$0xff] %vm210_vm0, %v442_v25 }
  0xdc   :  { %v385_v28 = vpop.f32.mrf.mxu2  ;;  %480 = vst.msk [vmem:[%s1075_s3 + $0x50] sm:$0xff] %vm210_vm0, %v430_v26 }
  0xdd   :  { %v386_v29 = vadd.f32 %v820_v27, %v385_v28 }
  0xde   :  { %v352_v30 = vpop.f32.mrf.mxu1 }
  0xdf   :  { %v456_v31 = vmax.f32 %v386_v29, 0.0  ;;  %v353_v32 = vadd.f32 %v820_v27, %v352_v30  ;;  %v322_v33 = vpop.f32.mrf.mxu0 }
  0xe0   :  { %v323_v34 = vadd.f32 %v820_v27, %v322_v33 }
  0xe1   :  { %506 = vst.msk [vmem:[%s1075_s3 + $0x120] sm:$0xff] %vm210_vm0, %v456_v31  ;;  %v443_v35 = vmax.f32 %v353_v32, 0.0 }
  0xe2   :  { %v431_v36 = vmax.f32 %v323_v34, 0.0 }
  0xe3   :  { %493 = vst.msk [vmem:[%s1075_s3 + $0xb8] sm:$0xff] %vm210_vm0, %v443_v35 }
  0xe4   :  { %v387_v37 = vpop.f32.mrf.mxu2  ;;  %481 = vst.msk [vmem:[%s1075_s3 + $0x58] sm:$0xff] %vm210_vm0, %v431_v36 }
  0xe5   :  { %v388_v38 = vadd.f32 %v820_v27, %v387_v37 }
  0xe6   :  { %v355_v39 = vpop.f32.mrf.mxu1 }
  0xe7   :  { %v457_v40 = vmax.f32 %v388_v38, 0.0  ;;  %v356_v41 = vadd.f32 %v820_v27, %v355_v39 }
  0xe9   :  { %507 = vst.msk [vmem:[%s1075_s3 + $0x128] sm:$0xff] %vm210_vm0, %v457_v40  ;;  %v444_v42 = vmax.f32 %v356_v41, 0.0 }
  0xeb   :  { %494 = vst.msk [vmem:[%s1075_s3 + $0xc0] sm:$0xff] %vm210_vm0, %v444_v42 }
  0xec   :  { %v390_v43 = vpop.f32.mrf.mxu2 }
  0xed   :  { %v391_v44 = vadd.f32 %v820_v27, %v390_v43 }
  0xee   :  { %v357_v45 = vpop.f32.mrf.mxu1 }
  0xef   :  { %v458_v46 = vmax.f32 %v391_v44, 0.0  ;;  %v358_v47 = vadd.f32 %v820_v27, %v357_v45 }
  0xf1   :  { %508 = vst.msk [vmem:[%s1075_s3 + $0x130] sm:$0xff] %vm210_vm0, %v458_v46  ;;  %v445_v48 = vmax.f32 %v358_v47, 0.0 }
  0xf3   :  { %495 = vst.msk [vmem:[%s1075_s3 + $0xc8] sm:$0xff] %vm210_vm0, %v445_v48 }
  0xf4   :  { %v392_v49 = vpop.f32.mrf.mxu2 }
  0xf5   :  { %v393_v50 = vadd.f32 %v820_v27, %v392_v49 }
  0xf7   :  { %v459_v51 = vmax.f32 %v393_v50, 0.0 }
  0xf9   :  { %509 = vst.msk [vmem:[%s1075_s3 + $0x138] sm:$0xff] %vm210_vm0, %v459_v51 }

// kernel: vae_forward.6
= control target key start
LH: loop header
LB: loop body
LE: loop exit
PB: predicated region body
PF: predicated region fallthrough
CT: control target
= control target key end

     0   :  { %vm296_vm0 = vcmask 261120   ;;  %vm464_vm1 = vcmask 523264   ;;  %s984_s1 = inlined_call_operand.vmem [shape: bf16[288,64], index: 1, kind: input, shape index: {}]   ;;  %s985_s0 = inlined_call_operand.vmem [shape: bf16[112,288], index: 0, kind: input, shape index: {}]   ;;  %s986_s2 = inlined_call_operand.vmem [shape: f32[1,64], index: 2, kind: input, shape index: {}]   ;;  %s987_s3 = inlined_call_operand.vmem [shape: f32[112,64], index: 3, kind: output, shape index: {}]  }
   0x1   :  { %v674_v0 = vld [vmem:[%s984_s1 + $0x38] sm:$0xff]  ;;  %v684_v1 = vld [vmem:[%s984_s1 + $0x88] sm:$0xff]  ;;  %v673_v3 = vld [vmem:[%s984_s1 + $0x30] sm:$0xff] }
   0x2   :  { %v682_v2 = vld [vmem:[%s984_s1 + $0x78] sm:$0xff]  ;;  %318 = vmatpush.bf16.msra.mxu0 %v674_v0  ;;  %685 = vmatpush.bf16.msra.mxu3 %v674_v0  ;;  %v683_v4 = vld [vmem:[%s984_s1 + $0x80] sm:$0xff]  ;;  %v681_v5 = vld [vmem:[%s984_s1 + $0x70] sm:$0xff] }
   0x3   :  { %412 = vmatpush.bf16.msra.mxu2 %v684_v1  ;;  %362 = vmatpush.bf16.msra.mxu1 %v682_v2  ;;  %v493_v6 = vld [vmem:[%s985_s0 + $0x8] sm:$0xf]  ;;  %v648_v7 = vld [vmem:[%s985_s0 + $0x10] sm:$0xf0]  ;;  %v671_v11 = vld [vmem:[%s984_s1 + $0x20] sm:$0xff] }
   0x4   :  { %v494_v8 = vor.u32 %v648_v7, %v493_v6  ;;  %v672_v9 = vld [vmem:[%s984_s1 + $0x28] sm:$0xff]  ;;  %v679_v12 = vld [vmem:[%s984_s1 + $0x60] sm:$0xff]  ;;  %v670_v13 = vld [vmem:[%s984_s1 + $0x18] sm:$0xff] }
   0x5   :  { %v680_v10 = vld [vmem:[%s984_s1 + $0x68] sm:$0xff]  ;;  %v678_v14 = vld [vmem:[%s984_s1 + $0x58] sm:$0xff]  ;;  %v669_v15 = vld [vmem:[%s984_s1 + $0x10] sm:$0xff] }
   0x6   :  { %319 = vmatpush.bf16.msra.mxu0 %v673_v3  ;;  %686 = vmatpush.bf16.msra.mxu3 %v673_v3  ;;  %v677_v16 = vld [vmem:[%s984_s1 + $0x50] sm:$0xff]  ;;  %v505_v17 = vld [vmem:[%s985_s0 + $0x20] sm:$0xf]  ;;  %v651_v18 = vld [vmem:[%s985_s0 + $0x28] sm:$0xf0] }
   0x7   :  { %413 = vmatpush.bf16.msra.mxu2 %v683_v4  ;;  %363 = vmatpush.bf16.msra.mxu1 %v681_v5  ;;  %v506_v19 = vor.u32 %v651_v18, %v505_v17  ;;  %v668_v20 = vld [vmem:[%s984_s1 + $0x8] sm:$0xff]  ;;  %v667_v22 = vld [vmem:[%s984_s1] sm:$0xff]  ;;  %v545_v26 = vld [vmem:[%s985_s0 + $0x78] sm:$0xf] }
   0x8   :  { %v676_v21 = vld [vmem:[%s984_s1 + $0x48] sm:$0xff]  ;;  %v675_v23 = vld [vmem:[%s984_s1 + $0x40] sm:$0xff]  ;;  %v487_v29 = vld [vmem:[%s985_s0 + $0xc] sm:$0xf0] }
   0x9   :  { %v485_v24 = vld [vmem:[%s985_s0] sm:$0xf]  ;;  %v647_v25 = vld [vmem:[%s985_s0 + $0x8] sm:$0xf0]  ;;  %v662_v27 = vld [vmem:[%s985_s0 + $0x80] sm:$0xf0] }
   0xa   :  { %639 = vmatmul.msk.bf16.vlgmr.msra.gmra.mxu2 %vm296_vm0, %v494_v8  ;;  %320 = vmatpush.bf16.msra.mxu0 %v672_v9  ;;  %v646_v28 = vld [vmem:[%s985_s0 + $0x4] sm:$0xf]  ;;  %v486_v30 = vor.u32 %v647_v25, %v485_v24  ;;  %v546_v31 = vor.u32 %v662_v27, %v545_v26  ;;  %v517_v33 = vld [vmem:[%s985_s0 + $0x38] sm:$0xf]  ;;  %v557_v38 = vld [vmem:[%s985_s0 + $0x90] sm:$0xf] }
   0xb   :  { %687 = vmatpush.bf16.msra.mxu3 %v672_v9  ;;  %364 = vmatpush.bf16.msra.mxu1 %v680_v10  ;;  %v490_v32 = vor.u32 %v646_v28, %v487_v29  ;;  %v654_v34 = vld [vmem:[%s985_s0 + $0x40] sm:$0xf0]  ;;  %v497_v36 = vld [vmem:[%s985_s0 + $0x18] sm:$0xf]  ;;  %v665_v39 = vld [vmem:[%s985_s0 + $0x98] sm:$0xf0] }
   0xc   :  { %v518_v35 = vor.u32 %v654_v34, %v517_v33  ;;  %v650_v37 = vld [vmem:[%s985_s0 + $0x20] sm:$0xf0]  ;;  %v649_v40 = vld [vmem:[%s985_s0 + $0x1c] sm:$0xf]  ;;  %v499_v41 = vld [vmem:[%s985_s0 + $0x24] sm:$0xf0]  ;;  %v558_v43 = vor.u32 %v665_v39, %v557_v38 }
   0xd   :  { %v498_v42 = vor.u32 %v650_v37, %v497_v36  ;;  %v502_v44 = vor.u32 %v649_v40, %v499_v41  ;;  %v529_v45 = vld [vmem:[%s985_s0 + $0x50] sm:$0xf]  ;;  %v657_v46 = vld [vmem:[%s985_s0 + $0x58] sm:$0xf0]  ;;  %v547_v51 = vld [vmem:[%s985_s0 + $0x84] sm:$0xf0] }
   0xe   :  { %321 = vmatpush.bf16.msra.mxu0 %v671_v11  ;;  %v530_v47 = vor.u32 %v657_v46, %v529_v45  ;;  %v509_v48 = vld [vmem:[%s985_s0 + $0x30] sm:$0xf]  ;;  %v653_v49 = vld [vmem:[%s985_s0 + $0x38] sm:$0xf0]  ;;  %v652_v52 = vld [vmem:[%s985_s0 + $0x34] sm:$0xf] }
   0xf   :  { %688 = vmatpush.bf16.msra.mxu3 %v671_v11  ;;  %365 = vmatpush.bf16.msra.mxu1 %v679_v12  ;;  %v661_v50 = vld [vmem:[%s985_s0 + $0x7c] sm:$0xf]  ;;  %v511_v53 = vld [vmem:[%s985_s0 + $0x3c] sm:$0xf0]  ;;  %v510_v54 = vor.u32 %v653_v49, %v509_v48  ;;  %v541_v57 = vld [vmem:[%s985_s0 + $0x68] sm:$0xf] }
  0x10   :  { %v550_v55 = vor.u32 %v661_v50, %v547_v51  ;;  %v514_v56 = vor.u32 %v652_v52, %v511_v53  ;;  %v660_v58 = vld [vmem:[%s985_s0 + $0x70] sm:$0xf0]  ;;  %v521_v60 = vld [vmem:[%s985_s0 + $0x48] sm:$0xf]  ;;  %v559_v63 = vld [vmem:[%s985_s0 + $0x9c] sm:$0xf0] }
  0x11   :  { %v542_v59 = vor.u32 %v660_v58, %v541_v57  ;;  %v656_v61 = vld [vmem:[%s985_s0 + $0x50] sm:$0xf0]  ;;  %v655_v0 = vld [vmem:[%s985_s0 + $0x4c] sm:$0xf]  ;;  %v523_v1 = vld [vmem:[%s985_s0 + $0x54] sm:$0xf0] }
  0x12   :  { %322 = vmatpush.bf16.msra.mxu0 %v670_v13  ;;  %v664_v62 = vld [vmem:[%s985_s0 + $0x94] sm:$0xf]  ;;  %v526_v4 = vor.u32 %v655_v0, %v523_v1  ;;  %v663_v6 = vld [vmem:[%s985_s0 + $0x88] sm:$0xf0]  ;;  %v533_v8 = vld [vmem:[%s985_s0 + $0x60] sm:$0xf] }
  0x13   :  { %689 = vmatpush.bf16.msra.mxu3 %v670_v13  ;;  %366 = vmatpush.bf16.msra.mxu1 %v678_v14  ;;  %v562_v3 = vor.u32 %v664_v62, %v559_v63  ;;  %v659_v9 = vld [vmem:[%s985_s0 + $0x68] sm:$0xf0]  ;;  %v535_v11 = vld [vmem:[%s985_s0 + $0x6c] sm:$0xf0] }
  0x16   :  { %323 = vmatpush.bf16.msra.mxu0 %v669_v15 }
  0x17   :  { %690 = vmatpush.bf16.msra.mxu3 %v669_v15  ;;  %367 = vmatpush.bf16.msra.mxu1 %v677_v16  ;;  %v666_v15 = vld [vmem:[%s985_s0 + $0xa0] sm:$0xf0] }
  0x1a   :  { %640 = vmatmul.msk.bf16.gmra.mxu2 %vm296_vm0, %v506_v19  ;;  %324 = vmatpush.bf16.msra.mxu0 %v668_v20  ;;  %v912_v19 = vld [vmem:[%s986_s2] ss:$0 sm:$0xff] }
  0x1b   :  { %691 = vmatpush.bf16.msra.mxu3 %v668_v20  ;;  %368 = vmatpush.bf16.msra.mxu1 %v676_v21 }
  0x1e   :  { %325 = vmatpush.bf16.msra.mxu0 %v667_v22 }
  0x1f   :  { %692 = vmatpush.bf16.msra.mxu3 %v667_v22  ;;  %369 = vmatpush.bf16.msra.mxu1 %v675_v23 }
  0x21   :  { %326 = vmatmul.bf16.vlgmr.msra.gmra.mxu0 %v486_v30 }
  0x22   :  { %351 = vmatmul.bf16.vlgmr.msra.gmra.mxu3 %v546_v31  ;;  %370 = vmatmul.bf16.vlgmr.msra.gmra.mxu1 %v490_v32 }
  0x23   :  { %693 = vmatpush.bf16.msrb.mxu3 %v682_v2  ;;  %v522_v2 = vor.u32 %v656_v61, %v521_v60 }
  0x27   :  { %694 = vmatpush.bf16.msrb.mxu3 %v681_v5  ;;  %v553_v5 = vld [vmem:[%s985_s0 + $0x80] sm:$0xf] }
  0x28   :  { %v554_v7 = vor.u32 %v663_v6, %v553_v5 }
  0x2a   :  { %641 = vmatmul.msk.bf16.gmra.mxu2 %vm296_vm0, %v518_v35 }
  0x2b   :  { %695 = vmatpush.bf16.msrb.mxu3 %v680_v10  ;;  %v658_v10 = vld [vmem:[%s985_s0 + $0x64] sm:$0xf] }
  0x2c   :  { %v538_v13 = vor.u32 %v658_v10, %v535_v11 }
  0x2f   :  { %696 = vmatpush.bf16.msrb.mxu3 %v679_v12  ;;  %v534_v12 = vor.u32 %v659_v9, %v533_v8 }
  0x31   :  { %331 = vmatmul.bf16.gmra.mxu0 %v498_v42 }
  0x32   :  { %356 = vmatmul.bf16.gmra.mxu3 %v558_v43  ;;  %375 = vmatmul.bf16.gmra.mxu1 %v502_v44 }
  0x33   :  { %697 = vmatpush.bf16.msrb.mxu3 %v678_v14  ;;  %v565_v14 = vld [vmem:[%s985_s0 + $0x98] sm:$0xf] }
  0x37   :  { %698 = vmatpush.bf16.msrb.mxu3 %v677_v16  ;;  %v566_v16 = vor.u32 %v666_v15, %v565_v14 }
  0x3a   :  { %642 = vmatmul.msk.bf16.gmra.mxu2 %vm296_vm0, %v530_v47 }
  0x3b   :  { %699 = vmatpush.bf16.msrb.mxu3 %v676_v21 }
  0x3f   :  { %700 = vmatpush.bf16.msrb.mxu3 %v675_v23 }
  0x41   :  { %336 = vmatmul.bf16.gmra.mxu0 %v510_v54 }
  0x42   :  { %395 = vmatmul.bf16.vlgmr.msrb.gmra.mxu3 %v550_v55  ;;  %380 = vmatmul.bf16.gmra.mxu1 %v514_v56 }
  0x4a   :  { %643 = vmatmul.msk.bf16.gmra.mxu2 %vm296_vm0, %v542_v59 }
  0x51   :  { %341 = vmatmul.bf16.gmra.mxu0 %v522_v2 }
  0x52   :  { %400 = vmatmul.bf16.gmra.mxu3 %v562_v3  ;;  %385 = vmatmul.bf16.gmra.mxu1 %v526_v4 }
  0x5a   :  { %644 = vmatmul.msk.bf16.gmra.mxu2 %vm296_vm0, %v554_v7 }
  0x61   :  { %346 = vmatmul.bf16.gmra.mxu0 %v534_v12 }
  0x62   :  { %390 = vmatmul.bf16.gmra.mxu1 %v538_v13 }
  0x6a   :  { %645 = vmatmul.msk.bf16.gmra.mxu2 %vm296_vm0, %v566_v16 }
  0x8d   :  { %v415_v17 = vpop.f32.mrf.mxu2 }
  0x95   :  { %v417_v18 = vpop.f32.mrf.mxu2 }
  0x9d   :  { %v420_v20 = vpop.f32.mrf.mxu2 }
  0x9e   :  { %v327_v21 = vpop.f32.mrf.mxu0 }
  0x9f   :  { %v328_v22 = vadd.f32 %v912_v19, %v327_v21  ;;  %v371_v23 = vpop.f32.mrf.mxu1 }
  0xa1   :  { %v372_v24 = vadd.f32 %v371_v23, %v328_v22 }
  0xa3   :  { %v416_v25 = vadd.f32 %v415_v17, %v372_v24 }
  0xa5   :  { %v450_v26 = vmax.f32 %v416_v25, 0.0  ;;  %v422_v27 = vpop.f32.mrf.mxu2  ;;  %v352_v32 = vpop.f32.mrf.mxu3 }
  0xa6   :  { %v329_v28 = vpop.f32.mrf.mxu0  ;;  %v353_v15 = vadd.f32 %v912_v19, %v352_v32 }
  0xa7   :  { %465 = vst.msk [vmem:[%s987_s3] sm:$0xff] %vm464_vm1, %v450_v26  ;;  %v330_v29 = vadd.f32 %v912_v19, %v329_v28  ;;  %v373_v30 = vpop.f32.mrf.mxu1 }
  0xa9   :  { %v374_v31 = vadd.f32 %v373_v30, %v330_v29 }
  0xab   :  { %v418_v33 = vadd.f32 %v417_v18, %v374_v31 }
  0xad   :  { %v451_v34 = vmax.f32 %v418_v33, 0.0  ;;  %v425_v35 = vpop.f32.mrf.mxu2  ;;  %v354_v41 = vpop.f32.mrf.mxu3 }
  0xae   :  { %v332_v36 = vpop.f32.mrf.mxu0  ;;  %v355_v28 = vadd.f32 %v912_v19, %v354_v41 }
  0xaf   :  { %466 = vst.msk [vmem:[%s987_s3 + $0x8] sm:$0xff] %vm464_vm1, %v451_v34  ;;  %v333_v37 = vadd.f32 %v912_v19, %v332_v36  ;;  %v376_v38 = vpop.f32.mrf.mxu1 }
  0xb1   :  { %v377_v39 = vadd.f32 %v376_v38, %v333_v37 }
  0xb3   :  { %v421_v40 = vadd.f32 %v420_v20, %v377_v39 }
  0xb5   :  { %v452_v42 = vmax.f32 %v421_v40, 0.0  ;;  %v427_v43 = vpop.f32.mrf.mxu2  ;;  %v357_v52 = vpop.f32.mrf.mxu3 }
  0xb6   :  { %v334_v44 = vpop.f32.mrf.mxu0  ;;  %v358_v40 = vadd.f32 %v912_v19, %v357_v52 }
  0xb7   :  { %467 = vst.msk [vmem:[%s987_s3 + $0x10] sm:$0xff] %vm464_vm1, %v452_v42  ;;  %v335_v45 = vadd.f32 %v912_v19, %v334_v44  ;;  %v378_v46 = vpop.f32.mrf.mxu1 }
  0xb9   :  { %v379_v47 = vadd.f32 %v378_v46, %v335_v45 }
  0xbb   :  { %v423_v48 = vadd.f32 %v422_v27, %v379_v47 }
  0xbd   :  { %v453_v49 = vmax.f32 %v423_v48, 0.0  ;;  %v430_v50 = vpop.f32.mrf.mxu2  ;;  %v359_v62 = vpop.f32.mrf.mxu3 }
  0xbe   :  { %v337_v51 = vpop.f32.mrf.mxu0  ;;  %v360_v48 = vadd.f32 %v912_v19, %v359_v62 }
  0xbf   :  { %468 = vst.msk [vmem:[%s987_s3 + $0x18] sm:$0xff] %vm464_vm1, %v453_v49  ;;  %v338_v53 = vadd.f32 %v912_v19, %v337_v51  ;;  %v381_v54 = vpop.f32.mrf.mxu1 }
  0xc1   :  { %v382_v55 = vadd.f32 %v381_v54, %v338_v53 }
  0xc3   :  { %v426_v56 = vadd.f32 %v425_v35, %v382_v55 }
  0xc5   :  { %v454_v57 = vmax.f32 %v426_v56, 0.0  ;;  %v432_v58 = vpop.f32.mrf.mxu2  ;;  %v396_v7 = vpop.f32.mrf.mxu3 }
  0xc6   :  { %v339_v59 = vpop.f32.mrf.mxu0  ;;  %v397_v17 = vadd.f32 %v396_v7, %v353_v15 }
  0xc7   :  { %469 = vst.msk [vmem:[%s987_s3 + $0x20] sm:$0xff] %vm464_vm1, %v454_v57  ;;  %v340_v60 = vadd.f32 %v912_v19, %v339_v59  ;;  %v383_v61 = vpop.f32.mrf.mxu1 }
  0xc9   :  { %v384_v63 = vadd.f32 %v383_v61, %v340_v60 }
  0xcb   :  { %v428_v0 = vadd.f32 %v427_v43, %v384_v63 }
  0xcd   :  { %v455_v1 = vmax.f32 %v428_v0, 0.0  ;;  %v435_v2 = vpop.f32.mrf.mxu2  ;;  %v398_v18 = vpop.f32.mrf.mxu3 }
  0xce   :  { %v342_v3 = vpop.f32.mrf.mxu0  ;;  %v399_v30 = vadd.f32 %v398_v18, %v355_v28 }
  0xcf   :  { %470 = vst.msk [vmem:[%s987_s3 + $0x28] sm:$0xff] %vm464_vm1, %v455_v1  ;;  %v343_v4 = vadd.f32 %v912_v19, %v342_v3  ;;  %v386_v5 = vpop.f32.mrf.mxu1 }
  0xd1   :  { %v387_v6 = vadd.f32 %v386_v5, %v343_v4 }
  0xd3   :  { %v431_v8 = vadd.f32 %v430_v50, %v387_v6 }
  0xd5   :  { %v456_v9 = vmax.f32 %v431_v8, 0.0  ;;  %v437_v10 = vpop.f32.mrf.mxu2  ;;  %v401_v35 = vpop.f32.mrf.mxu3 }
  0xd6   :  { %v344_v11 = vpop.f32.mrf.mxu0  ;;  %v402_v42 = vadd.f32 %v401_v35, %v358_v40 }
  0xd7   :  { %471 = vst.msk [vmem:[%s987_s3 + $0x30] sm:$0xff] %vm464_vm1, %v456_v9  ;;  %v345_v12 = vadd.f32 %v912_v19, %v344_v11  ;;  %v388_v13 = vpop.f32.mrf.mxu1 }
  0xd9   :  { %v389_v14 = vadd.f32 %v388_v13, %v345_v12 }
  0xdb   :  { %v433_v16 = vadd.f32 %v432_v58, %v389_v14 }
  0xdd   :  { %v457_v20 = vmax.f32 %v433_v16, 0.0  ;;  %v440_v21 = vpop.f32.mrf.mxu2  ;;  %v403_v47 = vpop.f32.mrf.mxu3 }
  0xde   :  { %v441_v22 = vadd.f32 %v440_v21, %v397_v17  ;;  %v347_v23 = vpop.f32.mrf.mxu0  ;;  %v404_v49 = vadd.f32 %v403_v47, %v360_v48 }
  0xdf   :  { %472 = vst.msk [vmem:[%s987_s3 + $0x38] sm:$0xff] %vm464_vm1, %v457_v20  ;;  %v348_v24 = vadd.f32 %v912_v19, %v347_v23  ;;  %v391_v25 = vpop.f32.mrf.mxu1 }
  0xe0   :  { %v460_v26 = vmax.f32 %v441_v22, 0.0 }
  0xe1   :  { %v392_v27 = vadd.f32 %v391_v25, %v348_v24 }
  0xe2   :  { %475 = vst.msk [vmem:[%s987_s3 + $0x50] sm:$0xff] %vm464_vm1, %v460_v26 }
  0xe3   :  { %v436_v29 = vadd.f32 %v435_v2, %v392_v27 }
  0xe5   :  { %v458_v31 = vmax.f32 %v436_v29, 0.0  ;;  %v442_v32 = vpop.f32.mrf.mxu2 }
  0xe6   :  { %v443_v33 = vadd.f32 %v442_v32, %v399_v30  ;;  %v349_v34 = vpop.f32.mrf.mxu0 }
  0xe7   :  { %473 = vst.msk [vmem:[%s987_s3 + $0x40] sm:$0xff] %vm464_vm1, %v458_v31  ;;  %v350_v36 = vadd.f32 %v912_v19, %v349_v34  ;;  %v393_v37 = vpop.f32.mrf.mxu1 }
  0xe8   :  { %v461_v38 = vmax.f32 %v443_v33, 0.0 }
  0xe9   :  { %v394_v39 = vadd.f32 %v393_v37, %v350_v36 }
  0xea   :  { %476 = vst.msk [vmem:[%s987_s3 + $0x58] sm:$0xff] %vm464_vm1, %v461_v38 }
  0xeb   :  { %v438_v41 = vadd.f32 %v437_v10, %v394_v39 }
  0xed   :  { %v459_v43 = vmax.f32 %v438_v41, 0.0  ;;  %v445_v44 = vpop.f32.mrf.mxu2 }
  0xee   :  { %v446_v45 = vadd.f32 %v445_v44, %v402_v42 }
  0xef   :  { %474 = vst.msk [vmem:[%s987_s3 + $0x48] sm:$0xff] %vm464_vm1, %v459_v43 }
  0xf0   :  { %v462_v46 = vmax.f32 %v446_v45, 0.0 }
  0xf2   :  { %477 = vst.msk [vmem:[%s987_s3 + $0x60] sm:$0xff] %vm464_vm1, %v462_v46 }
  0xf5   :  { %v447_v50 = vpop.f32.mrf.mxu2 }
  0xf6   :  { %v448_v51 = vadd.f32 %v447_v50, %v404_v49 }
  0xf8   :  { %v463_v52 = vmax.f32 %v448_v51, 0.0 }
  0xfa   :  { %478 = vst.msk [vmem:[%s987_s3 + $0x68] sm:$0xff] %vm464_vm1, %v463_v52 }

// kernel: vae_forward.7
= control target key start
LH: loop header
LB: loop body
LE: loop exit
PB: predicated region body
PF: predicated region fallthrough
CT: control target
= control target key end

     0   :  { %19 = vsyncpa [#allocation3], 0  ;;  %s8047_s0 = inlined_call_operand.vmem [shape: bf16[2,3136], index: 0, kind: input, shape index: {}]   ;;  %s8048_s1 = inlined_call_operand.vmem [shape: f32[2,20], index: 1, kind: input, shape index: {}]   ;;  %s8049_s2 = inlined_call_operand.vmem [shape: bf16[3136,128], index: 2, kind: input, shape index: {}]   ;;  %s8050_s3 = inlined_call_operand.vmem [shape: f32[1,128], index: 3, kind: input, shape index: {}]   ;;  %s8051_s4 = inlined_call_operand.vmem [shape: bf16[128,40], index: 4, kind: input, shape index: {}]   ;;  %s8052_s5 = inlined_call_operand.vmem [shape: f32[1,40], index: 5, kind: input, shape index: {}]   ;;  %s8053_s6 = inlined_call_operand.vmem [shape: bf16[20,128], index: 6, kind: input, shape index: {}]   ;;  %s8054_s7 = inlined_call_operand.vmem [shape: f32[1,128], index: 7, kind: input, shape index: {}]   ;;  %s8055_s8 = inlined_call_operand.vmem [shape: bf16[128,3136], index: 8, kind: input, shape index: {}]   ;;  %s8056_s9 = inlined_call_operand.vmem [shape: f32[1,3136], index: 9, kind: input, shape index: {}]   ;;  %s8057_s10 = inlined_call_operand.vmem [shape: f32[2,3136], index: 10, kind: output, shape index: {0}]   ;;  %s8058_s11 = inlined_call_operand.hbm [shape: f32[2,20], index: 11, kind: output, shape index: {1}]   ;;  %s8059_s12 = inlined_call_operand.hbm [shape: f32[2,20], index: 12, kind: output, shape index: {2}]   ;;  %s8060_s13 = inlined_call_operand.hbm [shape: f32[2,20], index: 13, kind: output, shape index: {3}]  }
   0x1   :  { %v5524_v0 = vld [vmem:[%s8049_s2 + $0x38] sm:$0xff]  ;;  %v5523_v4 = vld [vmem:[%s8049_s2 + $0x30] sm:$0xff]  ;;  %v5522_v8 = vld [vmem:[%s8049_s2 + $0x28] sm:$0xff] }
   0x2   :  { %v5540_v1 = vld [vmem:[%s8049_s2 + $0xb8] sm:$0xff]  ;;  %1678 = vmatpush.bf16.msra.mxu0 %v5524_v0  ;;  %v5539_v5 = vld [vmem:[%s8049_s2 + $0xb0] sm:$0xff]  ;;  %v5538_v9 = vld [vmem:[%s8049_s2 + $0xa8] sm:$0xff] }
   0x3   :  { %v5548_v2 = vld [vmem:[%s8049_s2 + $0xf8] sm:$0xff]  ;;  %1704 = vmatpush.bf16.msra.mxu2 %v5540_v1  ;;  %v5547_v6 = vld [vmem:[%s8049_s2 + $0xf0] sm:$0xff]  ;;  %v5546_v10 = vld [vmem:[%s8049_s2 + $0xe8] sm:$0xff] }
   0x4   :  { %v5532_v3 = vld [vmem:[%s8049_s2 + $0x78] sm:$0xff]  ;;  %1717 = vmatpush.bf16.msra.mxu3 %v5548_v2  ;;  %v5531_v7 = vld [vmem:[%s8049_s2 + $0x70] sm:$0xff]  ;;  %v5530_v11 = vld [vmem:[%s8049_s2 + $0x68] sm:$0xff] }
   0x5   :  { %1691 = vmatpush.bf16.msra.mxu1 %v5532_v3  ;;  %v5521_v12 = vld [vmem:[%s8049_s2 + $0x20] sm:$0xff]  ;;  %v5520_v16 = vld [vmem:[%s8049_s2 + $0x18] sm:$0xff]  ;;  %v5519_v20 = vld [vmem:[%s8049_s2 + $0x10] sm:$0xff] }
   0x6   :  { %1679 = vmatpush.bf16.msra.mxu0 %v5523_v4  ;;  %v5537_v13 = vld [vmem:[%s8049_s2 + $0xa0] sm:$0xff]  ;;  %v5536_v17 = vld [vmem:[%s8049_s2 + $0x98] sm:$0xff]  ;;  %v5535_v22 = vld [vmem:[%s8049_s2 + $0x90] sm:$0xff] }
   0x7   :  { %1705 = vmatpush.bf16.msra.mxu2 %v5539_v5  ;;  %v5545_v14 = vld [vmem:[%s8049_s2 + $0xe0] sm:$0xff]  ;;  %v5544_v18 = vld [vmem:[%s8049_s2 + $0xd8] sm:$0xff]  ;;  %v5543_v23 = vld [vmem:[%s8049_s2 + $0xd0] sm:$0xff] }
   0x8   :  { %1718 = vmatpush.bf16.msra.mxu3 %v5547_v6  ;;  %v5529_v15 = vld [vmem:[%s8049_s2 + $0x60] sm:$0xff]  ;;  %v5528_v19 = vld [vmem:[%s8049_s2 + $0x58] sm:$0xff]  ;;  %v5527_v24 = vld [vmem:[%s8049_s2 + $0x50] sm:$0xff] }
   0x9   :  { %1692 = vmatpush.bf16.msra.mxu1 %v5531_v7  ;;  %v42_v21 = vld [vmem:[%s8047_s0] sm:$0xff] }
   0xa   :  { %1680 = vmatpush.bf16.msra.mxu0 %v5522_v8  ;;  %443 = vst [vmem:[#allocation1] ss:$9 sm:$0xff] %v42_v21 }
   0xb   :  { %1706 = vmatpush.bf16.msra.mxu2 %v5538_v9 }
   0xc   :  { %1719 = vmatpush.bf16.msra.mxu3 %v5546_v10 }
   0xd   :  { %1693 = vmatpush.bf16.msra.mxu1 %v5530_v11 }
   0xe   :  { %1681 = vmatpush.bf16.msra.mxu0 %v5521_v12 }
   0xf   :  { %1707 = vmatpush.bf16.msra.mxu2 %v5537_v13 }
  0x10   :  { %1720 = vmatpush.bf16.msra.mxu3 %v5545_v14 }
  0x11   :  { %1694 = vmatpush.bf16.msra.mxu1 %v5529_v15 }
  0x12   :  { %1682 = vmatpush.bf16.msra.mxu0 %v5520_v16 }
  0x13   :  { %1708 = vmatpush.bf16.msra.mxu2 %v5536_v17 }
  0x14   :  { %1721 = vmatpush.bf16.msra.mxu3 %v5544_v18 }
  0x15   :  { %1695 = vmatpush.bf16.msra.mxu1 %v5528_v19 }
  0x16   :  { %20 = vsyncpa [#allocation5], 0  ;;  %1683 = vmatpush.bf16.msra.mxu0 %v5519_v20  ;;  %v5518_v25 = vld [vmem:[%s8049_s2 + $0x8] sm:$0xff]  ;;  %v5517_v29 = vld [vmem:[%s8049_s2] sm:$0xff]  ;;  %vm1675_vm0 = vcmask 523264   ;;  %vm2117_vm1 = vcmask 1041408  }
  0x17   :  { %1709 = vmatpush.bf16.msra.mxu2 %v5535_v22  ;;  %v5534_v26 = vld [vmem:[%s8049_s2 + $0x88] sm:$0xff]  ;;  %v5533_v30 = vld [vmem:[%s8049_s2 + $0x80] sm:$0xff]  ;;  %v5556_v32 = vld [vmem:[%s8049_s2 + $0x138] sm:$0xff]  ;;  %vm3836_vm2 = vcmask 156672   ;;  %s6008_s29 = smov 108   ;;  %vm2113_vm3 = vcmask 162816  }
  0x18   :  { %1722 = vmatpush.bf16.msra.mxu3 %v5543_v23  ;;  %v5542_v27 = vld [vmem:[%s8049_s2 + $0xc8] sm:$0xff]  ;;  %v5541_v31 = vld [vmem:[%s8049_s2 + $0xc0] sm:$0xff]  ;;  %v5572_v33 = vld [vmem:[%s8049_s2 + $0x1b8] sm:$0xff]  ;;  %vm3803_vm4 = vcmask 1045508   ;;  %vm3805_vm5 = vcmask 1043456   ;;  %s6009_s14 = smov [#allocation4]  }
  0x19   :  { %1696 = vmatpush.bf16.msra.mxu1 %v5527_v24  ;;  %v5526_v28 = vld [vmem:[%s8049_s2 + $0x48] sm:$0xff]  ;;  %v5580_v34 = vld [vmem:[%s8049_s2 + $0x1f8] sm:$0xff]  ;;  %v5525_v35 = vld [vmem:[%s8049_s2 + $0x40] sm:$0xff]  ;;  %s3862_s15 = sshll.u32 %s6009_s14, 4  ;;  %s3864_s18 = sshll.u32 %s8059_s12, 4  ;;  %vm3834_vm6 = vcmask 517120   ;;  %s3863_s15 = int_to_ptr.vmem [resolvable:$true] %s3862_s15  ;;  %s3865_s18 = int_to_ptr.hbm [resolvable:$true] %s3864_s18 }
  0x1a   :  { %1684 = vmatpush.bf16.msra.mxu0 %v5518_v25  ;;  %v5564_v36 = vld [vmem:[%s8049_s2 + $0x178] sm:$0xff]  ;;  %v5555_v38 = vld [vmem:[%s8049_s2 + $0x130] sm:$0xff]  ;;  %v444_v39 = vld [vmem:[#allocation1] sm:$0xff]  ;;  %s3853_s21 = sshll.u32 %s8058_s11, 4  ;;  %s6011_s12 = smov [#allocation6]   ;;  %s3854_s21 = int_to_ptr.hbm [resolvable:$true] %s3853_s21 }
  0x1b   :  { %1710 = vmatpush.bf16.msra.mxu2 %v5534_v26  ;;  %v446_v37 = vld [vmem:[#allocation1 + $0x12] sm:$0xff]  ;;  %v447_v42 = vld [vmem:[#allocation1 + $0x1b] sm:$0xff]  ;;  %v445_v44 = vld [vmem:[#allocation1 + $0x9] sm:$0xff]  ;;  %s3873_s22 = sshll.u32 %s6011_s12, 4  ;;  %s3874_s22 = int_to_ptr.vmem [resolvable:$true] %s3873_s22 }
  0x1c   :  { %1723 = vmatpush.bf16.msra.mxu3 %v5542_v27  ;;  %v5571_v40 = vld [vmem:[%s8049_s2 + $0x1b0] sm:$0xff]  ;;  %v5554_v45 = vld [vmem:[%s8049_s2 + $0x128] sm:$0xff]  ;;  %v451_v51 = vld [vmem:[#allocation1 + $0x3f] sm:$0xff] }
  0x1d   :  { %1697 = vmatpush.bf16.msra.mxu1 %v5526_v28  ;;  %v5579_v41 = vld [vmem:[%s8049_s2 + $0x1f0] sm:$0xff]  ;;  %v5570_v46 = vld [vmem:[%s8049_s2 + $0x1a8] sm:$0xff]  ;;  %v5553_v54 = vld [vmem:[%s8049_s2 + $0x120] sm:$0xff] }
  0x1e   :  { %1685 = vmatpush.bf16.msra.mxu0 %v5517_v29  ;;  %v5563_v43 = vld [vmem:[%s8049_s2 + $0x170] sm:$0xff]  ;;  %v5578_v47 = vld [vmem:[%s8049_s2 + $0x1e8] sm:$0xff]  ;;  %v5569_v55 = vld [vmem:[%s8049_s2 + $0x1a0] sm:$0xff] }
  0x1f   :  { %1711 = vmatpush.bf16.msra.mxu2 %v5533_v30  ;;  %v5562_v48 = vld [vmem:[%s8049_s2 + $0x168] sm:$0xff]  ;;  %v450_v49 = vld [vmem:[#allocation1 + $0x36] sm:$0xff]  ;;  %v5577_v56 = vld [vmem:[%s8049_s2 + $0x1e0] sm:$0xff] }
  0x20   :  { %1724 = vmatpush.bf16.msra.mxu3 %v5541_v31  ;;  %v448_v50 = vld [vmem:[#allocation1 + $0x24] sm:$0xff]  ;;  %v6220_v53 = vld [vmem:[#allocation1 + $0x2d] sm:$0xff]  ;;  %v5552_v58 = vld [vmem:[%s8049_s2 + $0x118] sm:$0xff] }
  0x21   :  { %1698 = vmatpush.bf16.msra.mxu1 %v5525_v35  ;;  %1686 = vmatmul.bf16.vlgmr.msra.gmra.mxu0 %v444_v39  ;;  %v43_v52 = vld [vmem:[%s8047_s0 + $0x8] sm:$0xff]  ;;  %v5561_v57 = vld [vmem:[%s8049_s2 + $0x160] sm:$0xff]  ;;  %v5568_v59 = vld [vmem:[%s8049_s2 + $0x198] sm:$0xff] }
  0x22   :  { %1730 = vmatpush.bf16.msrb.mxu0 %v5556_v32  ;;  %1712 = vmatmul.bf16.vlgmr.msra.gmra.mxu2 %v446_v37  ;;  %453 = vst [vmem:[#allocation1] ss:$9 sm:$0xff] %v43_v52  ;;  %v5576_v60 = vld [vmem:[%s8049_s2 + $0x1d8] sm:$0xff]  ;;  %v5551_v62 = vld [vmem:[%s8049_s2 + $0x110] sm:$0xff]  ;;  %v5550_v2 = vld [vmem:[%s8049_s2 + $0x108] sm:$0xff] }
  0x23   :  { %1756 = vmatpush.bf16.msrb.mxu2 %v5572_v33  ;;  %1725 = vmatmul.bf16.vlgmr.msra.gmra.mxu3 %v447_v42  ;;  %v5560_v61 = vld [vmem:[%s8049_s2 + $0x158] sm:$0xff]  ;;  %v5567_v63 = vld [vmem:[%s8049_s2 + $0x190] sm:$0xff]  ;;  %v5566_v3 = vld [vmem:[%s8049_s2 + $0x188] sm:$0xff] }
  0x24   :  { %1769 = vmatpush.bf16.msrb.mxu3 %v5580_v34  ;;  %1699 = vmatmul.bf16.vlgmr.msra.gmra.mxu1 %v445_v44  ;;  %v5575_v0 = vld [vmem:[%s8049_s2 + $0x1d0] sm:$0xff]  ;;  %v5574_v4 = vld [vmem:[%s8049_s2 + $0x1c8] sm:$0xff]  ;;  %v5549_v6 = vld [vmem:[%s8049_s2 + $0x100] sm:$0xff] }
  0x25   :  { %1743 = vmatpush.bf16.msrb.mxu1 %v5564_v36  ;;  %v5559_v1 = vld [vmem:[%s8049_s2 + $0x150] sm:$0xff]  ;;  %v5558_v5 = vld [vmem:[%s8049_s2 + $0x148] sm:$0xff]  ;;  %v5565_v7 = vld [vmem:[%s8049_s2 + $0x180] sm:$0xff] }
  0x26   :  { %1731 = vmatpush.bf16.msrb.mxu0 %v5555_v38  ;;  %v5573_v8 = vld [vmem:[%s8049_s2 + $0x1c0] sm:$0xff]  ;;  %v5588_v9 = vld [vmem:[%s8049_s2 + $0x238] sm:$0xff]  ;;  %v5587_v14 = vld [vmem:[%s8049_s2 + $0x230] sm:$0xff] }
  0x27   :  { %1757 = vmatpush.bf16.msrb.mxu2 %v5571_v40  ;;  %v5604_v10 = vld [vmem:[%s8049_s2 + $0x2b8] sm:$0xff]  ;;  %v5557_v12 = vld [vmem:[%s8049_s2 + $0x140] sm:$0xff]  ;;  %v5603_v15 = vld [vmem:[%s8049_s2 + $0x2b0] sm:$0xff] }
  0x28   :  { %1770 = vmatpush.bf16.msrb.mxu3 %v5579_v41  ;;  %v5612_v11 = vld [vmem:[%s8049_s2 + $0x2f8] sm:$0xff]  ;;  %v5611_v16 = vld [vmem:[%s8049_s2 + $0x2f0] sm:$0xff]  ;;  %v5586_v18 = vld [vmem:[%s8049_s2 + $0x228] sm:$0xff] }
  0x29   :  { %1744 = vmatpush.bf16.msrb.mxu1 %v5563_v43  ;;  %v5596_v13 = vld [vmem:[%s8049_s2 + $0x278] sm:$0xff]  ;;  %v5595_v17 = vld [vmem:[%s8049_s2 + $0x270] sm:$0xff]  ;;  %v5602_v19 = vld [vmem:[%s8049_s2 + $0x2a8] sm:$0xff] }
  0x2a   :  { %1732 = vmatpush.bf16.msrb.mxu0 %v5554_v45  ;;  %v5610_v20 = vld [vmem:[%s8049_s2 + $0x2e8] sm:$0xff]  ;;  %v5585_v22 = vld [vmem:[%s8049_s2 + $0x220] sm:$0xff]  ;;  %v5584_v26 = vld [vmem:[%s8049_s2 + $0x218] sm:$0xff] }
  0x2b   :  { %1758 = vmatpush.bf16.msrb.mxu2 %v5570_v46  ;;  %v5594_v21 = vld [vmem:[%s8049_s2 + $0x268] sm:$0xff]  ;;  %v5601_v23 = vld [vmem:[%s8049_s2 + $0x2a0] sm:$0xff]  ;;  %v5600_v27 = vld [vmem:[%s8049_s2 + $0x298] sm:$0xff] }
  0x2c   :  { %1771 = vmatpush.bf16.msrb.mxu3 %v5578_v47  ;;  %v5609_v24 = vld [vmem:[%s8049_s2 + $0x2e0] sm:$0xff]  ;;  %v5608_v28 = vld [vmem:[%s8049_s2 + $0x2d8] sm:$0xff]  ;;  %v5583_v30 = vld [vmem:[%s8049_s2 + $0x210] sm:$0xff] }
  0x2d   :  { %1745 = vmatpush.bf16.msrb.mxu1 %v5562_v48  ;;  %v5593_v25 = vld [vmem:[%s8049_s2 + $0x260] sm:$0xff]  ;;  %v5592_v29 = vld [vmem:[%s8049_s2 + $0x258] sm:$0xff]  ;;  %v5599_v31 = vld [vmem:[%s8049_s2 + $0x290] sm:$0xff] }
  0x2e   :  { %1733 = vmatpush.bf16.msrb.mxu0 %v5553_v54  ;;  %v5607_v32 = vld [vmem:[%s8049_s2 + $0x2d0] sm:$0xff]  ;;  %v5582_v34 = vld [vmem:[%s8049_s2 + $0x208] sm:$0xff]  ;;  %v5581_v38 = vld [vmem:[%s8049_s2 + $0x200] sm:$0xff] }
  0x2f   :  { %1759 = vmatpush.bf16.msrb.mxu2 %v5569_v55  ;;  %v5591_v33 = vld [vmem:[%s8049_s2 + $0x250] sm:$0xff]  ;;  %v5598_v35 = vld [vmem:[%s8049_s2 + $0x288] sm:$0xff]  ;;  %v5597_v39 = vld [vmem:[%s8049_s2 + $0x280] sm:$0xff] }
  0x30   :  { %1772 = vmatpush.bf16.msrb.mxu3 %v5577_v56  ;;  %v5606_v36 = vld [vmem:[%s8049_s2 + $0x2c8] sm:$0xff]  ;;  %v5605_v40 = vld [vmem:[%s8049_s2 + $0x2c0] sm:$0xff]  ;;  %v5620_v41 = vld [vmem:[%s8049_s2 + $0x338] sm:$0xff] }
  0x31   :  { %1746 = vmatpush.bf16.msrb.mxu1 %v5561_v57  ;;  %v5590_v37 = vld [vmem:[%s8049_s2 + $0x248] sm:$0xff]  ;;  %v5636_v42 = vld [vmem:[%s8049_s2 + $0x3b8] sm:$0xff]  ;;  %v5589_v44 = vld [vmem:[%s8049_s2 + $0x240] sm:$0xff] }
  0x32   :  { %1734 = vmatpush.bf16.msrb.mxu0 %v5552_v58  ;;  %v5644_v43 = vld [vmem:[%s8049_s2 + $0x3f8] sm:$0xff]  ;;  %v454_v45 = vld [vmem:[#allocation1] sm:$0xff]  ;;  %v5619_v48 = vld [vmem:[%s8049_s2 + $0x330] sm:$0xff] }
  0x33   :  { %1760 = vmatpush.bf16.msrb.mxu2 %v5568_v59  ;;  %v5628_v46 = vld [vmem:[%s8049_s2 + $0x378] sm:$0xff]  ;;  %v5643_v52 = vld [vmem:[%s8049_s2 + $0x3f0] sm:$0xff]  ;;  %v5618_v54 = vld [vmem:[%s8049_s2 + $0x328] sm:$0xff] }
  0x34   :  { %1773 = vmatpush.bf16.msrb.mxu3 %v5576_v60  ;;  %v456_v47 = vld [vmem:[#allocation1 + $0x12] sm:$0xff]  ;;  %v5634_v55 = vld [vmem:[%s8049_s2 + $0x3a8] sm:$0xff]  ;;  %v5617_v58 = vld [vmem:[%s8049_s2 + $0x320] sm:$0xff] }
  0x35   :  { %1747 = vmatpush.bf16.msrb.mxu1 %v5560_v61  ;;  %v5642_v56 = vld [vmem:[%s8049_s2 + $0x3e8] sm:$0xff]  ;;  %v5633_v59 = vld [vmem:[%s8049_s2 + $0x3a0] sm:$0xff] }
  0x36   :  { %1735 = vmatpush.bf16.msrb.mxu0 %v5551_v62  ;;  %v5626_v57 = vld [vmem:[%s8049_s2 + $0x368] sm:$0xff]  ;;  %v5641_v60 = vld [vmem:[%s8049_s2 + $0x3e0] sm:$0xff]  ;;  %v5616_v62 = vld [vmem:[%s8049_s2 + $0x318] sm:$0xff] }
  0x37   :  { %1761 = vmatpush.bf16.msrb.mxu2 %v5567_v63  ;;  %v5625_v61 = vld [vmem:[%s8049_s2 + $0x360] sm:$0xff]  ;;  %v5632_v63 = vld [vmem:[%s8049_s2 + $0x398] sm:$0xff] }
  0x38   :  { %1774 = vmatpush.bf16.msrb.mxu3 %v5575_v0  ;;  %v5640_v0 = vld [vmem:[%s8049_s2 + $0x3d8] sm:$0xff] }
  0x39   :  { %1748 = vmatpush.bf16.msrb.mxu1 %v5559_v1  ;;  %v5624_v1 = vld [vmem:[%s8049_s2 + $0x358] sm:$0xff] }
  0x3a   :  { %1736 = vmatpush.bf16.msrb.mxu0 %v5550_v2  ;;  %v5615_v2 = vld [vmem:[%s8049_s2 + $0x310] sm:$0xff] }
  0x3b   :  { %1762 = vmatpush.bf16.msrb.mxu2 %v5566_v3  ;;  %v5631_v3 = vld [vmem:[%s8049_s2 + $0x390] sm:$0xff] }
  0x3c   :  { %1775 = vmatpush.bf16.msrb.mxu3 %v5574_v4  ;;  %v5639_v4 = vld [vmem:[%s8049_s2 + $0x3d0] sm:$0xff] }
  0x3d   :  { %1749 = vmatpush.bf16.msrb.mxu1 %v5558_v5  ;;  %v5623_v5 = vld [vmem:[%s8049_s2 + $0x350] sm:$0xff] }
  0x3e   :  { %1737 = vmatpush.bf16.msrb.mxu0 %v5549_v6  ;;  %v5614_v6 = vld [vmem:[%s8049_s2 + $0x308] sm:$0xff] }
  0x3f   :  { %1763 = vmatpush.bf16.msrb.mxu2 %v5565_v7  ;;  %v5630_v7 = vld [vmem:[%s8049_s2 + $0x388] sm:$0xff] }
  0x40   :  { %1776 = vmatpush.bf16.msrb.mxu3 %v5573_v8  ;;  %v5638_v8 = vld [vmem:[%s8049_s2 + $0x3c8] sm:$0xff] }
  0x41   :  { %1750 = vmatpush.bf16.msrb.mxu1 %v5557_v12  ;;  %1738 = vmatmul.bf16.vlgmr.msrb.gmra.mxu0 %v448_v50  ;;  %v5635_v50 = vld [vmem:[%s8049_s2 + $0x3b0] sm:$0xff]  ;;  %v461_v12 = vld [vmem:[#allocation1 + $0x3f] sm:$0xff] }
  0x42   :  { %1782 = vmatpush.bf16.msra.mxu0 %v5588_v9  ;;  %1764 = vmatmul.bf16.vlgmr.msrb.gmra.mxu2 %v450_v49  ;;  %v457_v49 = vld [vmem:[#allocation1 + $0x1b] sm:$0xff]  ;;  %v458_v9 = vld [vmem:[#allocation1 + $0x24] sm:$0xff] }
  0x43   :  { %1808 = vmatpush.bf16.msra.mxu2 %v5604_v10  ;;  %1777 = vmatmul.bf16.vlgmr.msrb.gmra.mxu3 %v451_v51  ;;  %v455_v51 = vld [vmem:[#allocation1 + $0x9] sm:$0xff]  ;;  %v460_v10 = vld [vmem:[#allocation1 + $0x36] sm:$0xff] }
  0x44   :  { %1821 = vmatpush.bf16.msra.mxu3 %v5612_v11  ;;  %1751 = vmatmul.bf16.vlgmr.msrb.gmra.mxu1 %v6220_v53  ;;  %v5627_v53 = vld [vmem:[%s8049_s2 + $0x370] sm:$0xff] }
  0x45   :  { %1795 = vmatpush.bf16.msra.mxu1 %v5596_v13  ;;  %v459_v11 = vld [vmem:[#allocation1 + $0x2d] sm:$0xff] }
  0x46   :  { %1783 = vmatpush.bf16.msra.mxu0 %v5587_v14  ;;  %v44_v13 = vld [vmem:[%s8047_s0 + $0x10] sm:$0xff]  ;;  %v5622_v14 = vld [vmem:[%s8049_s2 + $0x348] sm:$0xff] }
  0x47   :  { %1809 = vmatpush.bf16.msra.mxu2 %v5603_v15  ;;  %463 = vst [vmem:[#allocation1] ss:$9 sm:$0xff] %v44_v13  ;;  %v5613_v15 = vld [vmem:[%s8049_s2 + $0x300] sm:$0xff] }
  0x48   :  { %1822 = vmatpush.bf16.msra.mxu3 %v5611_v16  ;;  %v5629_v16 = vld [vmem:[%s8049_s2 + $0x380] sm:$0xff] }
  0x49   :  { %1796 = vmatpush.bf16.msra.mxu1 %v5595_v17  ;;  %v5652_v17 = vld [vmem:[%s8049_s2 + $0x438] sm:$0xff] }
  0x4a   :  { %1784 = vmatpush.bf16.msra.mxu0 %v5586_v18  ;;  %v5637_v18 = vld [vmem:[%s8049_s2 + $0x3c0] sm:$0xff] }
  0x4b   :  { %1810 = vmatpush.bf16.msra.mxu2 %v5602_v19  ;;  %v5668_v19 = vld [vmem:[%s8049_s2 + $0x4b8] sm:$0xff] }
  0x4c   :  { %1823 = vmatpush.bf16.msra.mxu3 %v5610_v20  ;;  %v5676_v20 = vld [vmem:[%s8049_s2 + $0x4f8] sm:$0xff] }
  0x4d   :  { %1797 = vmatpush.bf16.msra.mxu1 %v5594_v21  ;;  %v5621_v21 = vld [vmem:[%s8049_s2 + $0x340] sm:$0xff] }
  0x4e   :  { %1785 = vmatpush.bf16.msra.mxu0 %v5585_v22  ;;  %v5660_v22 = vld [vmem:[%s8049_s2 + $0x478] sm:$0xff] }
  0x4f   :  { %1811 = vmatpush.bf16.msra.mxu2 %v5601_v23  ;;  %v5651_v23 = vld [vmem:[%s8049_s2 + $0x430] sm:$0xff] }
  0x50   :  { %1824 = vmatpush.bf16.msra.mxu3 %v5609_v24  ;;  %v5667_v24 = vld [vmem:[%s8049_s2 + $0x4b0] sm:$0xff] }
  0x51   :  { %1798 = vmatpush.bf16.msra.mxu1 %v5593_v25  ;;  %v5675_v25 = vld [vmem:[%s8049_s2 + $0x4f0] sm:$0xff] }
  0x52   :  { %1786 = vmatpush.bf16.msra.mxu0 %v5584_v26  ;;  %v5659_v26 = vld [vmem:[%s8049_s2 + $0x470] sm:$0xff] }
  0x53   :  { %1812 = vmatpush.bf16.msra.mxu2 %v5600_v27  ;;  %v5650_v27 = vld [vmem:[%s8049_s2 + $0x428] sm:$0xff] }
  0x54   :  { %1825 = vmatpush.bf16.msra.mxu3 %v5608_v28  ;;  %v5666_v28 = vld [vmem:[%s8049_s2 + $0x4a8] sm:$0xff] }
  0x55   :  { %1799 = vmatpush.bf16.msra.mxu1 %v5592_v29  ;;  %v5674_v29 = vld [vmem:[%s8049_s2 + $0x4e8] sm:$0xff] }
  0x56   :  { %1787 = vmatpush.bf16.msra.mxu0 %v5583_v30  ;;  %v5658_v30 = vld [vmem:[%s8049_s2 + $0x468] sm:$0xff] }
  0x57   :  { %1813 = vmatpush.bf16.msra.mxu2 %v5599_v31  ;;  %v5649_v31 = vld [vmem:[%s8049_s2 + $0x420] sm:$0xff] }
  0x58   :  { %1826 = vmatpush.bf16.msra.mxu3 %v5607_v32  ;;  %v5665_v32 = vld [vmem:[%s8049_s2 + $0x4a0] sm:$0xff] }
  0x59   :  { %1800 = vmatpush.bf16.msra.mxu1 %v5591_v33  ;;  %v5673_v33 = vld [vmem:[%s8049_s2 + $0x4e0] sm:$0xff] }
  0x5a   :  { %1788 = vmatpush.bf16.msra.mxu0 %v5582_v34  ;;  %v5657_v34 = vld [vmem:[%s8049_s2 + $0x460] sm:$0xff] }
  0x5b   :  { %1814 = vmatpush.bf16.msra.mxu2 %v5598_v35  ;;  %v5648_v35 = vld [vmem:[%s8049_s2 + $0x418] sm:$0xff] }
  0x5c   :  { %1827 = vmatpush.bf16.msra.mxu3 %v5606_v36  ;;  %v5664_v36 = vld [vmem:[%s8049_s2 + $0x498] sm:$0xff] }
  0x5d   :  { %1801 = vmatpush.bf16.msra.mxu1 %v5590_v37  ;;  %v5672_v37 = vld [vmem:[%s8049_s2 + $0x4d8] sm:$0xff] }
  0x5e   :  { %1789 = vmatpush.bf16.msra.mxu0 %v5581_v38  ;;  %v5656_v38 = vld [vmem:[%s8049_s2 + $0x458] sm:$0xff] }
  0x5f   :  { %1815 = vmatpush.bf16.msra.mxu2 %v5597_v39  ;;  %v5647_v39 = vld [vmem:[%s8049_s2 + $0x410] sm:$0xff] }
  0x60   :  { %1828 = vmatpush.bf16.msra.mxu3 %v5605_v40  ;;  %v5663_v40 = vld [vmem:[%s8049_s2 + $0x490] sm:$0xff] }
  0x61   :  { %1802 = vmatpush.bf16.msra.mxu1 %v5589_v44  ;;  %1790 = vmatmul.bf16.vlgmr.msra.gmra.mxu0 %v454_v45  ;;  %v5662_v44 = vld [vmem:[%s8049_s2 + $0x488] sm:$0xff] }
  0x62   :  { %1834 = vmatpush.bf16.msrb.mxu0 %v5620_v41  ;;  %1816 = vmatmul.bf16.vlgmr.msra.gmra.mxu2 %v456_v47  ;;  %v5671_v41 = vld [vmem:[%s8049_s2 + $0x4d0] sm:$0xff]  ;;  %v5670_v45 = vld [vmem:[%s8049_s2 + $0x4c8] sm:$0xff]  ;;  %v5645_v47 = vld [vmem:[%s8049_s2 + $0x400] sm:$0xff] }
  0x63   :  { %1860 = vmatpush.bf16.msrb.mxu2 %v5636_v42  ;;  %1829 = vmatmul.bf16.vlgmr.msra.gmra.mxu3 %v457_v49  ;;  %v5655_v42 = vld [vmem:[%s8049_s2 + $0x450] sm:$0xff]  ;;  %v5669_v49 = vld [vmem:[%s8049_s2 + $0x4c0] sm:$0xff] }
  0x64   :  { %1873 = vmatpush.bf16.msrb.mxu3 %v5644_v43  ;;  %1803 = vmatmul.bf16.vlgmr.msra.gmra.mxu1 %v455_v51  ;;  %v5646_v43 = vld [vmem:[%s8049_s2 + $0x408] sm:$0xff]  ;;  %v5700_v51 = vld [vmem:[%s8049_s2 + $0x5b8] sm:$0xff] }
  0x65   :  { %1847 = vmatpush.bf16.msrb.mxu1 %v5628_v46  ;;  %v5654_v46 = vld [vmem:[%s8049_s2 + $0x448] sm:$0xff] }
  0x66   :  { %1835 = vmatpush.bf16.msrb.mxu0 %v5619_v48  ;;  %v5661_v48 = vld [vmem:[%s8049_s2 + $0x480] sm:$0xff] }
  0x67   :  { %1861 = vmatpush.bf16.msrb.mxu2 %v5635_v50  ;;  %v5684_v50 = vld [vmem:[%s8049_s2 + $0x538] sm:$0xff] }
  0x68   :  { %1874 = vmatpush.bf16.msrb.mxu3 %v5643_v52  ;;  %v5708_v52 = vld [vmem:[%s8049_s2 + $0x5f8] sm:$0xff] }
  0x69   :  { %1848 = vmatpush.bf16.msrb.mxu1 %v5627_v53  ;;  %v5653_v53 = vld [vmem:[%s8049_s2 + $0x440] sm:$0xff] }
  0x6a   :  { %1836 = vmatpush.bf16.msrb.mxu0 %v5618_v54  ;;  %v464_v54 = vld [vmem:[#allocation1] sm:$0xff] }
  0x6b   :  { %1862 = vmatpush.bf16.msrb.mxu2 %v5634_v55  ;;  %v466_v55 = vld [vmem:[#allocation1 + $0x12] sm:$0xff] }
  0x6c   :  { %1875 = vmatpush.bf16.msrb.mxu3 %v5642_v56  ;;  %v5692_v56 = vld [vmem:[%s8049_s2 + $0x578] sm:$0xff] }
  0x6d   :  { %1849 = vmatpush.bf16.msrb.mxu1 %v5626_v57  ;;  %v467_v57 = vld [vmem:[#allocation1 + $0x1b] sm:$0xff] }
  0x6e   :  { %1837 = vmatpush.bf16.msrb.mxu0 %v5617_v58  ;;  %v5683_v58 = vld [vmem:[%s8049_s2 + $0x530] sm:$0xff] }
  0x6f   :  { %1863 = vmatpush.bf16.msrb.mxu2 %v5633_v59  ;;  %v465_v59 = vld [vmem:[#allocation1 + $0x9] sm:$0xff] }
  0x70   :  { %1876 = vmatpush.bf16.msrb.mxu3 %v5641_v60  ;;  %v5699_v60 = vld [vmem:[%s8049_s2 + $0x5b0] sm:$0xff] }
  0x71   :  { %1850 = vmatpush.bf16.msrb.mxu1 %v5625_v61  ;;  %v5707_v61 = vld [vmem:[%s8049_s2 + $0x5f0] sm:$0xff] }
  0x72   :  { %1838 = vmatpush.bf16.msrb.mxu0 %v5616_v62  ;;  %v5691_v62 = vld [vmem:[%s8049_s2 + $0x570] sm:$0xff] }
  0x73   :  { %1864 = vmatpush.bf16.msrb.mxu2 %v5632_v63  ;;  %v5682_v63 = vld [vmem:[%s8049_s2 + $0x528] sm:$0xff] }
  0x74   :  { %1877 = vmatpush.bf16.msrb.mxu3 %v5640_v0  ;;  %v5698_v0 = vld [vmem:[%s8049_s2 + $0x5a8] sm:$0xff] }
  0x75   :  { %1851 = vmatpush.bf16.msrb.mxu1 %v5624_v1  ;;  %v5706_v1 = vld [vmem:[%s8049_s2 + $0x5e8] sm:$0xff] }
  0x76   :  { %1839 = vmatpush.bf16.msrb.mxu0 %v5615_v2  ;;  %v5690_v2 = vld [vmem:[%s8049_s2 + $0x568] sm:$0xff] }
  0x77   :  { %1865 = vmatpush.bf16.msrb.mxu2 %v5631_v3  ;;  %v5926_v3 = vld [vmem:[%s8050_s3] ss:$0 sm:$0xff]  ;;  %s3875_s3 = sshll.u32 %s8060_s13, 4  ;;  %s3876_s3 = int_to_ptr.hbm [resolvable:$true] %s3875_s3 }
  0x78   :  { %1878 = vmatpush.bf16.msrb.mxu3 %v5639_v4  ;;  %v6613_v4 = vld [vmem:[#allocation1 + $0x24] sm:$0xff] }
  0x79   :  { %1852 = vmatpush.bf16.msrb.mxu1 %v5623_v5  ;;  %v6615_v5 = vld [vmem:[#allocation1 + $0x36] sm:$0xff] }
  0x7a   :  { %1840 = vmatpush.bf16.msrb.mxu0 %v5614_v6  ;;  %v6617_v6 = vld [vmem:[#allocation1 + $0x3f] sm:$0xff] }
  0x7b   :  { %1866 = vmatpush.bf16.msrb.mxu2 %v5630_v7  ;;  %v6619_v7 = vld [vmem:[#allocation1 + $0x2d] sm:$0xff] }
  0x7c   :  { %1879 = vmatpush.bf16.msrb.mxu3 %v5638_v8  ;;  %v45_v8 = vld [vmem:[%s8047_s0 + $0x18] sm:$0x1] }
  0x7d   :  { %1853 = vmatpush.bf16.msrb.mxu1 %v5622_v14  ;;  %473 = vst [vmem:[#allocation1] ss:$9 sm:$0xff] %v45_v8  ;;  %v5689_v14 = vld [vmem:[%s8049_s2 + $0x560] sm:$0xff] }
  0x7e   :  { %1841 = vmatpush.bf16.msrb.mxu0 %v5613_v15  ;;  %v5680_v15 = vld [vmem:[%s8049_s2 + $0x518] sm:$0xff] }
  0x7f   :  { %1867 = vmatpush.bf16.msrb.mxu2 %v5629_v16 }
  0x80   :  { %1880 = vmatpush.bf16.msrb.mxu3 %v5637_v18  ;;  %v5704_v18 = vld [vmem:[%s8049_s2 + $0x5d8] sm:$0xff] }
  0x81   :  { %1854 = vmatpush.bf16.msrb.mxu1 %v5621_v21  ;;  %1842 = vmatmul.bf16.vlgmr.msrb.gmra.mxu0 %v458_v9  ;;  %v5681_v9 = vld [vmem:[%s8049_s2 + $0x520] sm:$0xff]  ;;  %v5688_v21 = vld [vmem:[%s8049_s2 + $0x558] sm:$0xff] }
  0x82   :  { %1886 = vmatpush.bf16.msra.mxu0 %v5652_v17  ;;  %1868 = vmatmul.bf16.vlgmr.msrb.gmra.mxu2 %v460_v10  ;;  %v5697_v10 = vld [vmem:[%s8049_s2 + $0x5a0] sm:$0xff]  ;;  %v5696_v17 = vld [vmem:[%s8049_s2 + $0x598] sm:$0xff] }
  0x83   :  { %1912 = vmatpush.bf16.msra.mxu2 %v5668_v19  ;;  %1881 = vmatmul.bf16.vlgmr.msrb.gmra.mxu3 %v461_v12 }
  0x84   :  { %1925 = vmatpush.bf16.msra.mxu3 %v5676_v20  ;;  %1855 = vmatmul.bf16.vlgmr.msrb.gmra.mxu1 %v459_v11  ;;  %v5705_v11 = vld [vmem:[%s8049_s2 + $0x5e0] sm:$0xff] }
  0x85   :  { %1899 = vmatpush.bf16.msra.mxu1 %v5660_v22 }
  0x86   :  { %1887 = vmatpush.bf16.msra.mxu0 %v5651_v23  ;;  %v5679_v23 = vld [vmem:[%s8049_s2 + $0x510] sm:$0xff] }
  0x87   :  { %1913 = vmatpush.bf16.msra.mxu2 %v5667_v24 }
  0x88   :  { %1926 = vmatpush.bf16.msra.mxu3 %v5675_v25  ;;  %v5695_v25 = vld [vmem:[%s8049_s2 + $0x590] sm:$0xff] }
  0x89   :  { %1900 = vmatpush.bf16.msra.mxu1 %v5659_v26  ;;  %v5703_v26 = vld [vmem:[%s8049_s2 + $0x5d0] sm:$0xff] }
  0x8a   :  { %1888 = vmatpush.bf16.msra.mxu0 %v5650_v27 }
  0x8b   :  { %1914 = vmatpush.bf16.msra.mxu2 %v5666_v28 }
  0x8c   :  { %1927 = vmatpush.bf16.msra.mxu3 %v5674_v29  ;;  %v5687_v29 = vld [vmem:[%s8049_s2 + $0x550] sm:$0xff] }
  0x8d   :  { %1901 = vmatpush.bf16.msra.mxu1 %v5658_v30  ;;  %v5678_v30 = vld [vmem:[%s8049_s2 + $0x508] sm:$0xff] }
  0x8e   :  { %1889 = vmatpush.bf16.msra.mxu0 %v5649_v31 }
  0x8f   :  { %1915 = vmatpush.bf16.msra.mxu2 %v5665_v32  ;;  %v5694_v32 = vld [vmem:[%s8049_s2 + $0x588] sm:$0xff] }
  0x90   :  { %1928 = vmatpush.bf16.msra.mxu3 %v5673_v33  ;;  %v5702_v33 = vld [vmem:[%s8049_s2 + $0x5c8] sm:$0xff] }
  0x91   :  { %1902 = vmatpush.bf16.msra.mxu1 %v5657_v34 }
  0x92   :  { %1890 = vmatpush.bf16.msra.mxu0 %v5648_v35  ;;  %v5686_v35 = vld [vmem:[%s8049_s2 + $0x548] sm:$0xff] }
  0x93   :  { %1916 = vmatpush.bf16.msra.mxu2 %v5664_v36  ;;  %v5677_v36 = vld [vmem:[%s8049_s2 + $0x500] sm:$0xff] }
  0x94   :  { %1929 = vmatpush.bf16.msra.mxu3 %v5672_v37 }
  0x95   :  { %1903 = vmatpush.bf16.msra.mxu1 %v5656_v38  ;;  %v5693_v38 = vld [vmem:[%s8049_s2 + $0x580] sm:$0xff] }
  0x96   :  { %1891 = vmatpush.bf16.msra.mxu0 %v5647_v39  ;;  %v5701_v39 = vld [vmem:[%s8049_s2 + $0x5c0] sm:$0xff] }
  0x97   :  { %1917 = vmatpush.bf16.msra.mxu2 %v5663_v40  ;;  %v5712_v40 = vld [vmem:[%s8049_s2 + $0x618] sm:$0xff] }
  0x98   :  { %1930 = vmatpush.bf16.msra.mxu3 %v5671_v41  ;;  %v5685_v41 = vld [vmem:[%s8049_s2 + $0x540] sm:$0xff] }
  0x99   :  { %1904 = vmatpush.bf16.msra.mxu1 %v5655_v42  ;;  %v5711_v42 = vld [vmem:[%s8049_s2 + $0x610] sm:$0xff] }
  0x9a   :  { %1892 = vmatpush.bf16.msra.mxu0 %v5646_v43  ;;  %v5710_v43 = vld [vmem:[%s8049_s2 + $0x608] sm:$0xff] }
  0x9b   :  { %1918 = vmatpush.bf16.msra.mxu2 %v5662_v44  ;;  %v5709_v44 = vld [vmem:[%s8049_s2 + $0x600] sm:$0xff] }
  0x9c   :  { %1931 = vmatpush.bf16.msra.mxu3 %v5670_v45 }
  0x9d   :  { %1905 = vmatpush.bf16.msra.mxu1 %v5654_v46 }
  0x9e   :  { %1893 = vmatpush.bf16.msra.mxu0 %v5645_v47  ;;  %v1687_v12 = vpop.f32.mrf.mxu0 }
  0x9f   :  { %1919 = vmatpush.bf16.msra.mxu2 %v5661_v48  ;;  %v1688_v13 = vadd.f32 %v5926_v3, %v1687_v12 }
  0xa0   :  { %1932 = vmatpush.bf16.msra.mxu3 %v5669_v49  ;;  %v474_v49 = vld [vmem:[#allocation1] sm:$0xff] }
  0xa1   :  { %1906 = vmatpush.bf16.msra.mxu1 %v5653_v53  ;;  %1894 = vmatmul.bf16.vlgmr.msra.gmra.mxu0 %v464_v54  ;;  %v1700_v16 = vpop.f32.mrf.mxu1 }
  0xa2   :  { %1938 = vmatpush.bf16.msrb.mxu0 %v5684_v50  ;;  %1920 = vmatmul.bf16.vlgmr.msra.gmra.mxu2 %v466_v55  ;;  %v1701_v19 = vadd.f32 %v1700_v16, %v1688_v13  ;;  %v5719_v13 = vld [vmem:[%s8051_s4 + $0x30] sm:$0xff]  ;;  %v5718_v16 = vld [vmem:[%s8051_s4 + $0x28] sm:$0xff] }
  0xa3   :  { %1964 = vmatpush.bf16.msrb.mxu2 %v5700_v51  ;;  %1933 = vmatmul.bf16.vlgmr.msra.gmra.mxu3 %v467_v57 }
  0xa4   :  { %1977 = vmatpush.bf16.msrb.mxu3 %v5708_v52  ;;  %1907 = vmatmul.bf16.vlgmr.msra.gmra.mxu1 %v465_v59 }
  0xa5   :  { %1951 = vmatpush.bf16.msrb.mxu1 %v5692_v56  ;;  %v1713_v20 = vpop.f32.mrf.mxu2 }
  0xa6   :  { %1939 = vmatpush.bf16.msrb.mxu0 %v5683_v58  ;;  %v1714_v22 = vadd.f32 %v1713_v20, %v1701_v19  ;;  %v1726_v24 = vpop.f32.mrf.mxu3  ;;  %v1689_v28 = vpop.f32.mrf.mxu0  ;;  %v5716_v20 = vld [vmem:[%s8051_s4 + $0x18] sm:$0xff] }
  0xa7   :  { %1965 = vmatpush.bf16.msrb.mxu2 %v5699_v60 }
  0xa8   :  { %1978 = vmatpush.bf16.msrb.mxu3 %v5707_v61  ;;  %v1727_v27 = vadd.f32 %v1726_v24, %v1714_v22  ;;  %v5715_v24 = vld [vmem:[%s8051_s4 + $0x10] sm:$0xff] }
  0xa9   :  { %1952 = vmatpush.bf16.msrb.mxu1 %v5691_v62  ;;  %v1702_v31 = vpop.f32.mrf.mxu1 }
  0xaa   :  { %1940 = vmatpush.bf16.msrb.mxu0 %v5682_v63 }
  0xab   :  { %1966 = vmatpush.bf16.msrb.mxu2 %v5698_v0 }
  0xac   :  { %1979 = vmatpush.bf16.msrb.mxu3 %v5706_v1 }
  0xad   :  { %1953 = vmatpush.bf16.msrb.mxu1 %v5690_v2  ;;  %v1715_v34 = vpop.f32.mrf.mxu2 }
  0xae   :  { %1941 = vmatpush.bf16.msrb.mxu0 %v5681_v9  ;;  %v1728_v37 = vpop.f32.mrf.mxu3 }
  0xaf   :  { %1967 = vmatpush.bf16.msrb.mxu2 %v5697_v10  ;;  %v5720_v10 = vld [vmem:[%s8051_s4 + $0x38] sm:$0xff] }
  0xb0   :  { %1980 = vmatpush.bf16.msrb.mxu3 %v5705_v11 }
  0xb1   :  { %1954 = vmatpush.bf16.msrb.mxu1 %v5689_v14 }
  0xb2   :  { %1942 = vmatpush.bf16.msrb.mxu0 %v5680_v15 }
  0xb3   :  { %1968 = vmatpush.bf16.msrb.mxu2 %v5696_v17 }
  0xb4   :  { %1981 = vmatpush.bf16.msrb.mxu3 %v5704_v18  ;;  %v5717_v18 = vld [vmem:[%s8051_s4 + $0x20] sm:$0xff] }
  0xb5   :  { %1955 = vmatpush.bf16.msrb.mxu1 %v5688_v21 }
  0xb6   :  { %1943 = vmatpush.bf16.msrb.mxu0 %v5679_v23 }
  0xb7   :  { %1969 = vmatpush.bf16.msrb.mxu2 %v5695_v25 }
  0xb8   :  { %1982 = vmatpush.bf16.msrb.mxu3 %v5703_v26 }
  0xb9   :  { %1956 = vmatpush.bf16.msrb.mxu1 %v5687_v29 }
  0xba   :  { %1944 = vmatpush.bf16.msrb.mxu0 %v5678_v30 }
  0xbb   :  { %1970 = vmatpush.bf16.msrb.mxu2 %v5694_v32  ;;  %v5713_v32 = vld [vmem:[%s8051_s4] sm:$0xff] }
  0xbc   :  { %1983 = vmatpush.bf16.msrb.mxu3 %v5702_v33 }
  0xbd   :  { %1957 = vmatpush.bf16.msrb.mxu1 %v5686_v35 }
  0xbe   :  { %1945 = vmatpush.bf16.msrb.mxu0 %v5677_v36  ;;  %v1739_v45 = vpop.f32.mrf.mxu0 }
  0xbf   :  { %1971 = vmatpush.bf16.msrb.mxu2 %v5693_v38  ;;  %v1740_v46 = vadd.f32 %v1739_v45, %v1727_v27  ;;  %v5714_v27 = vld [vmem:[%s8051_s4 + $0x8] sm:$0xff] }
  0xc0   :  { %1984 = vmatpush.bf16.msrb.mxu3 %v5701_v39 }
  0xc1   :  { %1958 = vmatpush.bf16.msrb.mxu1 %v5685_v41  ;;  %1946 = vmatmul.bf16.vlgmr.msrb.gmra.mxu0 %v6613_v4  ;;  %v1752_v47 = vpop.f32.mrf.mxu1 }
  0xc2   :  { %1994 = vmatpush.bf16.msra.mxu0 %v5712_v40  ;;  %1972 = vmatmul.bf16.vlgmr.msrb.gmra.mxu2 %v6615_v5  ;;  %v1753_v48 = vadd.f32 %v1752_v47, %v1740_v46 }
  0xc3   :  { %1985 = vmatmul.bf16.vlgmr.msrb.gmra.mxu3 %v6617_v6 }
  0xc4   :  { %1959 = vmatmul.bf16.vlgmr.msrb.gmra.mxu1 %v6619_v7 }
  0xc5   :  { %v1765_v50 = vpop.f32.mrf.mxu2  ;;  %2073 = vmatpush.bf16.msra.mxu1 %v5720_v10 }
  0xc6   :  { %1995 = vmatpush.bf16.msra.mxu0 %v5711_v42  ;;  %v1766_v51 = vadd.f32 %v1765_v50, %v1753_v48  ;;  %v1778_v52 = vpop.f32.mrf.mxu3  ;;  %v1741_v54 = vpop.f32.mrf.mxu0 }
  0xc8   :  { %v1779_v53 = vadd.f32 %v1778_v52, %v1766_v51 }
  0xc9   :  { %v1754_v55 = vpop.f32.mrf.mxu1  ;;  %2074 = vmatpush.bf16.msra.mxu1 %v5719_v13  ;;  %v5429_v13 = vld [vmem:[%s8055_s8 + $0x5e4] sm:$0xf0] }
  0xca   :  { %1996 = vmatpush.bf16.msra.mxu0 %v5710_v43  ;;  %v2099_v55 = vld [vmem:[%s8053_s6 + $0x8] sm:$0x3] }
  0xcd   :  { %v1767_v56 = vpop.f32.mrf.mxu2  ;;  %2075 = vmatpush.bf16.msra.mxu1 %v5718_v16  ;;  %v5884_v16 = vld [vmem:[%s8055_s8 + $0x510] sm:$0xf0] }
  0xce   :  { %1997 = vmatpush.bf16.msra.mxu0 %v5709_v44  ;;  %v1780_v57 = vpop.f32.mrf.mxu3  ;;  %v2109_v56 = vunpack.c.l.b16 %v2099_v55  ;;  %v5027_v55 = vld [vmem:[%s8055_s8 + $0x260] sm:$0xf] }
  0xd0   :  { %v2111_v57 = vpack.c.b16 %v2109_v56, %v2109_v56  ;;  %v5810_v56 = vld [vmem:[%s8055_s8 + $0x2c0] sm:$0xf0] }
  0xd1   :  { %4679 = vmatmul.msk.bf16.vlgmr.msra.gmra.mxu0 %vm1675_vm0, %v474_v49  ;;  %2076 = vmatpush.bf16.msra.mxu1 %v5717_v18  ;;  %v5321_v18 = vld [vmem:[%s8055_s8 + $0x514] sm:$0xf0] }
  0xd5   :  { %2077 = vmatpush.bf16.msra.mxu1 %v5716_v20 }
  0xd9   :  { %2078 = vmatpush.bf16.msra.mxu1 %v5715_v24 }
  0xdd   :  { %2079 = vmatpush.bf16.msra.mxu1 %v5714_v27  ;;  %v5859_v27 = vld [vmem:[%s8055_s8 + $0x448] sm:$0xf0] }
  0xde   :  { %v1791_v58 = vpop.f32.mrf.mxu0 }
  0xdf   :  { %v1792_v59 = vadd.f32 %v1791_v58, %v1779_v53  ;;  %v2119_v58 = vsel %vm2117_vm1, %v2111_v57, 0  ;;  %v5798_v57 = vld [vmem:[%s8055_s8 + $0x264] sm:$0xf] }
  0xe0   :  { %2127 = vmatpush.bf16.msra.mxu2 %v2119_v58  ;;  %v5029_v58 = vld [vmem:[%s8055_s8 + $0x2c4] sm:$0xf0] }
  0xe1   :  { %v1804_v60 = vpop.f32.mrf.mxu1  ;;  %2080 = vmatpush.bf16.msra.mxu1 %v5713_v32 }
  0xe2   :  { %v1805_v61 = vadd.f32 %v1804_v60, %v1792_v59  ;;  %v5927_v59 = vld [vmem:[%s8052_s5] ss:$0 sm:$0xff] }
  0xe5   :  { %v1817_v62 = vpop.f32.mrf.mxu2 }
  0xe6   :  { %v1818_v63 = vadd.f32 %v1817_v62, %v1805_v61  ;;  %v1830_v0 = vpop.f32.mrf.mxu3  ;;  %v1793_v1 = vpop.f32.mrf.mxu0 }
  0xe8   :  { %v1831_v2 = vadd.f32 %v1830_v0, %v1818_v63 }
  0xe9   :  { %v1806_v3 = vpop.f32.mrf.mxu1 }
  0xea   :  { %v5419_v3 = vld [vmem:[%s8055_s8 + $0x578] sm:$0xf] }
  0xed   :  { %v1819_v4 = vpop.f32.mrf.mxu2 }
  0xee   :  { %v1832_v5 = vpop.f32.mrf.mxu3  ;;  %v5909_v4 = vld [vmem:[%s8055_s8 + $0x5d8] sm:$0xf0] }
  0xef   :  { %v5897_v5 = vld [vmem:[%s8055_s8 + $0x57c] sm:$0xf] }
  0xfe   :  { %v1843_v6 = vpop.f32.mrf.mxu0 }
  0xff   :  { %v1844_v25 = vadd.f32 %v1843_v6, %v1831_v2  ;;  %v5721_v2 = vld [vmem:[%s8053_s6] sm:$0xff]  ;;  %v5420_v6 = vor.u32 %v5909_v4, %v5419_v3  ;;  %v4921_v3 = vld [vmem:[%s8055_s8 + $0x1f4] sm:$0xf0] }
 0x100   :  { %2128 = vmatpush.bf16.msra.mxu2 %v5721_v2  ;;  %v5032_v2 = vor.u32 %v5798_v57, %v5029_v58  ;;  %v4927_v4 = vld [vmem:[%s8055_s8 + $0x198] sm:$0xf]  ;;  %v5343_v57 = vld [vmem:[%s8055_s8 + $0x4c8] sm:$0xf]  ;;  %v5887_v58 = vld [vmem:[%s8055_s8 + $0x528] sm:$0xf0] }
 0x101   :  { %v1856_v7 = vpop.f32.mrf.mxu1  ;;  %3410 = vmatpush.bf16.msra.mxu3 %v5420_v6  ;;  %v5773_v6 = vld [vmem:[%s8055_s8 + $0x19c] sm:$0xf] }
 0x102   :  { %v1857_v28 = vadd.f32 %v1856_v7, %v1844_v25  ;;  %v5421_v7 = vld [vmem:[%s8055_s8 + $0x5dc] sm:$0xf0] }
 0x103   :  { %v5424_v10 = vor.u32 %v5897_v5, %v5421_v7  ;;  %v5329_v25 = vld [vmem:[%s8055_s8 + $0x51c] sm:$0xf0]  ;;  %v5785_v5 = vld [vmem:[%s8055_s8 + $0x1f8] sm:$0xf0] }
 0x104   :  { %v4929_v7 = vld [vmem:[%s8055_s8 + $0x1fc] sm:$0xf0] }
 0x105   :  { %v1869_v8 = vpop.f32.mrf.mxu2  ;;  %3423 = vmatpush.bf16.msrb.mxu0 %v5424_v10 }
 0x106   :  { %v1882_v9 = vpop.f32.mrf.mxu3  ;;  %v1845_v11 = vpop.f32.mrf.mxu0  ;;  %v1870_v31 = vadd.f32 %v1869_v8, %v1857_v28  ;;  %v5427_v8 = vld [vmem:[%s8055_s8 + $0x580] sm:$0xf] }
 0x108   :  { %v1883_v33 = vadd.f32 %v1882_v9, %v1870_v31  ;;  %v5910_v9 = vld [vmem:[%s8055_s8 + $0x5e0] sm:$0xf0]  ;;  %v5227_v31 = vld [vmem:[%s8055_s8 + $0x3f0] sm:$0xf] }
 0x109   :  { %v1858_v12 = vpop.f32.mrf.mxu1  ;;  %v5428_v11 = vor.u32 %v5910_v9, %v5427_v8  ;;  %v2089_v8 = vld [vmem:[%s8048_s1] sm:$0x3] }
 0x10a   :  { %v5898_v12 = vld [vmem:[%s8055_s8 + $0x584] sm:$0xf] }
 0x10b   :  { %3436 = vmatpush.bf16.msrb.mxu2 %v5428_v11  ;;  %v4928_v11 = vor.u32 %v5785_v5, %v4927_v4  ;;  %v5237_v5 = vld [vmem:[%s8055_s8 + $0x45c] sm:$0xf0] }
 0x10d   :  { %v1871_v14 = vpop.f32.mrf.mxu2 }
 0x10e   :  { %v1884_v15 = vpop.f32.mrf.mxu3  ;;  %v5319_v14 = vld [vmem:[%s8055_s8 + $0x4b0] sm:$0xf] }
 0x10f   :  { %v5432_v15 = vor.u32 %v5898_v12, %v5429_v13  ;;  %v4819_v12 = vld [vmem:[%s8055_s8 + $0xc8] sm:$0xf]  ;;  %v5759_v13 = vld [vmem:[%s8055_s8 + $0x128] sm:$0xf0] }
 0x111   :  { %3449 = vmatpush.bf16.msrb.mxu1 %v5432_v15  ;;  %v4932_v15 = vor.u32 %v5773_v6, %v4929_v7  ;;  %v5243_v6 = vld [vmem:[%s8055_s8 + $0x400] sm:$0xf]  ;;  %v5862_v7 = vld [vmem:[%s8055_s8 + $0x460] sm:$0xf0] }
 0x11e   :  { %v1895_v17 = vpop.f32.mrf.mxu0 }
 0x11f   :  { %v1896_v34 = vadd.f32 %v1895_v17, %v1883_v33  ;;  %v5872_v17 = vld [vmem:[%s8055_s8 + $0x4b4] sm:$0xf] }
 0x120   :  { %v5324_v20 = vor.u32 %v5872_v17, %v5321_v18  ;;  %v5860_v33 = vld [vmem:[%s8055_s8 + $0x450] sm:$0xf0]  ;;  %v4827_v17 = vld [vmem:[%s8055_s8 + $0xd0] sm:$0xf] }
 0x121   :  { %v1908_v19 = vpop.f32.mrf.mxu1  ;;  %v5760_v18 = vld [vmem:[%s8055_s8 + $0x130] sm:$0xf0] }
 0x122   :  { %v1909_v35 = vadd.f32 %v1908_v19, %v1896_v34  ;;  %v5320_v19 = vor.u32 %v5884_v16, %v5319_v14  ;;  %v5848_v34 = vld [vmem:[%s8055_s8 + $0x3f4] sm:$0xf]  ;;  %3424 = vmatpush.bf16.msrb.mxu0 %v5324_v20  ;;  %v5747_v14 = vld [vmem:[%s8055_s8 + $0xcc] sm:$0xf]  ;;  %v4821_v16 = vld [vmem:[%s8055_s8 + $0x12c] sm:$0xf0] }
 0x123   :  { %v4829_v20 = vld [vmem:[%s8055_s8 + $0x134] sm:$0xf0] }
 0x124   :  { %3411 = vmatpush.bf16.msra.mxu3 %v5320_v19  ;;  %v5748_v19 = vld [vmem:[%s8055_s8 + $0xd4] sm:$0xf] }
 0x125   :  { %v1921_v21 = vpop.f32.mrf.mxu2 }
 0x126   :  { %v1934_v22 = vpop.f32.mrf.mxu3  ;;  %v1897_v23 = vpop.f32.mrf.mxu0  ;;  %v1922_v36 = vadd.f32 %v1921_v21, %v1909_v35  ;;  %v5327_v21 = vld [vmem:[%s8055_s8 + $0x4b8] sm:$0xf] }
 0x127   :  { %v5873_v23 = vld [vmem:[%s8055_s8 + $0x4bc] sm:$0xf]  ;;  %v5229_v35 = vld [vmem:[%s8055_s8 + $0x454] sm:$0xf0] }
 0x128   :  { %v1935_v38 = vadd.f32 %v1934_v22, %v1922_v36  ;;  %v5885_v22 = vld [vmem:[%s8055_s8 + $0x518] sm:$0xf0]  ;;  %v5332_v28 = vor.u32 %v5873_v23, %v5329_v25  ;;  %v4719_v23 = vld [vmem:[%s8055_s8] sm:$0xf] }
 0x129   :  { %v1910_v26 = vpop.f32.mrf.mxu1  ;;  %v5328_v24 = vor.u32 %v5885_v22, %v5327_v21  ;;  %v4820_v22 = vor.u32 %v5759_v13, %v4819_v12  ;;  %v5244_v12 = vor.u32 %v5862_v7, %v5243_v6  ;;  %v5135_v13 = vld [vmem:[%s8055_s8 + $0x330] sm:$0xf]  ;;  %v5725_v7 = vld [vmem:[%s8055_s8 + $0x1c] sm:$0xf] }
 0x12a   :  { %v5219_v26 = vld [vmem:[%s8055_s8 + $0x3e8] sm:$0xf]  ;;  %3450 = vmatpush.bf16.msrb.mxu1 %v5332_v28  ;;  %v5722_v28 = vld [vmem:[%s8055_s8 + $0x4] sm:$0xf] }
 0x12b   :  { %v5220_v32 = vor.u32 %v5859_v27, %v5219_v26  ;;  %3437 = vmatpush.bf16.msrb.mxu2 %v5328_v24  ;;  %v5734_v24 = vld [vmem:[%s8055_s8 + $0x60] sm:$0xf0]  ;;  %v4824_v26 = vor.u32 %v5747_v14, %v4821_v16  ;;  %v4828_v27 = vor.u32 %v5760_v18, %v4827_v17  ;;  %v5836_v14 = vld [vmem:[%s8055_s8 + $0x390] sm:$0xf0]  ;;  %v5137_v17 = vld [vmem:[%s8055_s8 + $0x394] sm:$0xf0] }
 0x12c   :  { %v5143_v18 = vld [vmem:[%s8055_s8 + $0x338] sm:$0xf] }
 0x12d   :  { %v1923_v29 = vpop.f32.mrf.mxu2  ;;  %3412 = vmatpush.bf16.msra.mxu3 %v5220_v32  ;;  %v5735_v32 = vld [vmem:[%s8055_s8 + $0x68] sm:$0xf0] }
 0x12e   :  { %v1936_v30 = vpop.f32.mrf.mxu3  ;;  %v5847_v29 = vld [vmem:[%s8055_s8 + $0x3ec] sm:$0xf] }
 0x12f   :  { %v5221_v30 = vld [vmem:[%s8055_s8 + $0x44c] sm:$0xf0] }
 0x130   :  { %v5224_v36 = vor.u32 %v5847_v29, %v5221_v30  ;;  %v4721_v29 = vld [vmem:[%s8055_s8 + $0x64] sm:$0xf0] }
 0x131   :  { %v4727_v30 = vld [vmem:[%s8055_s8 + $0x8] sm:$0xf] }
 0x132   :  { %3425 = vmatpush.bf16.msrb.mxu0 %v5224_v36  ;;  %v5435_v36 = vld [vmem:[%s8055_s8 + $0x588] sm:$0xf] }
 0x13e   :  { %v1947_v37 = vpop.f32.mrf.mxu0 }
 0x13f   :  { %v1948_v40 = vadd.f32 %v1947_v37, %v1935_v38  ;;  %v5228_v37 = vor.u32 %v5860_v33, %v5227_v31  ;;  %v5119_v38 = vld [vmem:[%s8055_s8 + $0x320] sm:$0xf]  ;;  %v4832_v31 = vor.u32 %v5748_v19, %v4829_v20  ;;  %v5723_v33 = vld [vmem:[%s8055_s8 + $0xc] sm:$0xf]  ;;  %v5837_v19 = vld [vmem:[%s8055_s8 + $0x398] sm:$0xf0] }
 0x140   :  { %v5825_v20 = vld [vmem:[%s8055_s8 + $0x33c] sm:$0xf] }
 0x141   :  { %v1960_v39 = vpop.f32.mrf.mxu1  ;;  %3438 = vmatpush.bf16.msrb.mxu2 %v5228_v37  ;;  %v5911_v37 = vld [vmem:[%s8055_s8 + $0x5e8] sm:$0xf0] }
 0x142   :  { %v1961_v44 = vadd.f32 %v1960_v39, %v1948_v40  ;;  %v5834_v39 = vld [vmem:[%s8055_s8 + $0x380] sm:$0xf0] }
 0x143   :  { %v5822_v40 = vld [vmem:[%s8055_s8 + $0x324] sm:$0xf] }
 0x145   :  { %v1973_v41 = vpop.f32.mrf.mxu2 }
 0x146   :  { %v1986_v42 = vpop.f32.mrf.mxu3  ;;  %v1949_v43 = vpop.f32.mrf.mxu0  ;;  %v1974_v45 = vadd.f32 %v1973_v41, %v1961_v44  ;;  %v5232_v41 = vor.u32 %v5848_v34, %v5229_v35  ;;  %v5835_v44 = vld [vmem:[%s8055_s8 + $0x388] sm:$0xf0]  ;;  %v4729_v34 = vld [vmem:[%s8055_s8 + $0x6c] sm:$0xf0] }
 0x147   :  { %v5127_v43 = vld [vmem:[%s8055_s8 + $0x328] sm:$0xf] }
 0x148   :  { %v1987_v47 = vadd.f32 %v1986_v42, %v1974_v45  ;;  %v5121_v42 = vld [vmem:[%s8055_s8 + $0x384] sm:$0xf0]  ;;  %v5823_v45 = vld [vmem:[%s8055_s8 + $0x32c] sm:$0xf]  ;;  %3451 = vmatpush.bf16.msrb.mxu1 %v5232_v41  ;;  %v5912_v41 = vld [vmem:[%s8055_s8 + $0x5f0] sm:$0xf0] }
 0x149   :  { %v1962_v46 = vpop.f32.mrf.mxu1 }
 0x14a   :  { %v5129_v46 = vld [vmem:[%s8055_s8 + $0x38c] sm:$0xf0] }
 0x14d   :  { %v1975_v48 = vpop.f32.mrf.mxu2 }
 0x14e   :  { %v1988_v49 = vpop.f32.mrf.mxu3  ;;  %v1999_v50 = vpop.f32.mrf.mxu0  ;;  %v5124_v48 = vor.u32 %v5822_v40, %v5121_v42  ;;  %v5437_v40 = vld [vmem:[%s8055_s8 + $0x5ec] sm:$0xf0] }
 0x14f   :  { %v2000_v51 = vadd.f32 %v1999_v50, %v1987_v47  ;;  %v5120_v47 = vor.u32 %v5834_v39, %v5119_v38  ;;  %v5128_v49 = vor.u32 %v5835_v44, %v5127_v43  ;;  %v5019_v50 = vld [vmem:[%s8055_s8 + $0x258] sm:$0xf]  ;;  %v5899_v38 = vld [vmem:[%s8055_s8 + $0x58c] sm:$0xf]  ;;  %v4720_v39 = vor.u32 %v5734_v24, %v4719_v23 }
 0x150   :  { %3426 = vmatpush.bf16.msrb.mxu0 %v5124_v48  ;;  %v4724_v43 = vor.u32 %v5722_v28, %v4721_v29  ;;  %v4728_v44 = vor.u32 %v5735_v32, %v4727_v30  ;;  %v5436_v48 = vor.u32 %v5911_v37, %v5435_v36  ;;  %v5144_v24 = vor.u32 %v5837_v19, %v5143_v18  ;;  %v5037_v29 = vld [vmem:[%s8055_s8 + $0x2cc] sm:$0xf0]  ;;  %v5800_v32 = vld [vmem:[%s8055_s8 + $0x274] sm:$0xf]  ;;  %v4935_v37 = vld [vmem:[%s8055_s8 + $0x1a0] sm:$0xf] }
 0x151   :  { %v2003_v52 = vmax.f32 %v2000_v51, 0.0  ;;  %v5809_v51 = vld [vmem:[%s8055_s8 + $0x2b8] sm:$0xf0]  ;;  %3413 = vmatpush.bf16.msra.mxu3 %v5120_v47  ;;  %3439 = vmatpush.bf16.msrb.mxu2 %v5128_v49  ;;  %v4732_v47 = vor.u32 %v5723_v33, %v4729_v34  ;;  %v5440_v49 = vor.u32 %v5899_v38, %v5437_v40  ;;  %v5043_v30 = vld [vmem:[%s8055_s8 + $0x270] sm:$0xf] }
 0x152   :  { %v5045_v33 = vld [vmem:[%s8055_s8 + $0x2d4] sm:$0xf0]  ;;  %v5786_v38 = vld [vmem:[%s8055_s8 + $0x200] sm:$0xf0] }
 0x153   :  { %v2004_v53 = vpack.c.bf16 %v2003_v52, %v2003_v52  ;;  %v5797_v52 = vld [vmem:[%s8055_s8 + $0x25c] sm:$0xf]  ;;  %v5048_v40 = vor.u32 %v5800_v32, %v5045_v33  ;;  %v5914_v18 = vld [vmem:[%s8055_s8 + $0x600] sm:$0xf0] }
 0x154   :  { %v5889_v32 = vld [vmem:[%s8055_s8 + $0x538] sm:$0xf0] }
 0x155   :  { %2081 = vmatmul.bf16.vlgmr.msra.gmra.mxu1 %v2004_v53  ;;  %v5132_v53 = vor.u32 %v5823_v45, %v5129_v46  ;;  %v5900_v45 = vld [vmem:[%s8055_s8 + $0x594] sm:$0xf]  ;;  %v5445_v46 = vld [vmem:[%s8055_s8 + $0x5f4] sm:$0xf0]  ;;  %v5877_v33 = vld [vmem:[%s8055_s8 + $0x4dc] sm:$0xf] }
 0x156   :  { %v2001_v54 = vpop.f32.mrf.mxu0 }
 0x157   :  { %v5021_v54 = vld [vmem:[%s8055_s8 + $0x2bc] sm:$0xf0]  ;;  %3452 = vmatpush.bf16.msrb.mxu1 %v5132_v53  ;;  %v5874_v53 = vld [vmem:[%s8055_s8 + $0x4c4] sm:$0xf] }
 0x15b   :  { %3453 = vmatpush.bf16.msrb.mxu1 %v5032_v2  ;;  %v5861_v2 = vld [vmem:[%s8055_s8 + $0x458] sm:$0xf0] }
 0x15f   :  { %3454 = vmatpush.bf16.msrb.mxu1 %v4932_v15  ;;  %v5824_v15 = vld [vmem:[%s8055_s8 + $0x334] sm:$0xf] }
 0x160   :  { %v5140_v23 = vor.u32 %v5824_v15, %v5137_v17  ;;  %v5901_v15 = vld [vmem:[%s8055_s8 + $0x59c] sm:$0xf]  ;;  %v5459_v17 = vld [vmem:[%s8055_s8 + $0x5a0] sm:$0xf] }
 0x163   :  { %3455 = vmatpush.bf16.msrb.mxu1 %v4832_v31  ;;  %v5812_v31 = vld [vmem:[%s8055_s8 + $0x2d0] sm:$0xf0] }
 0x164   :  { %v5044_v36 = vor.u32 %v5812_v31, %v5043_v30  ;;  %v5353_v30 = vld [vmem:[%s8055_s8 + $0x534] sm:$0xf0] }
 0x165   :  { %v5359_v31 = vld [vmem:[%s8055_s8 + $0x4d8] sm:$0xf] }
 0x167   :  { %3456 = vmatpush.bf16.msrb.mxu1 %v4732_v47 }
 0x1d2   :  { %v2082_v60 = vpop.f32.mrf.mxu1 }
 0x1d3   :  { %v6731_v61 = vadd.f32 %v5927_v59, %v2082_v60  ;;  %v5020_v59 = vor.u32 %v5809_v51, %v5019_v50  ;;  %v5024_v60 = vor.u32 %v5797_v52, %v5021_v54  ;;  %v5335_v51 = vld [vmem:[%s8055_s8 + $0x4c0] sm:$0xf]  ;;  %v5886_v52 = vld [vmem:[%s8055_s8 + $0x520] sm:$0xf0] }
 0x1d5   :  { %v2086_v62 = vmul.f32 0.5, %v6731_v61  ;;  %3838 = vst.msk [vmem:[#allocation4] sm:$0x3] %vm3836_vm2, %v6731_v61  ;;  %3414 = vmatpush.bf16.msra.mxu3 %v5020_v59  ;;  %3427 = vmatpush.bf16.msrb.mxu0 %v5024_v60  ;;  %v5875_v59 = vld [vmem:[%s8055_s8 + $0x4cc] sm:$0xf] }
 0x1d6   :  { %v5345_v60 = vld [vmem:[%s8055_s8 + $0x52c] sm:$0xf0]  ;;  %3867 = dma.vmem_to_hbm [thread:$0]  %s3863_s15, 32, %s3865_s18, [#allocation5]  }
 0x1d7   :  { %v2087_v63 = vmul.f32 1.442695, %v2086_v62  ;;  %v5028_v62 = vor.u32 %v5810_v56, %v5027_v55  ;;  %v5448_v55 = vor.u32 %v5900_v45, %v5445_v46  ;;  %v5337_v56 = vld [vmem:[%s8055_s8 + $0x524] sm:$0xf0]  ;;  %v5348_v4 = vor.u32 %v5875_v59, %v5345_v60 }
 0x1d8   :  { %v4936_v45 = vor.u32 %v5786_v38, %v4935_v37  ;;  %v4845_v59 = vld [vmem:[%s8055_s8 + $0x144] sm:$0xf0] }
 0x1d9   :  { %5930 = vpow2.f32 %v2087_v63  ;;  %v4919_v63 = vld [vmem:[%s8055_s8 + $0x190] sm:$0xf]  ;;  %3440 = vmatpush.bf16.msrb.mxu2 %v5028_v62  ;;  %v5336_v62 = vor.u32 %v5886_v52, %v5335_v51  ;;  %3501 = vmatpush.bf16.msra.mxu1 %v5448_v55  ;;  %v5749_v51 = vld [vmem:[%s8055_s8 + $0xdc] sm:$0xf]  ;;  %v5762_v55 = vld [vmem:[%s8055_s8 + $0x140] sm:$0xf0] }
 0x1da   :  { %v2084_v0 = vpop.f32.mrf.mxu1  ;;  %v5251_v38 = vld [vmem:[%s8055_s8 + $0x408] sm:$0xf] }
 0x1db   :  { %v5784_v0 = vld [vmem:[%s8055_s8 + $0x1f0] sm:$0xf0] }
 0x1dc   :  { %v4920_v9 = vor.u32 %v5784_v0, %v4919_v63  ;;  %v5340_v63 = vor.u32 %v5874_v53, %v5337_v56  ;;  %v5344_v0 = vor.u32 %v5887_v58, %v5343_v57  ;;  %v4837_v53 = vld [vmem:[%s8055_s8 + $0x13c] sm:$0xf0]  ;;  %v5750_v58 = vld [vmem:[%s8055_s8 + $0xe4] sm:$0xf] }
 0x1dd   :  { %3441 = vmatpush.bf16.msrb.mxu2 %v4928_v11  ;;  %3502 = vmatpush.bf16.msra.mxu1 %v5348_v4  ;;  %v4840_v56 = vor.u32 %v5749_v51, %v4837_v53  ;;  %v4848_v60 = vor.u32 %v5750_v58, %v4845_v59  ;;  %v5737_v4 = vld [vmem:[%s8055_s8 + $0x78] sm:$0xf0]  ;;  %v5826_v53 = vld [vmem:[%s8055_s8 + $0x344] sm:$0xf]  ;;  %v5161_v58 = vld [vmem:[%s8055_s8 + $0x3ac] sm:$0xf0] }
 0x1de   :  { %3415 = vmatpush.bf16.msra.mxu3 %v4920_v9  ;;  %v5245_v9 = vld [vmem:[%s8055_s8 + $0x464] sm:$0xf0] }
 0x1df   :  { %v5931_v1 = vpop.eup %5930 }
 0x1e0   :  { %2091 = vrot.lane.b32.xlu0 %v5931_v1, %s6008_s29  ;;  %v5772_v1 = vld [vmem:[%s8055_s8 + $0x194] sm:$0xf] }
 0x1e1   :  { %v4924_v10 = vor.u32 %v5772_v1, %v4921_v3  ;;  %3442 = vmatpush.bf16.msrb.mxu2 %v4828_v27  ;;  %v5235_v1 = vld [vmem:[%s8055_s8 + $0x3f8] sm:$0xf]  ;;  %v5849_v3 = vld [vmem:[%s8055_s8 + $0x3fc] sm:$0xf]  ;;  %v5799_v27 = vld [vmem:[%s8055_s8 + $0x26c] sm:$0xf] }
 0x1e2   :  { %3416 = vmatpush.bf16.msra.mxu3 %v4820_v22  ;;  %v5240_v11 = vor.u32 %v5849_v3, %v5237_v5  ;;  %v5136_v22 = vor.u32 %v5836_v14, %v5135_v13  ;;  %v4743_v3 = vld [vmem:[%s8055_s8 + $0x18] sm:$0xf]  ;;  %v5913_v14 = vld [vmem:[%s8055_s8 + $0x5f8] sm:$0xf0] }
 0x1e3   :  { %3428 = vmatpush.bf16.msrb.mxu0 %v4924_v10  ;;  %v5236_v10 = vor.u32 %v5861_v2, %v5235_v1  ;;  %v4737_v2 = vld [vmem:[%s8055_s8 + $0x74] sm:$0xf0]  ;;  %v4744_v6 = vor.u32 %v5737_v4, %v4743_v3  ;;  %v5053_v3 = vld [vmem:[%s8055_s8 + $0x2dc] sm:$0xf0] }
 0x1e4   :  { %v5451_v13 = vld [vmem:[%s8055_s8 + $0x598] sm:$0xf]  ;;  %v5059_v4 = vld [vmem:[%s8055_s8 + $0x280] sm:$0xf] }
 0x1e5   :  { %3443 = vmatpush.bf16.msrb.mxu2 %v4728_v44  ;;  %v4945_v44 = vld [vmem:[%s8055_s8 + $0x20c] sm:$0xf0] }
 0x1e6   :  { %3417 = vmatpush.bf16.msra.mxu3 %v4720_v39  ;;  %v5774_v39 = vld [vmem:[%s8055_s8 + $0x1a4] sm:$0xf] }
 0x1e7   :  { %3429 = vmatpush.bf16.msrb.mxu0 %v4824_v26  ;;  %v5811_v26 = vld [vmem:[%s8055_s8 + $0x2c8] sm:$0xf0] }
 0x1e8   :  { %3840 = vrot.lane.b32.xlu0 %v6731_v61, %s6008_s29 }
 0x1ea   :  { %3462 = vmatpush.bf16.msrb.mxu3 %v5436_v48 }
 0x1eb   :  { %3430 = vmatpush.bf16.msrb.mxu0 %v4724_v43  ;;  %v5775_v43 = vld [vmem:[%s8055_s8 + $0x1ac] sm:$0xf] }
 0x1ec   :  { %v4948_v48 = vor.u32 %v5775_v43, %v4945_v44  ;;  %v5259_v43 = vld [vmem:[%s8055_s8 + $0x410] sm:$0xf]  ;;  %v5864_v44 = vld [vmem:[%s8055_s8 + $0x470] sm:$0xf0] }
 0x1ed   :  { %v5260_v51 = vor.u32 %v5864_v44, %v5259_v43  ;;  %v4761_v43 = vld [vmem:[%s8055_s8 + $0x8c] sm:$0xf0]  ;;  %v5467_v44 = vld [vmem:[%s8055_s8 + $0x5a8] sm:$0xf] }
 0x1ee   :  { %3463 = vmatpush.bf16.msrb.mxu3 %v5336_v62  ;;  %v4735_v62 = vld [vmem:[%s8055_s8 + $0x10] sm:$0xf] }
 0x1ef   :  { %3475 = vmatpush.bf16.msra.mxu0 %v5440_v49  ;;  %v4835_v49 = vld [vmem:[%s8055_s8 + $0xd8] sm:$0xf] }
 0x1f2   :  { %3464 = vmatpush.bf16.msrb.mxu3 %v5236_v10  ;;  %v5928_v10 = vld [vmem:[%s8054_s7] ss:$0 sm:$0xff]  ;;  %s6010_s7 = smov [#allocation2]  }
 0x1f3   :  { %3476 = vmatpush.bf16.msra.mxu0 %v5340_v63  ;;  %v5736_v63 = vld [vmem:[%s8055_s8 + $0x70] sm:$0xf0]  ;;  %s3851_s6 = sshll.u32 %s6010_s7, 4  ;;  %s3852_s6 = int_to_ptr.vmem [resolvable:$true] %s3851_s6 }
 0x1f4   :  { %v4736_v1 = vor.u32 %v5736_v63, %v4735_v62  ;;  %v5051_v62 = vld [vmem:[%s8055_s8 + $0x278] sm:$0xf]  ;;  %v5813_v63 = vld [vmem:[%s8055_s8 + $0x2d8] sm:$0xf0] }
 0x1f6   :  { %3465 = vmatpush.bf16.msrb.mxu3 %v5136_v22 }
 0x1f7   :  { %3477 = vmatpush.bf16.msra.mxu0 %v5240_v11 }
 0x1fb   :  { %3478 = vmatpush.bf16.msra.mxu0 %v5140_v23  ;;  %v5452_v23 = vor.u32 %v5913_v14, %v5451_v13  ;;  %v5776_v14 = vld [vmem:[%s8055_s8 + $0x1b4] sm:$0xf] }
 0x252   :  { %v2092_v21 = vpop.permute.xlu0 %2091 }
 0x253   :  { %v2094_v25 = vmul.f32 %v2092_v21, %v2089_v8  ;;  %v5850_v8 = vld [vmem:[%s8055_s8 + $0x404] sm:$0xf]  ;;  %v5145_v21 = vld [vmem:[%s8055_s8 + $0x39c] sm:$0xf0] }
 0x254   :  { %v5248_v16 = vor.u32 %v5850_v8, %v5245_v9  ;;  %v5148_v28 = vor.u32 %v5825_v20, %v5145_v21  ;;  %v4745_v8 = vld [vmem:[%s8055_s8 + $0x7c] sm:$0xf0]  ;;  %v5902_v20 = vld [vmem:[%s8055_s8 + $0x5a4] sm:$0xf]  ;;  %v5461_v21 = vld [vmem:[%s8055_s8 + $0x604] sm:$0xf0] }
 0x255   :  { %v2095_v35 = vadd.f32 %v2094_v25, %v6731_v61  ;;  %v5443_v61 = vld [vmem:[%s8055_s8 + $0x590] sm:$0xf]  ;;  %v5035_v25 = vld [vmem:[%s8055_s8 + $0x268] sm:$0xf]  ;;  %v4748_v9 = vor.u32 %v5725_v7, %v4745_v8  ;;  %v5052_v8 = vor.u32 %v5813_v63, %v5051_v62  ;;  %v5878_v63 = vld [vmem:[%s8055_s8 + $0x4e4] sm:$0xf] }
 0x256   :  { %v5444_v50 = vor.u32 %v5912_v41, %v5443_v61  ;;  %3503 = vmatpush.bf16.msra.mxu1 %v5248_v16  ;;  %v5036_v34 = vor.u32 %v5811_v26, %v5035_v25  ;;  %v4937_v61 = vld [vmem:[%s8055_s8 + $0x204] sm:$0xf0]  ;;  %v5453_v16 = vld [vmem:[%s8055_s8 + $0x5fc] sm:$0xf0]  ;;  %v5351_v25 = vld [vmem:[%s8055_s8 + $0x4d0] sm:$0xf] }
 0x257   :  { %v2096_v42 = vpack.c.bf16 %v2095_v35, %v2095_v35  ;;  %3837 = vst.msk [vmem:[#allocation2] sm:$0x3] %vm3836_vm2, %v2095_v35  ;;  %v5040_v35 = vor.u32 %v5799_v27, %v5037_v29  ;;  %v4943_v41 = vld [vmem:[%s8055_s8 + $0x1a8] sm:$0xf]  ;;  %v4940_v46 = vor.u32 %v5774_v39, %v4937_v61  ;;  %v5888_v26 = vld [vmem:[%s8055_s8 + $0x530] sm:$0xf0]  ;;  %v5460_v27 = vor.u32 %v5914_v18, %v5459_v17 }
 0x258   :  { %3466 = vmatpush.bf16.msrb.mxu3 %v5036_v34  ;;  %v5876_v29 = vld [vmem:[%s8055_s8 + $0x4d4] sm:$0xf]  ;;  %v5361_v34 = vld [vmem:[%s8055_s8 + $0x53c] sm:$0xf0]  ;;  %v5863_v39 = vld [vmem:[%s8055_s8 + $0x468] sm:$0xf0] }
 0x259   :  { %4716 = vmatmul.msk.bf16.vlgmr.msra.gmra.mxu2 %vm2113_vm3, %v2096_v42  ;;  %v5787_v42 = vld [vmem:[%s8055_s8 + $0x208] sm:$0xf0]  ;;  %3479 = vmatpush.bf16.msra.mxu0 %v5040_v35  ;;  %v5356_v37 = vor.u32 %v5876_v29, %v5353_v30  ;;  %v5364_v61 = vor.u32 %v5877_v33, %v5361_v34  ;;  %v5061_v7 = vld [vmem:[%s8055_s8 + $0x2e4] sm:$0xf0]  ;;  %v5789_v17 = vld [vmem:[%s8055_s8 + $0x218] sm:$0xf0] }
 0x25a   :  { %v3841_v54 = vpop.permute.xlu0 %3840  ;;  %3488 = vmatpush.bf16.msra.mxu2 %v5444_v50  ;;  %3504 = vmatpush.bf16.msra.mxu1 %v5148_v28  ;;  %v4944_v47 = vor.u32 %v5787_v42, %v4943_v41  ;;  %v5761_v50 = vld [vmem:[%s8055_s8 + $0x138] sm:$0xf0]  ;;  %v5464_v28 = vor.u32 %v5902_v20, %v5461_v21  ;;  %v5851_v41 = vld [vmem:[%s8055_s8 + $0x40c] sm:$0xf]  ;;  %v5253_v42 = vld [vmem:[%s8055_s8 + $0x46c] sm:$0xf0] }
 0x25b   :  { %3843 = vst.msk [vmem:[#allocation6] sm:$0x3] %vm3836_vm2, %v3841_v54  ;;  %v4836_v52 = vor.u32 %v5761_v50, %v4835_v49  ;;  %v4843_v54 = vld [vmem:[%s8055_s8 + $0xe0] sm:$0xf]  ;;  %v5838_v50 = vld [vmem:[%s8055_s8 + $0x3a0] sm:$0xf0] }
 0x25c   :  { %3467 = vmatpush.bf16.msrb.mxu3 %v4936_v45  ;;  %v4844_v57 = vor.u32 %v5762_v55, %v4843_v54  ;;  %v5852_v45 = vld [vmem:[%s8055_s8 + $0x414] sm:$0xf]  ;;  %v5151_v49 = vld [vmem:[%s8055_s8 + $0x340] sm:$0xf]  ;;  %v5153_v54 = vld [vmem:[%s8055_s8 + $0x3a4] sm:$0xf0] }
 0x25d   :  { %3480 = vmatpush.bf16.msra.mxu0 %v4940_v46  ;;  %v5261_v46 = vld [vmem:[%s8055_s8 + $0x474] sm:$0xf0]  ;;  %v5159_v55 = vld [vmem:[%s8055_s8 + $0x348] sm:$0xf]  ;;  %v5152_v59 = vor.u32 %v5838_v50, %v5151_v49  ;;  %v5777_v18 = vld [vmem:[%s8055_s8 + $0x1bc] sm:$0xf] }
 0x25e   :  { %3489 = vmatpush.bf16.msra.mxu2 %v5344_v0  ;;  %3505 = vmatpush.bf16.msra.mxu1 %v5048_v40  ;;  %v5724_v0 = vld [vmem:[%s8055_s8 + $0x14] sm:$0xf]  ;;  %v5360_v40 = vor.u32 %v5889_v32, %v5359_v31  ;;  %v4859_v29 = vld [vmem:[%s8055_s8 + $0xf0] sm:$0xf]  ;;  %v4861_v32 = vld [vmem:[%s8055_s8 + $0x154] sm:$0xf0] }
 0x25f   :  { %v4740_v5 = vor.u32 %v5724_v0, %v4737_v2  ;;  %v5801_v2 = vld [vmem:[%s8055_s8 + $0x27c] sm:$0xf]  ;;  %v5764_v30 = vld [vmem:[%s8055_s8 + $0x150] sm:$0xf0]  ;;  %v4751_v33 = vld [vmem:[%s8055_s8 + $0x20] sm:$0xf] }
 0x260   :  { %3468 = vmatpush.bf16.msrb.mxu3 %v4836_v52  ;;  %v5264_v52 = vor.u32 %v5852_v45, %v5261_v46  ;;  %v5752_v31 = vld [vmem:[%s8055_s8 + $0xf4] sm:$0xf]  ;;  %v5915_v45 = vld [vmem:[%s8055_s8 + $0x608] sm:$0xf0]  ;;  %3856 = dma.vmem_to_hbm [thread:$0]  %s3852_s6, 32, %s3854_s21, [#allocation3]  }
 0x261   :  { %3481 = vmatpush.bf16.msra.mxu0 %v4840_v56  ;;  %v5839_v56 = vld [vmem:[%s8055_s8 + $0x3a8] sm:$0xf0]  ;;  %3878 = dma.vmem_to_hbm [thread:$0]  %s3874_s22, 32, %s3876_s3, [#allocation5]  }
 0x262   :  { %3490 = vmatpush.bf16.msra.mxu2 %v5244_v12  ;;  %3506 = vmatpush.bf16.msra.mxu1 %v4948_v48  ;;  %v5256_v48 = vor.u32 %v5851_v41, %v5253_v42  ;;  %v5160_v0 = vor.u32 %v5839_v56, %v5159_v55  ;;  %v5739_v41 = vld [vmem:[%s8055_s8 + $0x88] sm:$0xf0]  ;;  %v5468_v56 = vor.u32 %v5915_v45, %v5467_v44  ;;  %v5790_v44 = vld [vmem:[%s8055_s8 + $0x220] sm:$0xf0] }
 0x263   :  { %v5727_v42 = vld [vmem:[%s8055_s8 + $0x2c] sm:$0xf] }
 0x264   :  { %3469 = vmatpush.bf16.msrb.mxu3 %v4736_v1  ;;  %v5903_v46 = vld [vmem:[%s8055_s8 + $0x5ac] sm:$0xf]  ;;  %v4764_v55 = vor.u32 %v5727_v42, %v4761_v43  ;;  %v4967_v43 = vld [vmem:[%s8055_s8 + $0x1c0] sm:$0xf] }
 0x265   :  { %3482 = vmatpush.bf16.msra.mxu0 %v4740_v5  ;;  %v5814_v5 = vld [vmem:[%s8055_s8 + $0x2e0] sm:$0xf0] }
 0x266   :  { %3491 = vmatpush.bf16.msra.mxu2 %v5144_v24  ;;  %3507 = vmatpush.bf16.msra.mxu1 %v4848_v60  ;;  %v5456_v24 = vor.u32 %v5901_v15, %v5453_v16  ;;  %v5156_v60 = vor.u32 %v5826_v53, %v5153_v54  ;;  %v4953_v15 = vld [vmem:[%s8055_s8 + $0x214] sm:$0xf0] }
 0x267   :  { %v4959_v16 = vld [vmem:[%s8055_s8 + $0x1b8] sm:$0xf]  ;;  %v4956_v21 = vor.u32 %v5776_v14, %v4953_v15  ;;  %v5866_v14 = vld [vmem:[%s8055_s8 + $0x480] sm:$0xf0] }
 0x268   :  { %v5477_v53 = vld [vmem:[%s8055_s8 + $0x614] sm:$0xf0]  ;;  %v5854_v15 = vld [vmem:[%s8055_s8 + $0x424] sm:$0xf] }
 0x26a   :  { %3492 = vmatpush.bf16.msra.mxu2 %v5044_v36  ;;  %3508 = vmatpush.bf16.msra.mxu1 %v4748_v9  ;;  %v5352_v36 = vor.u32 %v5888_v26, %v5351_v25  ;;  %v5056_v9 = vor.u32 %v5801_v2, %v5053_v3  ;;  %v4960_v25 = vor.u32 %v5789_v17, %v4959_v16  ;;  %v5891_v2 = vld [vmem:[%s8055_s8 + $0x548] sm:$0xf0]  ;;  %v5277_v16 = vld [vmem:[%s8055_s8 + $0x484] sm:$0xf0] }
 0x26b   :  { %v5879_v3 = vld [vmem:[%s8055_s8 + $0x4ec] sm:$0xf] }
 0x26e   :  { %3493 = vmatpush.bf16.msra.mxu2 %v4944_v47  ;;  %v5252_v47 = vor.u32 %v5863_v39, %v5251_v38  ;;  %v4753_v38 = vld [vmem:[%s8055_s8 + $0x84] sm:$0xf0]  ;;  %v4860_v39 = vor.u32 %v5764_v30, %v4859_v29  ;;  %v5177_v29 = vld [vmem:[%s8055_s8 + $0x3bc] sm:$0xf0] }
 0x272   :  { %3494 = vmatpush.bf16.msra.mxu2 %v4844_v57  ;;  %v5827_v57 = vld [vmem:[%s8055_s8 + $0x34c] sm:$0xf] }
 0x273   :  { %v5164_v1 = vor.u32 %v5827_v57, %v5161_v58  ;;  %v5367_v58 = vld [vmem:[%s8055_s8 + $0x4e0] sm:$0xf] }
 0x276   :  { %3495 = vmatpush.bf16.msra.mxu2 %v4744_v6  ;;  %v5802_v6 = vld [vmem:[%s8055_s8 + $0x284] sm:$0xf] }
 0x277   :  { %v5064_v13 = vor.u32 %v5802_v6, %v5061_v7  ;;  %v5267_v7 = vld [vmem:[%s8055_s8 + $0x418] sm:$0xf] }
 0x2dc   :  { %v2130_v11 = vpop.f32.mrf.mxu2 }
 0x2dd   :  { %v2131_v12 = vadd.f32 %v5928_v10, %v2130_v11  ;;  %v4951_v10 = vld [vmem:[%s8055_s8 + $0x1b0] sm:$0xf]  ;;  %v5788_v11 = vld [vmem:[%s8055_s8 + $0x210] sm:$0xf0] }
 0x2de   :  { %v4952_v20 = vor.u32 %v5788_v11, %v4951_v10  ;;  %v5853_v11 = vld [vmem:[%s8055_s8 + $0x41c] sm:$0xf] }
 0x2df   :  { %v2134_v19 = vmax.f32 %v2131_v12, 0.0  ;;  %v5060_v12 = vor.u32 %v5814_v5, %v5059_v4  ;;  %v5377_v4 = vld [vmem:[%s8055_s8 + $0x54c] sm:$0xf0] }
 0x2e0   :  { %v5380_v10 = vor.u32 %v5879_v3, %v5377_v4 }
 0x2e1   :  { %v7158_v22 = vpack.c.bf16 %v2134_v19, %v2134_v19  ;;  %v4961_v19 = vld [vmem:[%s8055_s8 + $0x21c] sm:$0xf0] }
 0x2e2   :  { %v4964_v26 = vor.u32 %v5777_v18, %v4961_v19  ;;  %v5167_v19 = vld [vmem:[%s8055_s8 + $0x350] sm:$0xf] }
 0x2e3   :  { %3418 = vmatmul.bf16.vlgmr.msra.gmra.mxu3 %v7158_v22  ;;  %3431 = vmatmul.bf16.vlgmr.msrb.gmra.mxu0 %v7158_v22 }
 0x2e4   :  { %3444 = vmatmul.bf16.vlgmr.msrb.gmra.mxu2 %v7158_v22  ;;  %3457 = vmatmul.bf16.vlgmr.msrb.gmra.mxu1 %v7158_v22  ;;  %v2132_v35 = vpop.f32.mrf.mxu2 }
 0x2e5   :  { %3514 = vmatpush.bf16.msra.mxu3 %v5452_v23  ;;  %3527 = vmatpush.bf16.msrb.mxu0 %v5456_v24  ;;  %v4851_v23 = vld [vmem:[%s8055_s8 + $0xe8] sm:$0xf]  ;;  %v5763_v24 = vld [vmem:[%s8055_s8 + $0x148] sm:$0xf0] }
 0x2e6   :  { %3540 = vmatpush.bf16.msrb.mxu2 %v5460_v27  ;;  %3553 = vmatpush.bf16.msrb.mxu1 %v5464_v28  ;;  %v5751_v27 = vld [vmem:[%s8055_s8 + $0xec] sm:$0xf]  ;;  %v4853_v28 = vld [vmem:[%s8055_s8 + $0x14c] sm:$0xf0]  ;;  %v4852_v34 = vor.u32 %v5763_v24, %v4851_v23  ;;  %v5280_v23 = vor.u32 %v5854_v15, %v5277_v16  ;;  %v5828_v24 = vld [vmem:[%s8055_s8 + $0x354] sm:$0xf] }
 0x2e7   :  { %v4856_v35 = vor.u32 %v5751_v27, %v4853_v28  ;;  %v5841_v27 = vld [vmem:[%s8055_s8 + $0x3b8] sm:$0xf0] }
 0x2e8   :  { %v5829_v28 = vld [vmem:[%s8055_s8 + $0x35c] sm:$0xf] }
 0x2e9   :  { %3515 = vmatpush.bf16.msra.mxu3 %v5352_v36  ;;  %3528 = vmatpush.bf16.msrb.mxu0 %v5356_v37  ;;  %v5738_v36 = vld [vmem:[%s8055_s8 + $0x80] sm:$0xf0]  ;;  %v5917_v15 = vld [vmem:[%s8055_s8 + $0x618] sm:$0xf0] }
 0x2ea   :  { %3541 = vmatpush.bf16.msrb.mxu2 %v5360_v40  ;;  %3554 = vmatpush.bf16.msrb.mxu1 %v5364_v61  ;;  %v5726_v37 = vld [vmem:[%s8055_s8 + $0x24] sm:$0xf]  ;;  %v4864_v40 = vor.u32 %v5752_v31, %v4861_v32  ;;  %v4759_v61 = vld [vmem:[%s8055_s8 + $0x28] sm:$0xf]  ;;  %v4752_v49 = vor.u32 %v5738_v36, %v4751_v33  ;;  %v5815_v33 = vld [vmem:[%s8055_s8 + $0x2e8] sm:$0xf0] }
 0x2eb   :  { %v4756_v50 = vor.u32 %v5726_v37, %v4753_v38  ;;  %v4760_v54 = vor.u32 %v5739_v41, %v4759_v61  ;;  %v5067_v32 = vld [vmem:[%s8055_s8 + $0x288] sm:$0xf]  ;;  %v5803_v36 = vld [vmem:[%s8055_s8 + $0x28c] sm:$0xf]  ;;  %v5069_v37 = vld [vmem:[%s8055_s8 + $0x2ec] sm:$0xf0] }
 0x2ec   :  { %v5075_v38 = vld [vmem:[%s8055_s8 + $0x290] sm:$0xf]  ;;  %v5077_v61 = vld [vmem:[%s8055_s8 + $0x2f4] sm:$0xf0]  ;;  %v5068_v41 = vor.u32 %v5815_v33, %v5067_v32  ;;  %v5072_v42 = vor.u32 %v5803_v36, %v5069_v37  ;;  %v5905_v16 = vld [vmem:[%s8055_s8 + $0x5bc] sm:$0xf] }
 0x2ed   :  { %3516 = vmatpush.bf16.msra.mxu3 %v5252_v47  ;;  %3529 = vmatpush.bf16.msrb.mxu0 %v5256_v48  ;;  %v5469_v47 = vld [vmem:[%s8055_s8 + $0x60c] sm:$0xf0]  ;;  %v5880_v33 = vld [vmem:[%s8055_s8 + $0x4f4] sm:$0xf]  ;;  %v5893_v36 = vld [vmem:[%s8055_s8 + $0x558] sm:$0xf0] }
 0x2ee   :  { %3542 = vmatpush.bf16.msrb.mxu2 %v5260_v51  ;;  %3555 = vmatpush.bf16.msrb.mxu1 %v5264_v52  ;;  %v5475_v48 = vld [vmem:[%s8055_s8 + $0x5b0] sm:$0xf]  ;;  %v5916_v51 = vld [vmem:[%s8055_s8 + $0x610] sm:$0xf0]  ;;  %v5472_v57 = vor.u32 %v5903_v46, %v5469_v47  ;;  %v5778_v47 = vld [vmem:[%s8055_s8 + $0x1c4] sm:$0xf] }
 0x2ef   :  { %v5904_v52 = vld [vmem:[%s8055_s8 + $0x5b4] sm:$0xf]  ;;  %v5881_v37 = vld [vmem:[%s8055_s8 + $0x4fc] sm:$0xf] }
 0x2f0   :  { %v5480_v62 = vor.u32 %v5904_v52, %v5477_v53  ;;  %v4977_v52 = vld [vmem:[%s8055_s8 + $0x22c] sm:$0xf0]  ;;  %v4968_v53 = vor.u32 %v5790_v44, %v4967_v43  ;;  %v5855_v44 = vld [vmem:[%s8055_s8 + $0x42c] sm:$0xf] }
 0x2f1   :  { %3517 = vmatpush.bf16.msra.mxu3 %v5152_v59  ;;  %3530 = vmatpush.bf16.msrb.mxu0 %v5156_v60  ;;  %v5890_v59 = vld [vmem:[%s8055_s8 + $0x540] sm:$0xf0]  ;;  %v5476_v60 = vor.u32 %v5916_v51, %v5475_v48  ;;  %v4969_v48 = vld [vmem:[%s8055_s8 + $0x224] sm:$0xf0]  ;;  %v5779_v51 = vld [vmem:[%s8055_s8 + $0x1cc] sm:$0xf] }
 0x2f2   :  { %3543 = vmatpush.bf16.msrb.mxu2 %v5160_v0  ;;  %3556 = vmatpush.bf16.msrb.mxu1 %v5164_v1  ;;  %v5369_v0 = vld [vmem:[%s8055_s8 + $0x544] sm:$0xf0]  ;;  %v5368_v5 = vor.u32 %v5890_v59, %v5367_v58  ;;  %v4980_v58 = vor.u32 %v5779_v51, %v4977_v52  ;;  %v5753_v59 = vld [vmem:[%s8055_s8 + $0xfc] sm:$0xf]  ;;  %v5183_v52 = vld [vmem:[%s8055_s8 + $0x360] sm:$0xf] }
 0x2f3   :  { %3470 = vmatmul.bf16.vlgmr.msrb.gmra.mxu3 %v7158_v22  ;;  %3483 = vmatmul.bf16.vlgmr.msra.gmra.mxu0 %v7158_v22  ;;  %v5375_v1 = vld [vmem:[%s8055_s8 + $0x4e8] sm:$0xf]  ;;  %v5372_v6 = vor.u32 %v5878_v63, %v5369_v0  ;;  %v5766_v63 = vld [vmem:[%s8055_s8 + $0x160] sm:$0xf0] }
 0x2f4   :  { %3496 = vmatmul.bf16.vlgmr.msra.gmra.mxu2 %v7158_v22  ;;  %3509 = vmatmul.bf16.vlgmr.msra.gmra.mxu1 %v7158_v22  ;;  %v5754_v0 = vld [vmem:[%s8055_s8 + $0x104] sm:$0xf] }
 0x2f5   :  { %3518 = vmatpush.bf16.msra.mxu3 %v5052_v8  ;;  %3531 = vmatpush.bf16.msrb.mxu0 %v5056_v9  ;;  %v5865_v8 = vld [vmem:[%s8055_s8 + $0x478] sm:$0xf0]  ;;  %v5376_v9 = vor.u32 %v5891_v2, %v5375_v1  ;;  %v4877_v1 = vld [vmem:[%s8055_s8 + $0x164] sm:$0xf0]  ;;  %v4767_v2 = vld [vmem:[%s8055_s8 + $0x30] sm:$0xf] }
 0x2f6   :  { %3544 = vmatpush.bf16.msrb.mxu2 %v5060_v12  ;;  %3557 = vmatpush.bf16.msrb.mxu1 %v5064_v13  ;;  %v5269_v12 = vld [vmem:[%s8055_s8 + $0x47c] sm:$0xf0]  ;;  %v5268_v17 = vor.u32 %v5865_v8, %v5267_v7  ;;  %v4769_v7 = vld [vmem:[%s8055_s8 + $0x94] sm:$0xf0] }
 0x2f7   :  { %v5275_v13 = vld [vmem:[%s8055_s8 + $0x420] sm:$0xf]  ;;  %v5272_v18 = vor.u32 %v5853_v11, %v5269_v12  ;;  %v5741_v11 = vld [vmem:[%s8055_s8 + $0x98] sm:$0xf0] }
 0x2f8   :  { %v5729_v12 = vld [vmem:[%s8055_s8 + $0x3c] sm:$0xf] }
 0x2f9   :  { %3519 = vmatpush.bf16.msra.mxu3 %v4952_v20  ;;  %3532 = vmatpush.bf16.msrb.mxu0 %v4956_v21  ;;  %v5840_v20 = vld [vmem:[%s8055_s8 + $0x3b0] sm:$0xf0]  ;;  %v5276_v21 = vor.u32 %v5866_v14, %v5275_v13  ;;  %v4777_v13 = vld [vmem:[%s8055_s8 + $0x9c] sm:$0xf0]  ;;  %v5483_v14 = vld [vmem:[%s8055_s8 + $0x5b8] sm:$0xf] }
 0x2fa   :  { %3545 = vmatpush.bf16.msrb.mxu2 %v4960_v25  ;;  %3558 = vmatpush.bf16.msrb.mxu1 %v4964_v26  ;;  %v5169_v25 = vld [vmem:[%s8055_s8 + $0x3b4] sm:$0xf0]  ;;  %v5168_v30 = vor.u32 %v5840_v20, %v5167_v19 }
 0x2fb   :  { %v5175_v26 = vld [vmem:[%s8055_s8 + $0x358] sm:$0xf]  ;;  %v5172_v31 = vor.u32 %v5828_v24, %v5169_v25  ;;  %v5493_v24 = vld [vmem:[%s8055_s8 + $0x624] sm:$0xf0] }
 0x2fd   :  { %3520 = vmatpush.bf16.msra.mxu3 %v4852_v34  ;;  %3533 = vmatpush.bf16.msrb.mxu0 %v4856_v35  ;;  %v5176_v34 = vor.u32 %v5841_v27, %v5175_v26  ;;  %v5180_v35 = vor.u32 %v5829_v28, %v5177_v29  ;;  %v4780_v26 = vor.u32 %v5729_v12, %v4777_v13  ;;  %v5383_v29 = vld [vmem:[%s8055_s8 + $0x4f0] sm:$0xf] }
 0x2fe   :  { %3546 = vmatpush.bf16.msrb.mxu2 %v4860_v39  ;;  %3559 = vmatpush.bf16.msrb.mxu1 %v4864_v40  ;;  %v5816_v39 = vld [vmem:[%s8055_s8 + $0x2f0] sm:$0xf0]  ;;  %v5484_v27 = vor.u32 %v5917_v15, %v5483_v14  ;;  %v4983_v13 = vld [vmem:[%s8055_s8 + $0x1d0] sm:$0xf] }
 0x2ff   :  { %v5804_v40 = vld [vmem:[%s8055_s8 + $0x294] sm:$0xf]  ;;  %v5076_v45 = vor.u32 %v5816_v39, %v5075_v38  ;;  %v5393_v38 = vld [vmem:[%s8055_s8 + $0x55c] sm:$0xf0] }
 0x300   :  { %v5080_v46 = vor.u32 %v5804_v40, %v5077_v61  ;;  %v5283_v61 = vld [vmem:[%s8055_s8 + $0x428] sm:$0xf]  ;;  %v5396_v43 = vor.u32 %v5881_v37, %v5393_v38  ;;  %v5792_v14 = vld [vmem:[%s8055_s8 + $0x230] sm:$0xf0] }
 0x301   :  { %3521 = vmatpush.bf16.msra.mxu3 %v4752_v49  ;;  %3534 = vmatpush.bf16.msrb.mxu0 %v4756_v50  ;;  %v4975_v49 = vld [vmem:[%s8055_s8 + $0x1c8] sm:$0xf]  ;;  %v5791_v50 = vld [vmem:[%s8055_s8 + $0x228] sm:$0xf0] }
 0x302   :  { %3547 = vmatpush.bf16.msrb.mxu2 %v4760_v54  ;;  %3560 = vmatpush.bf16.msrb.mxu1 %v4764_v55  ;;  %v4972_v54 = vor.u32 %v5778_v47, %v4969_v48  ;;  %v4867_v55 = vld [vmem:[%s8055_s8 + $0xf8] sm:$0xf]  ;;  %v5868_v47 = vld [vmem:[%s8055_s8 + $0x490] sm:$0xf0] }
 0x303   :  { %v5856_v48 = vld [vmem:[%s8055_s8 + $0x434] sm:$0xf] }
 0x304   :  { %3522 = vmatmul.bf16.vlgmr.msra.gmra.mxu3 %v7158_v22  ;;  %3535 = vmatmul.bf16.vlgmr.msrb.gmra.mxu0 %v7158_v22 }
 0x305   :  { %3566 = vmatpush.bf16.msrb.mxu3 %v5468_v56  ;;  %3579 = vmatpush.bf16.msra.mxu0 %v5472_v57  ;;  %v5765_v56 = vld [vmem:[%s8055_s8 + $0x158] sm:$0xf0]  ;;  %v4976_v57 = vor.u32 %v5791_v50, %v4975_v49  ;;  %v5293_v49 = vld [vmem:[%s8055_s8 + $0x494] sm:$0xf0] }
 0x306   :  { %3592 = vmatpush.bf16.msra.mxu2 %v5476_v60  ;;  %3605 = vmatpush.bf16.msra.mxu1 %v5480_v62  ;;  %v4869_v60 = vld [vmem:[%s8055_s8 + $0x15c] sm:$0xf0]  ;;  %v4868_v3 = vor.u32 %v5765_v56, %v4867_v55  ;;  %v5296_v55 = vor.u32 %v5856_v48, %v5293_v49  ;;  %v5830_v56 = vld [vmem:[%s8055_s8 + $0x364] sm:$0xf]  ;;  %v5919_v48 = vld [vmem:[%s8055_s8 + $0x628] sm:$0xf0] }
 0x307   :  { %3548 = vmatmul.bf16.vlgmr.msrb.gmra.mxu2 %v7158_v22  ;;  %3561 = vmatmul.bf16.vlgmr.msrb.gmra.mxu1 %v7158_v22  ;;  %v4875_v62 = vld [vmem:[%s8055_s8 + $0x100] sm:$0xf]  ;;  %v4872_v4 = vor.u32 %v5753_v59, %v4869_v60  ;;  %v5843_v59 = vld [vmem:[%s8055_s8 + $0x3c8] sm:$0xf0] }
 0x308   :  { %v4876_v8 = vor.u32 %v5766_v63, %v4875_v62  ;;  %v5831_v60 = vld [vmem:[%s8055_s8 + $0x36c] sm:$0xf]  ;;  %v5193_v62 = vld [vmem:[%s8055_s8 + $0x3cc] sm:$0xf0] }
 0x309   :  { %3567 = vmatpush.bf16.msrb.mxu3 %v5368_v5  ;;  %3580 = vmatpush.bf16.msra.mxu0 %v5372_v6  ;;  %v5740_v5 = vld [vmem:[%s8055_s8 + $0x90] sm:$0xf0]  ;;  %v5907_v49 = vld [vmem:[%s8055_s8 + $0x5cc] sm:$0xf] }
 0x30a   :  { %3593 = vmatpush.bf16.msra.mxu2 %v5376_v9  ;;  %3606 = vmatpush.bf16.msra.mxu1 %v5380_v10  ;;  %v5728_v6 = vld [vmem:[%s8055_s8 + $0x34] sm:$0xf]  ;;  %v4880_v9 = vor.u32 %v5754_v0, %v4877_v1  ;;  %v4775_v10 = vld [vmem:[%s8055_s8 + $0x38] sm:$0xf]  ;;  %v4768_v19 = vor.u32 %v5740_v5, %v4767_v2  ;;  %v5817_v2 = vld [vmem:[%s8055_s8 + $0x2f8] sm:$0xf0] }
 0x30b   :  { %v4772_v20 = vor.u32 %v5728_v6, %v4769_v7  ;;  %v4776_v25 = vor.u32 %v5741_v11, %v4775_v10  ;;  %v5083_v1 = vld [vmem:[%s8055_s8 + $0x298] sm:$0xf]  ;;  %v5805_v5 = vld [vmem:[%s8055_s8 + $0x29c] sm:$0xf]  ;;  %v5085_v6 = vld [vmem:[%s8055_s8 + $0x2fc] sm:$0xf0] }
 0x30c   :  { %v5091_v7 = vld [vmem:[%s8055_s8 + $0x2a0] sm:$0xf]  ;;  %v5093_v10 = vld [vmem:[%s8055_s8 + $0x304] sm:$0xf0]  ;;  %v5084_v11 = vor.u32 %v5817_v2, %v5083_v1  ;;  %v5088_v12 = vor.u32 %v5805_v5, %v5085_v6  ;;  %v5882_v2 = vld [vmem:[%s8055_s8 + $0x504] sm:$0xf] }
 0x30d   :  { %3568 = vmatpush.bf16.msrb.mxu3 %v5268_v17  ;;  %3581 = vmatpush.bf16.msra.mxu0 %v5272_v18  ;;  %v5485_v17 = vld [vmem:[%s8055_s8 + $0x61c] sm:$0xf0]  ;;  %v5895_v5 = vld [vmem:[%s8055_s8 + $0x568] sm:$0xf0] }
 0x30e   :  { %3594 = vmatpush.bf16.msra.mxu2 %v5276_v21  ;;  %3607 = vmatpush.bf16.msra.mxu1 %v5280_v23  ;;  %v5491_v18 = vld [vmem:[%s8055_s8 + $0x5c0] sm:$0xf]  ;;  %v5918_v21 = vld [vmem:[%s8055_s8 + $0x620] sm:$0xf0]  ;;  %v5488_v28 = vor.u32 %v5905_v16, %v5485_v17  ;;  %v5780_v17 = vld [vmem:[%s8055_s8 + $0x1d4] sm:$0xf] }
 0x30f   :  { %v5906_v23 = vld [vmem:[%s8055_s8 + $0x5c4] sm:$0xf]  ;;  %v5883_v6 = vld [vmem:[%s8055_s8 + $0x50c] sm:$0xf] }
 0x310   :  { %v5496_v32 = vor.u32 %v5906_v23, %v5493_v24  ;;  %v4993_v23 = vld [vmem:[%s8055_s8 + $0x23c] sm:$0xf0]  ;;  %v4984_v24 = vor.u32 %v5792_v14, %v4983_v13  ;;  %v5857_v14 = vld [vmem:[%s8055_s8 + $0x43c] sm:$0xf] }
 0x311   :  { %3569 = vmatpush.bf16.msrb.mxu3 %v5168_v30  ;;  %3582 = vmatpush.bf16.msra.mxu0 %v5172_v31  ;;  %v5892_v30 = vld [vmem:[%s8055_s8 + $0x550] sm:$0xf0]  ;;  %v5492_v31 = vor.u32 %v5918_v21, %v5491_v18  ;;  %v4985_v18 = vld [vmem:[%s8055_s8 + $0x234] sm:$0xf0]  ;;  %v5781_v21 = vld [vmem:[%s8055_s8 + $0x1dc] sm:$0xf] }
 0x312   :  { %3595 = vmatpush.bf16.msra.mxu2 %v5176_v34  ;;  %3608 = vmatpush.bf16.msra.mxu1 %v5180_v35  ;;  %v5385_v34 = vld [vmem:[%s8055_s8 + $0x554] sm:$0xf0]  ;;  %v5384_v39 = vor.u32 %v5892_v30, %v5383_v29  ;;  %v4996_v29 = vor.u32 %v5781_v21, %v4993_v23  ;;  %v5755_v30 = vld [vmem:[%s8055_s8 + $0x10c] sm:$0xf]  ;;  %v5199_v23 = vld [vmem:[%s8055_s8 + $0x370] sm:$0xf] }
 0x313   :  { %v5391_v35 = vld [vmem:[%s8055_s8 + $0x4f8] sm:$0xf]  ;;  %v5388_v40 = vor.u32 %v5880_v33, %v5385_v34  ;;  %v5768_v33 = vld [vmem:[%s8055_s8 + $0x170] sm:$0xf0] }
 0x314   :  { %v5756_v34 = vld [vmem:[%s8055_s8 + $0x114] sm:$0xf] }
 0x315   :  { %3570 = vmatpush.bf16.msrb.mxu3 %v5068_v41  ;;  %3583 = vmatpush.bf16.msra.mxu0 %v5072_v42  ;;  %v5867_v41 = vld [vmem:[%s8055_s8 + $0x488] sm:$0xf0]  ;;  %v5392_v42 = vor.u32 %v5893_v36, %v5391_v35  ;;  %v4893_v35 = vld [vmem:[%s8055_s8 + $0x174] sm:$0xf0]  ;;  %v4783_v36 = vld [vmem:[%s8055_s8 + $0x40] sm:$0xf] }
 0x316   :  { %3596 = vmatpush.bf16.msra.mxu2 %v5076_v45  ;;  %3609 = vmatpush.bf16.msra.mxu1 %v5080_v46  ;;  %v5285_v45 = vld [vmem:[%s8055_s8 + $0x48c] sm:$0xf0]  ;;  %v5284_v50 = vor.u32 %v5867_v41, %v5283_v61  ;;  %v4785_v61 = vld [vmem:[%s8055_s8 + $0xa4] sm:$0xf0] }
 0x317   :  { %v5291_v46 = vld [vmem:[%s8055_s8 + $0x430] sm:$0xf]  ;;  %v5288_v51 = vor.u32 %v5855_v44, %v5285_v45  ;;  %v5743_v44 = vld [vmem:[%s8055_s8 + $0xa8] sm:$0xf0] }
 0x318   :  { %v5731_v45 = vld [vmem:[%s8055_s8 + $0x4c] sm:$0xf] }
 0x319   :  { %3571 = vmatpush.bf16.msrb.mxu3 %v4968_v53  ;;  %3584 = vmatpush.bf16.msra.mxu0 %v4972_v54  ;;  %v5842_v53 = vld [vmem:[%s8055_s8 + $0x3c0] sm:$0xf0]  ;;  %v5292_v54 = vor.u32 %v5868_v47, %v5291_v46  ;;  %v4793_v46 = vld [vmem:[%s8055_s8 + $0xac] sm:$0xf0]  ;;  %v5499_v47 = vld [vmem:[%s8055_s8 + $0x5c8] sm:$0xf] }
 0x31a   :  { %3597 = vmatpush.bf16.msra.mxu2 %v4976_v57  ;;  %3610 = vmatpush.bf16.msra.mxu1 %v4980_v58  ;;  %v5185_v57 = vld [vmem:[%s8055_s8 + $0x3c4] sm:$0xf0]  ;;  %v5184_v63 = vor.u32 %v5842_v53, %v5183_v52 }
 0x31b   :  { %v5191_v58 = vld [vmem:[%s8055_s8 + $0x368] sm:$0xf]  ;;  %v5188_v0 = vor.u32 %v5830_v56, %v5185_v57  ;;  %v5509_v56 = vld [vmem:[%s8055_s8 + $0x634] sm:$0xf0] }
 0x31d   :  { %3572 = vmatpush.bf16.msrb.mxu3 %v4868_v3  ;;  %3585 = vmatpush.bf16.msra.mxu0 %v4872_v4  ;;  %v5192_v3 = vor.u32 %v5843_v59, %v5191_v58  ;;  %v5196_v4 = vor.u32 %v5831_v60, %v5193_v62  ;;  %v4796_v58 = vor.u32 %v5731_v45, %v4793_v46  ;;  %v5399_v62 = vld [vmem:[%s8055_s8 + $0x500] sm:$0xf] }
 0x31e   :  { %3598 = vmatpush.bf16.msra.mxu2 %v4876_v8  ;;  %3611 = vmatpush.bf16.msra.mxu1 %v4880_v9  ;;  %v5818_v8 = vld [vmem:[%s8055_s8 + $0x300] sm:$0xf0]  ;;  %v5500_v59 = vor.u32 %v5919_v48, %v5499_v47  ;;  %v4999_v46 = vld [vmem:[%s8055_s8 + $0x1e0] sm:$0xf] }
 0x31f   :  { %v5806_v9 = vld [vmem:[%s8055_s8 + $0x2a4] sm:$0xf]  ;;  %v5092_v15 = vor.u32 %v5818_v8, %v5091_v7  ;;  %v5409_v7 = vld [vmem:[%s8055_s8 + $0x56c] sm:$0xf0] }
 0x320   :  { %v5096_v16 = vor.u32 %v5806_v9, %v5093_v10  ;;  %v5299_v10 = vld [vmem:[%s8055_s8 + $0x438] sm:$0xf]  ;;  %v5412_v13 = vor.u32 %v5883_v6, %v5409_v7  ;;  %v5794_v47 = vld [vmem:[%s8055_s8 + $0x240] sm:$0xf0]  ;;  %v4799_v7 = vld [vmem:[%s8055_s8 + $0x50] sm:$0xf] }
 0x321   :  { %3573 = vmatpush.bf16.msrb.mxu3 %v4768_v19  ;;  %3586 = vmatpush.bf16.msra.mxu0 %v4772_v20  ;;  %v4991_v19 = vld [vmem:[%s8055_s8 + $0x1d8] sm:$0xf]  ;;  %v5793_v20 = vld [vmem:[%s8055_s8 + $0x238] sm:$0xf0] }
 0x322   :  { %3599 = vmatpush.bf16.msra.mxu2 %v4776_v25  ;;  %3612 = vmatpush.bf16.msra.mxu1 %v4780_v26  ;;  %v4988_v25 = vor.u32 %v5780_v17, %v4985_v18  ;;  %v4883_v26 = vld [vmem:[%s8055_s8 + $0x108] sm:$0xf]  ;;  %v5870_v17 = vld [vmem:[%s8055_s8 + $0x4a0] sm:$0xf0] }
 0x323   :  { %v5858_v18 = vld [vmem:[%s8055_s8 + $0x444] sm:$0xf] }
 0x324   :  { %3574 = vmatmul.bf16.vlgmr.msrb.gmra.mxu3 %v7158_v22  ;;  %3587 = vmatmul.bf16.vlgmr.msra.gmra.mxu0 %v7158_v22 }
 0x325   :  { %3618 = vmatpush.bf16.msra.mxu3 %v5484_v27  ;;  %3631 = vmatpush.bf16.msrb.mxu0 %v5488_v28  ;;  %v5767_v27 = vld [vmem:[%s8055_s8 + $0x168] sm:$0xf0]  ;;  %v4992_v28 = vor.u32 %v5793_v20, %v4991_v19  ;;  %v5309_v19 = vld [vmem:[%s8055_s8 + $0x4a4] sm:$0xf0] }
 0x326   :  { %3644 = vmatpush.bf16.msrb.mxu2 %v5492_v31  ;;  %3657 = vmatpush.bf16.msrb.mxu1 %v5496_v32  ;;  %v4885_v31 = vld [vmem:[%s8055_s8 + $0x16c] sm:$0xf0]  ;;  %v4884_v37 = vor.u32 %v5767_v27, %v4883_v26  ;;  %v5312_v26 = vor.u32 %v5858_v18, %v5309_v19  ;;  %v5832_v27 = vld [vmem:[%s8055_s8 + $0x374] sm:$0xf]  ;;  %v5921_v18 = vld [vmem:[%s8055_s8 + $0x638] sm:$0xf0] }
 0x327   :  { %3600 = vmatmul.bf16.vlgmr.msra.gmra.mxu2 %v7158_v22  ;;  %3613 = vmatmul.bf16.vlgmr.msra.gmra.mxu1 %v7158_v22  ;;  %v4891_v32 = vld [vmem:[%s8055_s8 + $0x110] sm:$0xf]  ;;  %v4888_v38 = vor.u32 %v5755_v30, %v4885_v31  ;;  %v5845_v30 = vld [vmem:[%s8055_s8 + $0x3d8] sm:$0xf0] }
 0x328   :  { %v4892_v41 = vor.u32 %v5768_v33, %v4891_v32  ;;  %v5833_v31 = vld [vmem:[%s8055_s8 + $0x37c] sm:$0xf]  ;;  %v5209_v32 = vld [vmem:[%s8055_s8 + $0x3dc] sm:$0xf0] }
 0x329   :  { %3619 = vmatpush.bf16.msra.mxu3 %v5384_v39  ;;  %3632 = vmatpush.bf16.msrb.mxu0 %v5388_v40  ;;  %v5742_v39 = vld [vmem:[%s8055_s8 + $0xa0] sm:$0xf0] }
 0x32a   :  { %3645 = vmatpush.bf16.msrb.mxu2 %v5392_v42  ;;  %3658 = vmatpush.bf16.msrb.mxu1 %v5396_v43  ;;  %v5730_v40 = vld [vmem:[%s8055_s8 + $0x44] sm:$0xf]  ;;  %v4896_v42 = vor.u32 %v5756_v34, %v4893_v35  ;;  %v4791_v43 = vld [vmem:[%s8055_s8 + $0x48] sm:$0xf]  ;;  %v4784_v52 = vor.u32 %v5742_v39, %v4783_v36  ;;  %v5819_v36 = vld [vmem:[%s8055_s8 + $0x308] sm:$0xf0] }
 0x32b   :  { %v4788_v53 = vor.u32 %v5730_v40, %v4785_v61  ;;  %v4792_v57 = vor.u32 %v5743_v44, %v4791_v43  ;;  %v5099_v35 = vld [vmem:[%s8055_s8 + $0x2a8] sm:$0xf]  ;;  %v5807_v39 = vld [vmem:[%s8055_s8 + $0x2ac] sm:$0xf]  ;;  %v5101_v40 = vld [vmem:[%s8055_s8 + $0x30c] sm:$0xf0] }
 0x32c   :  { %v5107_v61 = vld [vmem:[%s8055_s8 + $0x2b0] sm:$0xf]  ;;  %v5109_v43 = vld [vmem:[%s8055_s8 + $0x314] sm:$0xf0]  ;;  %v5100_v44 = vor.u32 %v5819_v36, %v5099_v35  ;;  %v5104_v45 = vor.u32 %v5807_v39, %v5101_v40  ;;  %v5215_v36 = vld [vmem:[%s8055_s8 + $0x380] sm:$0xf] }
 0x32d   :  { %3620 = vmatpush.bf16.msra.mxu3 %v5284_v50  ;;  %3633 = vmatpush.bf16.msrb.mxu0 %v5288_v51  ;;  %v5501_v50 = vld [vmem:[%s8055_s8 + $0x62c] sm:$0xf0] }
 0x32e   :  { %3646 = vmatpush.bf16.msrb.mxu2 %v5292_v54  ;;  %3659 = vmatpush.bf16.msrb.mxu1 %v5296_v55  ;;  %v5507_v51 = vld [vmem:[%s8055_s8 + $0x5d0] sm:$0xf]  ;;  %v5920_v54 = vld [vmem:[%s8055_s8 + $0x630] sm:$0xf0]  ;;  %v5504_v60 = vor.u32 %v5907_v49, %v5501_v50  ;;  %v5782_v50 = vld [vmem:[%s8055_s8 + $0x1e4] sm:$0xf] }
 0x32f   :  { %v5908_v55 = vld [vmem:[%s8055_s8 + $0x5d4] sm:$0xf] }
 0x330   :  { %v5512_v1 = vor.u32 %v5908_v55, %v5509_v56  ;;  %v5009_v55 = vld [vmem:[%s8055_s8 + $0x24c] sm:$0xf0]  ;;  %v5000_v56 = vor.u32 %v5794_v47, %v4999_v46 }
 0x331   :  { %3621 = vmatpush.bf16.msra.mxu3 %v5184_v63  ;;  %3634 = vmatpush.bf16.msrb.mxu0 %v5188_v0  ;;  %v5894_v63 = vld [vmem:[%s8055_s8 + $0x560] sm:$0xf0]  ;;  %v5508_v0 = vor.u32 %v5920_v54, %v5507_v51  ;;  %v5001_v51 = vld [vmem:[%s8055_s8 + $0x244] sm:$0xf0]  ;;  %v5783_v54 = vld [vmem:[%s8055_s8 + $0x1ec] sm:$0xf] }
 0x332   :  { %3647 = vmatpush.bf16.msrb.mxu2 %v5192_v3  ;;  %3660 = vmatpush.bf16.msrb.mxu1 %v5196_v4  ;;  %v5401_v3 = vld [vmem:[%s8055_s8 + $0x564] sm:$0xf0]  ;;  %v5400_v8 = vor.u32 %v5894_v63, %v5399_v62  ;;  %v5012_v62 = vor.u32 %v5783_v54, %v5009_v55  ;;  %v5757_v63 = vld [vmem:[%s8055_s8 + $0x11c] sm:$0xf]  ;;  %v5015_v55 = vld [vmem:[%s8055_s8 + $0x1f0] sm:$0xf] }
 0x333   :  { %v5407_v4 = vld [vmem:[%s8055_s8 + $0x508] sm:$0xf]  ;;  %v5404_v9 = vor.u32 %v5882_v2, %v5401_v3  ;;  %v5770_v2 = vld [vmem:[%s8055_s8 + $0x180] sm:$0xf0] }
 0x334   :  { %v5758_v3 = vld [vmem:[%s8055_s8 + $0x124] sm:$0xf] }
 0x335   :  { %3622 = vmatpush.bf16.msra.mxu3 %v5084_v11  ;;  %3635 = vmatpush.bf16.msrb.mxu0 %v5088_v12  ;;  %v5869_v11 = vld [vmem:[%s8055_s8 + $0x498] sm:$0xf0]  ;;  %v5408_v12 = vor.u32 %v5895_v5, %v5407_v4  ;;  %v4909_v4 = vld [vmem:[%s8055_s8 + $0x184] sm:$0xf0] }
 0x336   :  { %3648 = vmatpush.bf16.msrb.mxu2 %v5092_v15  ;;  %3661 = vmatpush.bf16.msrb.mxu1 %v5096_v16  ;;  %v5301_v15 = vld [vmem:[%s8055_s8 + $0x49c] sm:$0xf0]  ;;  %v5300_v20 = vor.u32 %v5869_v11, %v5299_v10  ;;  %v4912_v10 = vor.u32 %v5758_v3, %v4909_v4  ;;  %v5732_v11 = vld [vmem:[%s8055_s8 + $0x54] sm:$0xf] }
 0x337   :  { %v5307_v16 = vld [vmem:[%s8055_s8 + $0x440] sm:$0xf]  ;;  %v5304_v21 = vor.u32 %v5857_v14, %v5301_v15  ;;  %v5745_v14 = vld [vmem:[%s8055_s8 + $0xb8] sm:$0xf0] }
 0x338   :  { %v5733_v15 = vld [vmem:[%s8055_s8 + $0x5c] sm:$0xf] }
 0x339   :  { %3623 = vmatpush.bf16.msra.mxu3 %v4984_v24  ;;  %3636 = vmatpush.bf16.msrb.mxu0 %v4988_v25  ;;  %v5844_v24 = vld [vmem:[%s8055_s8 + $0x3d0] sm:$0xf0]  ;;  %v5308_v25 = vor.u32 %v5870_v17, %v5307_v16  ;;  %v4809_v16 = vld [vmem:[%s8055_s8 + $0xbc] sm:$0xf0]  ;;  %v5515_v17 = vld [vmem:[%s8055_s8 + $0x5d8] sm:$0xf] }
 0x33a   :  { %3649 = vmatpush.bf16.msrb.mxu2 %v4992_v28  ;;  %3662 = vmatpush.bf16.msrb.mxu1 %v4996_v29  ;;  %v5201_v28 = vld [vmem:[%s8055_s8 + $0x3d4] sm:$0xf0]  ;;  %v5200_v33 = vor.u32 %v5844_v24, %v5199_v23  ;;  %v4812_v23 = vor.u32 %v5733_v15, %v4809_v16  ;;  %v5516_v24 = vor.u32 %v5921_v18, %v5515_v17 }
 0x33b   :  { %v5207_v29 = vld [vmem:[%s8055_s8 + $0x378] sm:$0xf]  ;;  %v5204_v34 = vor.u32 %v5832_v27, %v5201_v28  ;;  %v7939_v28 = vld [vmem:[%s8056_s9] sm:$0xff] }
 0x33c   :  { %v2358_v15 = vperm.slane %v7939_v28, 6 }
 0x33d   :  { %3624 = vmatpush.bf16.msra.mxu3 %v4884_v37  ;;  %3637 = vmatpush.bf16.msrb.mxu0 %v4888_v38  ;;  %v5208_v37 = vor.u32 %v5845_v30, %v5207_v29  ;;  %v5212_v38 = vor.u32 %v5833_v31, %v5209_v32  ;;  %v5315_v29 = vld [vmem:[%s8055_s8 + $0x448] sm:$0xf]  ;;  %v5871_v30 = vld [vmem:[%s8055_s8 + $0x4a8] sm:$0xf0]  ;;  %v2353_v31 = vperm.slane %v7939_v28, 1 }
 0x33e   :  { %3650 = vmatpush.bf16.msrb.mxu2 %v4892_v41  ;;  %3663 = vmatpush.bf16.msrb.mxu1 %v4896_v42  ;;  %v5820_v41 = vld [vmem:[%s8055_s8 + $0x310] sm:$0xf0] }
 0x33f   :  { %v5808_v42 = vld [vmem:[%s8055_s8 + $0x2b4] sm:$0xf]  ;;  %v5108_v48 = vor.u32 %v5820_v41, %v5107_v61  ;;  %v2354_v61 = vperm.slane %v7939_v28, 2 }
 0x340   :  { %v5112_v49 = vor.u32 %v5808_v42, %v5109_v43  ;;  %v5115_v43 = vld [vmem:[%s8055_s8 + $0x2b8] sm:$0xf] }
 0x341   :  { %3625 = vmatpush.bf16.msra.mxu3 %v4784_v52  ;;  %3638 = vmatpush.bf16.msrb.mxu0 %v4788_v53  ;;  %v5007_v52 = vld [vmem:[%s8055_s8 + $0x1e8] sm:$0xf]  ;;  %v5795_v53 = vld [vmem:[%s8055_s8 + $0x248] sm:$0xf0] }
 0x342   :  { %3651 = vmatpush.bf16.msrb.mxu2 %v4792_v57  ;;  %3664 = vmatpush.bf16.msrb.mxu1 %v4796_v58  ;;  %v5004_v57 = vor.u32 %v5782_v50, %v5001_v51  ;;  %v4899_v58 = vld [vmem:[%s8055_s8 + $0x118] sm:$0xf] }
 0x344   :  { %3626 = vmatmul.bf16.vlgmr.msra.gmra.mxu3 %v7158_v22  ;;  %3639 = vmatmul.bf16.vlgmr.msrb.gmra.mxu0 %v7158_v22 }
 0x345   :  { %3670 = vmatpush.bf16.msrb.mxu3 %v5500_v59  ;;  %3683 = vmatpush.bf16.msra.mxu0 %v5504_v60  ;;  %v5769_v59 = vld [vmem:[%s8055_s8 + $0x178] sm:$0xf0]  ;;  %v5008_v60 = vor.u32 %v5795_v53, %v5007_v52 }
 0x346   :  { %3696 = vmatpush.bf16.msra.mxu2 %v5508_v0  ;;  %3709 = vmatpush.bf16.msra.mxu1 %v5512_v1  ;;  %v4901_v0 = vld [vmem:[%s8055_s8 + $0x17c] sm:$0xf0]  ;;  %v4900_v5 = vor.u32 %v5769_v59, %v4899_v58 }
 0x347   :  { %3652 = vmatmul.bf16.vlgmr.msrb.gmra.mxu2 %v7158_v22  ;;  %3665 = vmatmul.bf16.vlgmr.msrb.gmra.mxu1 %v7158_v22  ;;  %v4907_v1 = vld [vmem:[%s8055_s8 + $0x120] sm:$0xf]  ;;  %v4904_v6 = vor.u32 %v5757_v63, %v4901_v0 }
 0x349   :  { %3671 = vmatpush.bf16.msrb.mxu3 %v5400_v8  ;;  %3684 = vmatpush.bf16.msra.mxu0 %v5404_v9  ;;  %v5744_v8 = vld [vmem:[%s8055_s8 + $0xb0] sm:$0xf0]  ;;  %v4908_v9 = vor.u32 %v5770_v2, %v4907_v1  ;;  %v4915_v1 = vld [vmem:[%s8055_s8 + $0x128] sm:$0xf]  ;;  %v5771_v2 = vld [vmem:[%s8055_s8 + $0x188] sm:$0xf0] }
 0x34a   :  { %3697 = vmatpush.bf16.msra.mxu2 %v5408_v12  ;;  %3710 = vmatpush.bf16.msra.mxu1 %v5412_v13  ;;  %v4801_v12 = vld [vmem:[%s8055_s8 + $0xb4] sm:$0xf0]  ;;  %v4800_v19 = vor.u32 %v5744_v8, %v4799_v7  ;;  %v2359_v7 = vperm.slane %v7939_v28, 7  ;;  %v4916_v8 = vor.u32 %v5771_v2, %v4915_v1 }
 0x34b   :  { %v4807_v13 = vld [vmem:[%s8055_s8 + $0x58] sm:$0xf] }
 0x34d   :  { %3672 = vmatpush.bf16.msrb.mxu3 %v5300_v20  ;;  %3685 = vmatpush.bf16.msra.mxu0 %v5304_v21  ;;  %v4804_v20 = vor.u32 %v5732_v11, %v4801_v12  ;;  %v4808_v21 = vor.u32 %v5745_v14, %v4807_v13  ;;  %v5746_v11 = vld [vmem:[%s8055_s8 + $0xc0] sm:$0xf0]  ;;  %v2356_v12 = vperm.slane %v7939_v28, 4 }
 0x34e   :  { %3698 = vmatpush.bf16.msra.mxu2 %v5308_v25  ;;  %3711 = vmatpush.bf16.msra.mxu1 %v5312_v26  ;;  %v5415_v25 = vld [vmem:[%s8055_s8 + $0x510] sm:$0xf]  ;;  %v5896_v26 = vld [vmem:[%s8055_s8 + $0x570] sm:$0xf0] }
 0x34f   :  { %v5416_v27 = vor.u32 %v5896_v26, %v5415_v25 }
 0x351   :  { %3673 = vmatpush.bf16.msrb.mxu3 %v5200_v33  ;;  %3686 = vmatpush.bf16.msra.mxu0 %v5204_v34  ;;  %v2355_v33 = vperm.slane %v7939_v28, 3  ;;  %v5316_v34 = vor.u32 %v5871_v30, %v5315_v29 }
 0x352   :  { %3699 = vmatpush.bf16.msra.mxu2 %v5208_v37  ;;  %3712 = vmatpush.bf16.msra.mxu1 %v5212_v38  ;;  %v5846_v37 = vld [vmem:[%s8055_s8 + $0x3e0] sm:$0xf0]  ;;  %v2352_v38 = vperm.slane %v7939_v28, 0 }
 0x353   :  { %v5216_v41 = vor.u32 %v5846_v37, %v5215_v36  ;;  %v2345_v36 = vld [vmem:[%s8056_s9 + $0x8] sm:$0xff] }
 0x354   :  { %v2361_v37 = vperm.slane %v2345_v36, 1  ;;  %v2364_v2 = vperm.slane %v2345_v36, 4 }
 0x355   :  { %3674 = vmatpush.bf16.msrb.mxu3 %v5100_v44  ;;  %3687 = vmatpush.bf16.msra.mxu0 %v5104_v45  ;;  %v5821_v44 = vld [vmem:[%s8055_s8 + $0x318] sm:$0xf0] }
 0x356   :  { %3700 = vmatpush.bf16.msra.mxu2 %v5108_v48  ;;  %3713 = vmatpush.bf16.msra.mxu1 %v5112_v49  ;;  %v5116_v51 = vor.u32 %v5821_v44, %v5115_v43 }
 0x359   :  { %3675 = vmatpush.bf16.msrb.mxu3 %v5000_v56  ;;  %3688 = vmatpush.bf16.msra.mxu0 %v5004_v57  ;;  %v5796_v56 = vld [vmem:[%s8055_s8 + $0x250] sm:$0xf0] }
 0x35a   :  { %3701 = vmatpush.bf16.msra.mxu2 %v5008_v60  ;;  %3714 = vmatpush.bf16.msra.mxu1 %v5012_v62  ;;  %v5016_v60 = vor.u32 %v5796_v56, %v5015_v55 }
 0x35d   :  { %3676 = vmatpush.bf16.msrb.mxu3 %v4900_v5  ;;  %3689 = vmatpush.bf16.msra.mxu0 %v4904_v6  ;;  %v2357_v5 = vperm.slane %v7939_v28, 5 }
 0x35e   :  { %3702 = vmatpush.bf16.msra.mxu2 %v4908_v9  ;;  %3715 = vmatpush.bf16.msra.mxu1 %v4912_v10  ;;  %v4815_v10 = vld [vmem:[%s8055_s8 + $0x60] sm:$0xf] }
 0x35f   :  { %v4816_v16 = vor.u32 %v5746_v11, %v4815_v10 }
 0x360   :  { %v3432_v32 = vpop.f32.mrf.mxu0 }
 0x361   :  { %3677 = vmatpush.bf16.msrb.mxu3 %v4800_v19  ;;  %3690 = vmatpush.bf16.msra.mxu0 %v4804_v20  ;;  %v3458_v35 = vpop.f32.mrf.mxu1  ;;  %v3433_v39 = vadd.f32 %v3432_v32, %v2353_v31 }
 0x362   :  { %3703 = vmatpush.bf16.msra.mxu2 %v4808_v21  ;;  %3716 = vmatpush.bf16.msra.mxu1 %v4812_v23  ;;  %v3459_v40 = vadd.f32 %v3458_v35, %v2355_v33 }
 0x363   :  { %v3736_v47 = vmax.f32 %v3433_v39, 0.0  ;;  %v2363_v39 = vperm.slane %v2345_v36, 3 }
 0x364   :  { %3678 = vmatmul.bf16.vlgmr.msrb.gmra.mxu3 %v7158_v22  ;;  %3691 = vmatmul.bf16.vlgmr.msra.gmra.mxu0 %v7158_v22  ;;  %v3738_v48 = vmax.f32 %v3459_v40, 0.0  ;;  %v2360_v40 = vperm.slane %v2345_v36, 0 }
 0x365   :  { %3722 = vmatpush.bf16.msra.mxu3 %v5516_v24  ;;  %3704 = vmatmul.bf16.vlgmr.msra.gmra.mxu2 %v7158_v22  ;;  %v3784_v57 = vrot.slane %v3736_v47, 6 }
 0x366   :  { %3717 = vmatmul.bf16.vlgmr.msra.gmra.mxu1 %v7158_v22  ;;  %v3419_v42 = vpop.f32.mrf.mxu3  ;;  %v3786_v58 = vrot.slane %v3738_v48, 2 }
 0x367   :  { %v3420_v45 = vadd.f32 %v3419_v42, %v2352_v38  ;;  %v3445_v46 = vpop.f32.mrf.mxu2  ;;  %v2362_v42 = vperm.slane %v2345_v36, 2 }
 0x368   :  { %v3446_v49 = vadd.f32 %v3445_v46, %v2354_v61  ;;  %v3434_v50 = vpop.f32.mrf.mxu0 }
 0x369   :  { %3723 = vmatpush.bf16.msra.mxu3 %v5416_v27  ;;  %v3460_v52 = vpop.f32.mrf.mxu1  ;;  %v3735_v53 = vmax.f32 %v3420_v45, 0.0 }
 0x36a   :  { %v3737_v54 = vmax.f32 %v3446_v49, 0.0 }
 0x36b   :  { %v3802_v62 = vsel %vm2117_vm1, %v3735_v53, %v3784_v57 }
 0x36c   :  { %v3785_v59 = vrot.slane %v3737_v54, 4 }
 0x36d   :  { %3724 = vmatpush.bf16.msra.mxu3 %v5316_v34 }
 0x36e   :  { %v3804_v63 = vsel %vm3803_vm4, %v3785_v59, %v3786_v58  ;;  %v3421_v0 = vpop.f32.mrf.mxu3 }
 0x36f   :  { %v3806_v3 = vsel %vm3805_vm5, %v3802_v62, %v3804_v63  ;;  %v3447_v4 = vpop.f32.mrf.mxu2  ;;  %v2365_v62 = vperm.slane %v2345_v36, 5  ;;  %v2367_v0 = vperm.slane %v2345_v36, 7 }
 0x370   :  { %3828 = vst [vmem:[%s8057_s10] sm:$0xff] %v3806_v3  ;;  %v3484_v6 = vpop.f32.mrf.mxu0 }
 0x371   :  { %3725 = vmatpush.bf16.msra.mxu3 %v5216_v41  ;;  %v3510_v9 = vpop.f32.mrf.mxu1  ;;  %v3485_v13 = vadd.f32 %v3484_v6, %v2357_v5  ;;  %v2366_v5 = vperm.slane %v2345_v36, 6 }
 0x372   :  { %v3511_v14 = vadd.f32 %v3510_v9, %v2359_v7 }
 0x373   :  { %v3740_v20 = vmax.f32 %v3485_v13, 0.0 }
 0x374   :  { %v3742_v21 = vmax.f32 %v3511_v14, 0.0 }
 0x375   :  { %3726 = vmatpush.bf16.msra.mxu3 %v5116_v51  ;;  %v3787_v29 = vrot.slane %v3740_v20, 6 }
 0x376   :  { %v3471_v17 = vpop.f32.mrf.mxu3  ;;  %v3789_v30 = vrot.slane %v3742_v21, 2 }
 0x377   :  { %v3472_v18 = vadd.f32 %v3471_v17, %v2356_v12  ;;  %v3497_v19 = vpop.f32.mrf.mxu2 }
 0x378   :  { %v3498_v23 = vadd.f32 %v3497_v19, %v2358_v15  ;;  %v3486_v24 = vpop.f32.mrf.mxu0 }
 0x379   :  { %3727 = vmatpush.bf16.msra.mxu3 %v5016_v60  ;;  %v3512_v25 = vpop.f32.mrf.mxu1  ;;  %v3739_v26 = vmax.f32 %v3472_v18, 0.0 }
 0x37a   :  { %v3741_v27 = vmax.f32 %v3498_v23, 0.0  ;;  %v2346_v25 = vld [vmem:[%s8056_s9 + $0x10] sm:$0xff] }
 0x37b   :  { %v3807_v28 = vsel %vm2117_vm1, %v3739_v26, %v3787_v29  ;;  %v2369_v26 = vperm.slane %v2346_v25, 1  ;;  %v2371_v29 = vperm.slane %v2346_v25, 3 }
 0x37c   :  { %v3788_v31 = vrot.slane %v3741_v27, 4 }
 0x37d   :  { %3728 = vmatpush.bf16.msra.mxu3 %v4916_v8 }
 0x37e   :  { %v3808_v32 = vsel %vm3803_vm4, %v3788_v31, %v3789_v30  ;;  %v3473_v33 = vpop.f32.mrf.mxu3  ;;  %v2368_v31 = vperm.slane %v2346_v25, 0 }
 0x37f   :  { %v3809_v34 = vsel %vm3805_vm5, %v3807_v28, %v3808_v32  ;;  %v3499_v35 = vpop.f32.mrf.mxu2  ;;  %v2370_v33 = vperm.slane %v2346_v25, 2 }
 0x380   :  { %3829 = vst [vmem:[%s8057_s10 + $0x8] sm:$0xff] %v3809_v34 }
 0x381   :  { %3729 = vmatpush.bf16.msra.mxu3 %v4816_v16  ;;  %v3536_v38 = vpop.f32.mrf.mxu0 }
 0x382   :  { %v3537_v61 = vadd.f32 %v3536_v38, %v2361_v37 }
 0x384   :  { %3730 = vmatmul.bf16.vlgmr.msra.gmra.mxu3 %v7158_v22  ;;  %v3562_v22 = vpop.f32.mrf.mxu1  ;;  %v3744_v46 = vmax.f32 %v3537_v61, 0.0 }
 0x385   :  { %v3563_v41 = vadd.f32 %v3562_v22, %v2363_v39 }
 0x386   :  { %v3790_v53 = vrot.slane %v3744_v46, 6 }
 0x387   :  { %v3523_v43 = vpop.f32.mrf.mxu3  ;;  %v3746_v47 = vmax.f32 %v3563_v41, 0.0 }
 0x388   :  { %v3524_v44 = vadd.f32 %v3523_v43, %v2360_v40 }
 0x389   :  { %v3538_v49 = vpop.f32.mrf.mxu0  ;;  %v3792_v54 = vrot.slane %v3746_v47, 2 }
 0x38a   :  { %v3549_v45 = vpop.f32.mrf.mxu2  ;;  %v3743_v51 = vmax.f32 %v3524_v44, 0.0 }
 0x38b   :  { %v3550_v48 = vadd.f32 %v3549_v45, %v2362_v42 }
 0x38c   :  { %v3564_v50 = vpop.f32.mrf.mxu1  ;;  %v3810_v56 = vsel %vm2117_vm1, %v3743_v51, %v3790_v53 }
 0x38d   :  { %v3745_v52 = vmax.f32 %v3550_v48, 0.0  ;;  %v2373_v50 = vperm.slane %v2346_v25, 5 }
 0x38f   :  { %v3791_v55 = vrot.slane %v3745_v52, 4  ;;  %v3525_v58 = vpop.f32.mrf.mxu3  ;;  %v2375_v52 = vperm.slane %v2346_v25, 7 }
 0x391   :  { %v3811_v57 = vsel %vm3803_vm4, %v3791_v55, %v3792_v54  ;;  %v2372_v54 = vperm.slane %v2346_v25, 4 }
 0x392   :  { %v3812_v59 = vsel %vm3805_vm5, %v3810_v56, %v3811_v57  ;;  %v3551_v60 = vpop.f32.mrf.mxu2  ;;  %v2374_v57 = vperm.slane %v2346_v25, 6 }
 0x393   :  { %3830 = vst [vmem:[%s8057_s10 + $0x10] sm:$0xff] %v3812_v59 }
 0x3a1   :  { %v3588_v63 = vpop.f32.mrf.mxu0 }
 0x3a2   :  { %v3589_v3 = vadd.f32 %v3588_v63, %v2365_v62 }
 0x3a4   :  { %v3614_v1 = vpop.f32.mrf.mxu1  ;;  %v3748_v9 = vmax.f32 %v3589_v3, 0.0 }
 0x3a5   :  { %v3615_v4 = vadd.f32 %v3614_v1, %v2367_v0 }
 0x3a6   :  { %v3793_v16 = vrot.slane %v3748_v9, 6 }
 0x3a7   :  { %v3575_v6 = vpop.f32.mrf.mxu3  ;;  %v3750_v10 = vmax.f32 %v3615_v4, 0.0 }
 0x3a8   :  { %v3576_v7 = vadd.f32 %v3575_v6, %v2364_v2 }
 0x3a9   :  { %v3590_v12 = vpop.f32.mrf.mxu0  ;;  %v3795_v17 = vrot.slane %v3750_v10, 2 }
 0x3aa   :  { %v3601_v8 = vpop.f32.mrf.mxu2  ;;  %v3747_v14 = vmax.f32 %v3576_v7, 0.0 }
 0x3ab   :  { %v3602_v11 = vadd.f32 %v3601_v8, %v2366_v5 }
 0x3ac   :  { %v3616_v13 = vpop.f32.mrf.mxu1  ;;  %v3813_v19 = vsel %vm2117_vm1, %v3747_v14, %v3793_v16 }
 0x3ad   :  { %v3749_v15 = vmax.f32 %v3602_v11, 0.0  ;;  %v5929_v13 = vld [vmem:[%s8056_s9 + $0x18] ss:$0 sm:$0xff] }
 0x3af   :  { %v3794_v18 = vrot.slane %v3749_v15, 4  ;;  %v3577_v21 = vpop.f32.mrf.mxu3 }
 0x3b1   :  { %v3814_v20 = vsel %vm3803_vm4, %v3794_v18, %v3795_v17 }
 0x3b2   :  { %v3815_v23 = vsel %vm3805_vm5, %v3813_v19, %v3814_v20  ;;  %v3603_v24 = vpop.f32.mrf.mxu2 }
 0x3b3   :  { %3831 = vst [vmem:[%s8057_s10 + $0x18] sm:$0xff] %v3815_v23 }
 0x3c1   :  { %v3640_v27 = vpop.f32.mrf.mxu0 }
 0x3c2   :  { %v3641_v28 = vadd.f32 %v3640_v27, %v2369_v26 }
 0x3c4   :  { %v3666_v30 = vpop.f32.mrf.mxu1  ;;  %v3752_v37 = vmax.f32 %v3641_v28, 0.0 }
 0x3c5   :  { %v3667_v32 = vadd.f32 %v3666_v30, %v2371_v29 }
 0x3c6   :  { %v3796_v42 = vrot.slane %v3752_v37, 6 }
 0x3c7   :  { %v3627_v34 = vpop.f32.mrf.mxu3  ;;  %v3754_v38 = vmax.f32 %v3667_v32, 0.0 }
 0x3c8   :  { %v3628_v35 = vadd.f32 %v3627_v34, %v2368_v31 }
 0x3c9   :  { %v3642_v22 = vpop.f32.mrf.mxu0  ;;  %v3798_v43 = vrot.slane %v3754_v38, 2 }
 0x3ca   :  { %v3653_v36 = vpop.f32.mrf.mxu2  ;;  %v3751_v61 = vmax.f32 %v3628_v35, 0.0 }
 0x3cb   :  { %v3654_v39 = vadd.f32 %v3653_v36, %v2370_v33 }
 0x3cc   :  { %v3668_v40 = vpop.f32.mrf.mxu1  ;;  %v3816_v45 = vsel %vm2117_vm1, %v3751_v61, %v3796_v42 }
 0x3cd   :  { %v3753_v41 = vmax.f32 %v3654_v39, 0.0 }
 0x3cf   :  { %v3797_v44 = vrot.slane %v3753_v41, 4  ;;  %v3629_v47 = vpop.f32.mrf.mxu3 }
 0x3d1   :  { %v3817_v46 = vsel %vm3803_vm4, %v3797_v44, %v3798_v43 }
 0x3d2   :  { %v3818_v48 = vsel %vm3805_vm5, %v3816_v45, %v3817_v46  ;;  %v3655_v49 = vpop.f32.mrf.mxu2 }
 0x3d3   :  { %3832 = vst [vmem:[%s8057_s10 + $0x20] sm:$0xff] %v3818_v48 }
 0x3e1   :  { %v3692_v51 = vpop.f32.mrf.mxu0 }
 0x3e2   :  { %v3693_v55 = vadd.f32 %v3692_v51, %v2373_v50 }
 0x3e3   :  { %v3718_v53 = vpop.f32.mrf.mxu1 }
 0x3e4   :  { %v3719_v56 = vadd.f32 %v3718_v53, %v2375_v52  ;;  %v3756_v62 = vmax.f32 %v3693_v55, 0.0 }
 0x3e6   :  { %v3758_v63 = vmax.f32 %v3719_v56, 0.0  ;;  %v3799_v5 = vrot.slane %v3756_v62, 6 }
 0x3e7   :  { %v3679_v58 = vpop.f32.mrf.mxu3 }
 0x3e8   :  { %v3680_v59 = vadd.f32 %v3679_v58, %v2372_v54  ;;  %v3705_v60 = vpop.f32.mrf.mxu2  ;;  %v3801_v6 = vrot.slane %v3758_v63, 2 }
 0x3e9   :  { %v3706_v0 = vadd.f32 %v3705_v60, %v2374_v57  ;;  %v3694_v1 = vpop.f32.mrf.mxu0 }
 0x3ea   :  { %v3755_v3 = vmax.f32 %v3680_v59, 0.0 }
 0x3eb   :  { %v3720_v2 = vpop.f32.mrf.mxu1  ;;  %v3757_v4 = vmax.f32 %v3706_v0, 0.0 }
 0x3ec   :  { %v3819_v8 = vsel %vm2117_vm1, %v3755_v3, %v3799_v5 }
 0x3ed   :  { %v3800_v7 = vrot.slane %v3757_v4, 4 }
 0x3ef   :  { %v3820_v9 = vsel %vm3803_vm4, %v3800_v7, %v3801_v6  ;;  %v3681_v10 = vpop.f32.mrf.mxu3 }
 0x3f0   :  { %v3821_v11 = vsel %vm3805_vm5, %v3819_v8, %v3820_v9  ;;  %v3707_v12 = vpop.f32.mrf.mxu2 }
 0x3f1   :  { %3833 = vst [vmem:[%s8057_s10 + $0x28] sm:$0xff] %v3821_v11 }
 0x407   :  { %v3731_v14 = vpop.f32.mrf.mxu3 }
 0x408   :  { %v3732_v15 = vadd.f32 %v5929_v13, %v3731_v14 }
 0x40a   :  { %v3759_v16 = vmax.f32 %v3732_v15, 0.0 }
 0x40c   :  { %3835 = vst.msk [vmem:[%s8057_s10 + $0x30] sm:$0x3] %vm3834_vm6, %v3759_v16 }
 0x40f   :  { %v3733_v17 = vpop.f32.mrf.mxu3 }
 0x410   :  { %6004 = dma.done.wait [#allocation3], 32  }
 0x411   :  { %6005 = vsyncadd [#allocation3], 4294967264 }
 0x412   :  { %6006 = dma.done.wait [#allocation5], 64  }
 0x413   :  { %6007 = vsyncadd [#allocation5], 4294967232 }
 0x414   :  { %3893 = vsyncpa [#allocation3], 1 }
 0x415   :  { %3894 = vsyncpa [#allocation5], 1 }

// kernel: tile.13
= control target key start
LH: loop header
LB: loop body
LE: loop exit
PB: predicated region body
PF: predicated region fallthrough
CT: control target
= control target key end

     0   :  { %s22_s0 = inlined_call_operand.vmem [shape: f32[32], index: 0, kind: input, shape index: {}]   ;;  %s23_s1 = inlined_call_operand.vmem [shape: f32[4,32], index: 1, kind: output, shape index: {}]  }
   0x1   :  { %v4_v0 = vld [vmem:[%s22_s0] ss:$0 sm:$0xff] }
   0x2   :  { %5 = vst [vmem:[%s23_s1] sm:$0xf] %v4_v0 }

// kernel: tile.14
= control target key start
LH: loop header
LB: loop body
LE: loop exit
PB: predicated region body
PF: predicated region fallthrough
CT: control target
= control target key end

     0   :  { %s37_s8 = smov 32   ;;  %s38_s9 = smov 64   ;;  %vm7_vm0 = vcmask 261120   ;;  %vm13_vm1 = vcmask 1048320   ;;  %vm19_vm2 = vcmask 785920   ;;  %vm25_vm3 = vcmask 523520   ;;  %s55_s0 = inlined_call_operand.vmem [shape: f32[4,32], index: 0, kind: input, shape index: {}]   ;;  %s56_s1 = inlined_call_operand.vmem [shape: f32[1,128], index: 1, kind: output, shape index: {}]  }
   0x1   :  { %v4_v0 = vld [vmem:[%s55_s0] sm:$0xf]  ;;  %s36_s0 = smov 96  }
   0x2   :  { %5 = vst [vmem:[#allocation1] sm:$0xf] %v4_v0 }
   0x9   :  { %v10_v1 = vld [vmem:[#allocation1 + $0x3] sm:$0x1]   ;;  %v22_v2 = vld [vmem:[#allocation1 + $0x1] sm:$0x1]   ;;  %v16_v3 = vld [vmem:[#allocation1 + $0x2] sm:$0x1]  }
   0xa   :  { %11 = vrot.lane.b32.xlu0 %v10_v1, %s36_s0  ;;  %23 = vrot.lane.b32.xlu1 %v22_v2, %s37_s8  ;;  %v6_v4 = vld [vmem:[#allocation1] sm:$0x1]  }
   0xb   :  { %8 = vst.msk [vmem:[#allocation0] sm:$0x1] %vm7_vm0, %v6_v4  }
  0x12   :  { %17 = vrot.lane.b32.xlu0 %v16_v3, %s38_s9 }
  0x7c   :  { %v12_v5 = vpop.permute.xlu0 %11   ;;  %v24_v6 = vpop.permute.xlu1 %23  }
  0x7d   :  { %14 = vst.msk [vmem:[#allocation0] sm:$0x1] %vm13_vm1, %v12_v5  }
  0x84   :  { %v18_v7 = vpop.permute.xlu0 %17  }
  0x85   :  { %20 = vst.msk [vmem:[#allocation0] sm:$0x1] %vm19_vm2, %v18_v7  }
  0x86   :  { %26 = vst.msk [vmem:[#allocation0] sm:$0x1] %vm25_vm3, %v24_v6  }
  0x8d   :  { %v29_v8 = vld [vmem:[#allocation0] sm:$0x1] }
  0x8e   :  { %32 = vst [vmem:[%s56_s1] sm:$0x1] %v29_v8 }

// kernel: vae_forward.8
= control target key start
LH: loop header
LB: loop body
LE: loop exit
PB: predicated region body
PF: predicated region fallthrough
CT: control target
= control target key end

     0   :  { %s730_s1 = inlined_call_operand.vmem [shape: bf16[256,128], index: 1, kind: input, shape index: {}]   ;;  %s731_s2 = inlined_call_operand.vmem [shape: f32[1,128], index: 2, kind: input, shape index: {}]   ;;  %s732_s0 = inlined_call_operand.vmem [shape: bf16[112,256], index: 0, kind: input, shape index: {}]   ;;  %s733_s3 = inlined_call_operand.vmem [shape: f32[112,128], index: 3, kind: output, shape index: {}]  }
   0x1   :  { %v491_v0 = vld [vmem:[%s730_s1 + $0x38] sm:$0xff]  ;;  %v490_v2 = vld [vmem:[%s730_s1 + $0x30] sm:$0xff]  ;;  %v489_v4 = vld [vmem:[%s730_s1 + $0x28] sm:$0xff] }
   0x2   :  { %v499_v1 = vld [vmem:[%s730_s1 + $0x78] sm:$0xff]  ;;  %230 = vmatpush.bf16.msra.mxu0 %v491_v0  ;;  %500 = vmatpush.bf16.msra.mxu2 %v491_v0  ;;  %v498_v3 = vld [vmem:[%s730_s1 + $0x70] sm:$0xff]  ;;  %v497_v5 = vld [vmem:[%s730_s1 + $0x68] sm:$0xff] }
   0x3   :  { %274 = vmatpush.bf16.msra.mxu1 %v499_v1  ;;  %508 = vmatpush.bf16.msra.mxu3 %v499_v1  ;;  %v488_v6 = vld [vmem:[%s730_s1 + $0x20] sm:$0xff]  ;;  %v487_v8 = vld [vmem:[%s730_s1 + $0x18] sm:$0xff]  ;;  %v486_v10 = vld [vmem:[%s730_s1 + $0x10] sm:$0xff] }
   0x4   :  { %v496_v7 = vld [vmem:[%s730_s1 + $0x60] sm:$0xff]  ;;  %v495_v9 = vld [vmem:[%s730_s1 + $0x58] sm:$0xff]  ;;  %v494_v11 = vld [vmem:[%s730_s1 + $0x50] sm:$0xff] }
   0x5   :  { %v485_v12 = vld [vmem:[%s730_s1 + $0x8] sm:$0xff]  ;;  %v484_v14 = vld [vmem:[%s730_s1] sm:$0xff]  ;;  %v376_v18 = vld [vmem:[%s732_s0 + $0x30] sm:$0xf] }
   0x6   :  { %231 = vmatpush.bf16.msra.mxu0 %v490_v2  ;;  %501 = vmatpush.bf16.msra.mxu2 %v490_v2  ;;  %v493_v13 = vld [vmem:[%s730_s1 + $0x48] sm:$0xff]  ;;  %v492_v15 = vld [vmem:[%s730_s1 + $0x40] sm:$0xff]  ;;  %v477_v19 = vld [vmem:[%s732_s0 + $0x34] sm:$0xf0] }
   0x7   :  { %275 = vmatpush.bf16.msra.mxu1 %v498_v3  ;;  %509 = vmatpush.bf16.msra.mxu3 %v498_v3  ;;  %v352_v16 = vld [vmem:[%s732_s0] sm:$0xf]  ;;  %v471_v17 = vld [vmem:[%s732_s0 + $0x4] sm:$0xf0]  ;;  %v470_v20 = vld [vmem:[%s732_s0 + $0x4] sm:$0xf]  ;;  %v377_v25 = vor.u32 %v477_v19, %v376_v18 }
   0x8   :  { %v354_v21 = vld [vmem:[%s732_s0 + $0x8] sm:$0xf0]  ;;  %v478_v22 = vld [vmem:[%s732_s0 + $0x44] sm:$0xf]  ;;  %v353_v24 = vor.u32 %v471_v17, %v352_v16  ;;  %v360_v28 = vld [vmem:[%s732_s0 + $0x10] sm:$0xf] }
   0x9   :  { %v386_v23 = vld [vmem:[%s732_s0 + $0x48] sm:$0xf0]  ;;  %v357_v26 = vor.u32 %v470_v20, %v354_v21  ;;  %v473_v29 = vld [vmem:[%s732_s0 + $0x14] sm:$0xf0]  ;;  %v384_v30 = vld [vmem:[%s732_s0 + $0x40] sm:$0xf] }
   0xa   :  { %232 = vmatpush.bf16.msra.mxu0 %v489_v4  ;;  %502 = vmatpush.bf16.msra.mxu2 %v489_v4  ;;  %v389_v27 = vor.u32 %v478_v22, %v386_v23  ;;  %v479_v31 = vld [vmem:[%s732_s0 + $0x44] sm:$0xf0]  ;;  %v472_v32 = vld [vmem:[%s732_s0 + $0x14] sm:$0xf]  ;;  %v362_v33 = vld [vmem:[%s732_s0 + $0x18] sm:$0xf0]  ;;  %v361_v36 = vor.u32 %v473_v29, %v360_v28 }
   0xb   :  { %276 = vmatpush.bf16.msra.mxu1 %v497_v5  ;;  %510 = vmatpush.bf16.msra.mxu3 %v497_v5  ;;  %v480_v34 = vld [vmem:[%s732_s0 + $0x54] sm:$0xf]  ;;  %v394_v35 = vld [vmem:[%s732_s0 + $0x58] sm:$0xf0]  ;;  %v385_v37 = vor.u32 %v479_v31, %v384_v30  ;;  %v365_v38 = vor.u32 %v472_v32, %v362_v33  ;;  %v368_v40 = vld [vmem:[%s732_s0 + $0x20] sm:$0xf] }
   0xc   :  { %v397_v39 = vor.u32 %v480_v34, %v394_v35  ;;  %v475_v41 = vld [vmem:[%s732_s0 + $0x24] sm:$0xf0]  ;;  %v392_v42 = vld [vmem:[%s732_s0 + $0x50] sm:$0xf]  ;;  %v481_v43 = vld [vmem:[%s732_s0 + $0x54] sm:$0xf0] }
   0xd   :  { %v474_v44 = vld [vmem:[%s732_s0 + $0x24] sm:$0xf]  ;;  %v370_v45 = vld [vmem:[%s732_s0 + $0x28] sm:$0xf0]  ;;  %v369_v48 = vor.u32 %v475_v41, %v368_v40  ;;  %v393_v49 = vor.u32 %v481_v43, %v392_v42  ;;  %v400_v52 = vld [vmem:[%s732_s0 + $0x60] sm:$0xf] }
   0xe   :  { %233 = vmatpush.bf16.msra.mxu0 %v488_v6  ;;  %503 = vmatpush.bf16.msra.mxu2 %v488_v6  ;;  %v482_v46 = vld [vmem:[%s732_s0 + $0x64] sm:$0xf]  ;;  %v402_v47 = vld [vmem:[%s732_s0 + $0x68] sm:$0xf0]  ;;  %v373_v50 = vor.u32 %v474_v44, %v370_v45  ;;  %v483_v53 = vld [vmem:[%s732_s0 + $0x64] sm:$0xf0] }
   0xf   :  { %277 = vmatpush.bf16.msra.mxu1 %v496_v7  ;;  %511 = vmatpush.bf16.msra.mxu3 %v496_v7  ;;  %v405_v51 = vor.u32 %v482_v46, %v402_v47  ;;  %v476_v54 = vld [vmem:[%s732_s0 + $0x34] sm:$0xf]  ;;  %v378_v55 = vld [vmem:[%s732_s0 + $0x38] sm:$0xf0]  ;;  %v401_v56 = vor.u32 %v483_v53, %v400_v52  ;;  %v672_v58 = vld [vmem:[%s731_s2] ss:$0 sm:$0xff] }
  0x10   :  { %v381_v57 = vor.u32 %v476_v54, %v378_v55 }
  0x12   :  { %234 = vmatpush.bf16.msra.mxu0 %v487_v8  ;;  %504 = vmatpush.bf16.msra.mxu2 %v487_v8 }
  0x13   :  { %278 = vmatpush.bf16.msra.mxu1 %v495_v9  ;;  %512 = vmatpush.bf16.msra.mxu3 %v495_v9 }
  0x16   :  { %235 = vmatpush.bf16.msra.mxu0 %v486_v10  ;;  %505 = vmatpush.bf16.msra.mxu2 %v486_v10 }
  0x17   :  { %279 = vmatpush.bf16.msra.mxu1 %v494_v11  ;;  %513 = vmatpush.bf16.msra.mxu3 %v494_v11 }
  0x1a   :  { %236 = vmatpush.bf16.msra.mxu0 %v485_v12  ;;  %506 = vmatpush.bf16.msra.mxu2 %v485_v12 }
  0x1b   :  { %280 = vmatpush.bf16.msra.mxu1 %v493_v13  ;;  %514 = vmatpush.bf16.msra.mxu3 %v493_v13 }
  0x1e   :  { %237 = vmatpush.bf16.msra.mxu0 %v484_v14  ;;  %507 = vmatpush.bf16.msra.mxu2 %v484_v14 }
  0x1f   :  { %281 = vmatpush.bf16.msra.mxu1 %v492_v15  ;;  %515 = vmatpush.bf16.msra.mxu3 %v492_v15 }
  0x21   :  { %238 = vmatmul.bf16.vlgmr.msra.gmra.mxu0 %v353_v24  ;;  %253 = vmatmul.bf16.vlgmr.msra.gmra.mxu2 %v377_v25 }
  0x22   :  { %282 = vmatmul.bf16.vlgmr.msra.gmra.mxu1 %v357_v26  ;;  %302 = vmatmul.bf16.vlgmr.msra.gmra.mxu3 %v389_v27 }
  0x31   :  { %243 = vmatmul.bf16.gmra.mxu0 %v361_v36  ;;  %258 = vmatmul.bf16.gmra.mxu2 %v385_v37 }
  0x32   :  { %287 = vmatmul.bf16.gmra.mxu1 %v365_v38  ;;  %307 = vmatmul.bf16.gmra.mxu3 %v397_v39 }
  0x41   :  { %248 = vmatmul.bf16.gmra.mxu0 %v369_v48  ;;  %263 = vmatmul.bf16.gmra.mxu2 %v393_v49 }
  0x42   :  { %292 = vmatmul.bf16.gmra.mxu1 %v373_v50  ;;  %312 = vmatmul.bf16.gmra.mxu3 %v405_v51 }
  0x51   :  { %268 = vmatmul.bf16.gmra.mxu2 %v401_v56 }
  0x52   :  { %297 = vmatmul.bf16.gmra.mxu1 %v381_v57 }
  0x9e   :  { %v239_v59 = vpop.f32.mrf.mxu0 }
  0x9f   :  { %v240_v60 = vadd.f32 %v672_v58, %v239_v59  ;;  %v283_v61 = vpop.f32.mrf.mxu1 }
  0xa1   :  { %v284_v62 = vadd.f32 %v283_v61, %v240_v60 }
  0xa3   :  { %v318_v63 = vmax.f32 %v284_v62, 0.0 }
  0xa4   :  { %v254_v0 = vpop.f32.mrf.mxu2 }
  0xa5   :  { %332 = vst [vmem:[%s733_s3] sm:$0xff] %v318_v63  ;;  %v303_v7 = vpop.f32.mrf.mxu3  ;;  %v255_v45 = vadd.f32 %v672_v58, %v254_v0 }
  0xa6   :  { %v241_v1 = vpop.f32.mrf.mxu0 }
  0xa7   :  { %v242_v2 = vadd.f32 %v672_v58, %v241_v1  ;;  %v285_v3 = vpop.f32.mrf.mxu1 }
  0xa9   :  { %v286_v4 = vadd.f32 %v285_v3, %v242_v2 }
  0xab   :  { %v319_v5 = vmax.f32 %v286_v4, 0.0 }
  0xac   :  { %v256_v6 = vpop.f32.mrf.mxu2 }
  0xad   :  { %333 = vst [vmem:[%s733_s3 + $0x8] sm:$0xff] %v319_v5  ;;  %v305_v16 = vpop.f32.mrf.mxu3  ;;  %v257_v54 = vadd.f32 %v672_v58, %v256_v6 }
  0xae   :  { %v244_v8 = vpop.f32.mrf.mxu0 }
  0xaf   :  { %v245_v9 = vadd.f32 %v672_v58, %v244_v8  ;;  %v288_v10 = vpop.f32.mrf.mxu1 }
  0xb1   :  { %v289_v11 = vadd.f32 %v288_v10, %v245_v9 }
  0xb3   :  { %v320_v12 = vmax.f32 %v289_v11, 0.0 }
  0xb4   :  { %v259_v13 = vpop.f32.mrf.mxu2 }
  0xb5   :  { %334 = vst [vmem:[%s733_s3 + $0x10] sm:$0xff] %v320_v12  ;;  %v260_v14 = vadd.f32 %v672_v58, %v259_v13  ;;  %v308_v29 = vpop.f32.mrf.mxu3 }
  0xb6   :  { %v246_v15 = vpop.f32.mrf.mxu0 }
  0xb7   :  { %v304_v17 = vadd.f32 %v303_v7, %v260_v14  ;;  %v247_v18 = vadd.f32 %v672_v58, %v246_v15  ;;  %v290_v19 = vpop.f32.mrf.mxu1 }
  0xb9   :  { %v326_v20 = vmax.f32 %v304_v17, 0.0  ;;  %v291_v21 = vadd.f32 %v290_v19, %v247_v18 }
  0xbb   :  { %340 = vst [vmem:[%s733_s3 + $0x40] sm:$0xff] %v326_v20  ;;  %v321_v22 = vmax.f32 %v291_v21, 0.0 }
  0xbc   :  { %v261_v23 = vpop.f32.mrf.mxu2 }
  0xbd   :  { %335 = vst [vmem:[%s733_s3 + $0x18] sm:$0xff] %v321_v22  ;;  %v262_v24 = vadd.f32 %v672_v58, %v261_v23  ;;  %v310_v41 = vpop.f32.mrf.mxu3 }
  0xbe   :  { %v249_v25 = vpop.f32.mrf.mxu0 }
  0xbf   :  { %v306_v26 = vadd.f32 %v305_v16, %v262_v24  ;;  %v250_v27 = vadd.f32 %v672_v58, %v249_v25  ;;  %v293_v28 = vpop.f32.mrf.mxu1 }
  0xc1   :  { %v327_v30 = vmax.f32 %v306_v26, 0.0  ;;  %v294_v31 = vadd.f32 %v293_v28, %v250_v27 }
  0xc3   :  { %341 = vst [vmem:[%s733_s3 + $0x48] sm:$0xff] %v327_v30  ;;  %v322_v32 = vmax.f32 %v294_v31, 0.0 }
  0xc4   :  { %v264_v33 = vpop.f32.mrf.mxu2 }
  0xc5   :  { %336 = vst [vmem:[%s733_s3 + $0x20] sm:$0xff] %v322_v32  ;;  %v265_v34 = vadd.f32 %v672_v58, %v264_v33  ;;  %v313_v51 = vpop.f32.mrf.mxu3 }
  0xc6   :  { %v251_v35 = vpop.f32.mrf.mxu0 }
  0xc7   :  { %v309_v36 = vadd.f32 %v308_v29, %v265_v34  ;;  %v252_v37 = vadd.f32 %v672_v58, %v251_v35  ;;  %v295_v38 = vpop.f32.mrf.mxu1 }
  0xc9   :  { %v328_v39 = vmax.f32 %v309_v36, 0.0  ;;  %v296_v40 = vadd.f32 %v295_v38, %v252_v37 }
  0xcb   :  { %342 = vst [vmem:[%s733_s3 + $0x50] sm:$0xff] %v328_v39  ;;  %v323_v42 = vmax.f32 %v296_v40, 0.0 }
  0xcc   :  { %v266_v43 = vpop.f32.mrf.mxu2 }
  0xcd   :  { %337 = vst [vmem:[%s733_s3 + $0x28] sm:$0xff] %v323_v42  ;;  %v267_v44 = vadd.f32 %v672_v58, %v266_v43  ;;  %v315_v63 = vpop.f32.mrf.mxu3 }
  0xcf   :  { %v311_v46 = vadd.f32 %v310_v41, %v267_v44  ;;  %v298_v47 = vpop.f32.mrf.mxu1 }
  0xd0   :  { %v299_v48 = vadd.f32 %v298_v47, %v255_v45 }
  0xd1   :  { %v329_v49 = vmax.f32 %v311_v46, 0.0 }
  0xd2   :  { %v324_v50 = vmax.f32 %v299_v48, 0.0 }
  0xd3   :  { %343 = vst [vmem:[%s733_s3 + $0x58] sm:$0xff] %v329_v49 }
  0xd4   :  { %338 = vst [vmem:[%s733_s3 + $0x30] sm:$0xff] %v324_v50  ;;  %v269_v52 = vpop.f32.mrf.mxu2 }
  0xd5   :  { %v270_v53 = vadd.f32 %v672_v58, %v269_v52 }
  0xd7   :  { %v314_v55 = vadd.f32 %v313_v51, %v270_v53  ;;  %v300_v56 = vpop.f32.mrf.mxu1 }
  0xd8   :  { %v301_v57 = vadd.f32 %v300_v56, %v257_v54 }
  0xd9   :  { %v330_v59 = vmax.f32 %v314_v55, 0.0 }
  0xda   :  { %v325_v60 = vmax.f32 %v301_v57, 0.0 }
  0xdb   :  { %344 = vst [vmem:[%s733_s3 + $0x60] sm:$0xff] %v330_v59 }
  0xdc   :  { %339 = vst [vmem:[%s733_s3 + $0x38] sm:$0xff] %v325_v60  ;;  %v271_v61 = vpop.f32.mrf.mxu2 }
  0xdd   :  { %v272_v62 = vadd.f32 %v672_v58, %v271_v61 }
  0xdf   :  { %v316_v0 = vadd.f32 %v315_v63, %v272_v62 }
  0xe1   :  { %v331_v1 = vmax.f32 %v316_v0, 0.0 }
  0xe3   :  { %345 = vst [vmem:[%s733_s3 + $0x68] sm:$0xff] %v331_v1 }

// kernel: tile.18
= control target key start
LH: loop header
LB: loop body
LE: loop exit
PB: predicated region body
PF: predicated region fallthrough
CT: control target
= control target key end

     0   :  { %s22_s0 = inlined_call_operand.vmem [shape: f32[3], index: 0, kind: input, shape index: {}]   ;;  %s23_s1 = inlined_call_operand.vmem [shape: f32[4,3], index: 1, kind: output, shape index: {}]  }
   0x1   :  { %v4_v0 = vld [vmem:[%s22_s0] ss:$0 sm:$0xff] }
   0x2   :  { %5 = vst [vmem:[%s23_s1] sm:$0xf] %v4_v0 }

// kernel: tile.19
= control target key start
LH: loop header
LB: loop body
LE: loop exit
PB: predicated region body
PF: predicated region fallthrough
CT: control target
= control target key end

     0   :  { %s37_s8 = smov 3   ;;  %s38_s9 = smov 6   ;;  %vm7_vm0 = vcmask 23552   ;;  %vm13_vm1 = vcmask 97352   ;;  %vm19_vm2 = vcmask 72752   ;;  %vm25_vm3 = vcmask 48152   ;;  %s55_s0 = inlined_call_operand.vmem [shape: f32[4,3], index: 0, kind: input, shape index: {}]   ;;  %s56_s1 = inlined_call_operand.vmem [shape: f32[1,12], index: 1, kind: output, shape index: {}]  }
   0x1   :  { %v4_v0 = vld [vmem:[%s55_s0] sm:$0xf]  ;;  %s36_s0 = smov 9  }
   0x2   :  { %5 = vst [vmem:[#allocation1] sm:$0xf] %v4_v0 }
   0x9   :  { %v10_v1 = vld [vmem:[#allocation1 + $0x3] sm:$0x1]   ;;  %v22_v2 = vld [vmem:[#allocation1 + $0x1] sm:$0x1]   ;;  %v16_v3 = vld [vmem:[#allocation1 + $0x2] sm:$0x1]  }
   0xa   :  { %11 = vrot.lane.b32.xlu0 %v10_v1, %s36_s0  ;;  %23 = vrot.lane.b32.xlu1 %v22_v2, %s37_s8  ;;  %v6_v4 = vld [vmem:[#allocation1] sm:$0x1]  }
   0xb   :  { %8 = vst.msk [vmem:[#allocation0] sm:$0x1] %vm7_vm0, %v6_v4  }
  0x12   :  { %17 = vrot.lane.b32.xlu0 %v16_v3, %s38_s9 }
  0x7c   :  { %v12_v5 = vpop.permute.xlu0 %11   ;;  %v24_v6 = vpop.permute.xlu1 %23  }
  0x7d   :  { %14 = vst.msk [vmem:[#allocation0] sm:$0x1] %vm13_vm1, %v12_v5  }
  0x84   :  { %v18_v7 = vpop.permute.xlu0 %17  }
  0x85   :  { %20 = vst.msk [vmem:[#allocation0] sm:$0x1] %vm19_vm2, %v18_v7  }
  0x86   :  { %26 = vst.msk [vmem:[#allocation0] sm:$0x1] %vm25_vm3, %v24_v6  }
  0x8d   :  { %v29_v8 = vld [vmem:[#allocation0] sm:$0x1] }
  0x8e   :  { %32 = vst [vmem:[%s56_s1] sm:$0x1] %v29_v8 }

// kernel: vae_forward.9
= control target key start
LH: loop header
LB: loop body
LE: loop exit
PB: predicated region body
PF: predicated region fallthrough
CT: control target
= control target key end

     0   :  { %vm466_vm0 = vcmask 97280   ;;  %s1185_s1 = inlined_call_operand.vmem [shape: bf16[128,12], index: 1, kind: input, shape index: {}]   ;;  %s1186_s2 = inlined_call_operand.vmem [shape: f32[1,12], index: 2, kind: input, shape index: {}]   ;;  %s1187_s0 = inlined_call_operand.vmem [shape: bf16[400,128], index: 0, kind: input, shape index: {}]   ;;  %s1188_s3 = inlined_call_operand.vmem [shape: f32[400,12], index: 3, kind: output, shape index: {}]  }
   0x1   :  { %v685_v0 = vld [vmem:[%s1185_s1 + $0x38] sm:$0xff]  ;;  %v684_v1 = vld [vmem:[%s1185_s1 + $0x30] sm:$0xff]  ;;  %v683_v2 = vld [vmem:[%s1185_s1 + $0x28] sm:$0xff] }
   0x2   :  { %687 = vmatpush.bf16.msra.mxu2 %v685_v0  ;;  %688 = vmatpush.bf16.msra.mxu3 %v685_v0  ;;  %v682_v3 = vld [vmem:[%s1185_s1 + $0x20] sm:$0xff]  ;;  %v681_v4 = vld [vmem:[%s1185_s1 + $0x18] sm:$0xff]  ;;  %v680_v5 = vld [vmem:[%s1185_s1 + $0x10] sm:$0xff] }
   0x3   :  { %282 = vmatpush.bf16.msra.mxu0 %v685_v0  ;;  %686 = vmatpush.bf16.msra.mxu1 %v685_v0  ;;  %v679_v6 = vld [vmem:[%s1185_s1 + $0x8] sm:$0xff]  ;;  %v678_v7 = vld [vmem:[%s1185_s1] sm:$0xff]  ;;  %v672_v9 = vld [vmem:[%s1187_s0 + $0x98] sm:$0xff] }
   0x4   :  { %v665_v8 = vld [vmem:[%s1187_s0 + $0x60] sm:$0xff]  ;;  %v659_v11 = vld [vmem:[%s1187_s0 + $0x30] sm:$0xff]  ;;  %v666_v12 = vld [vmem:[%s1187_s0 + $0x68] sm:$0xff] }
   0x5   :  { %v653_v10 = vld [vmem:[%s1187_s0] sm:$0xff]  ;;  %v654_v14 = vld [vmem:[%s1187_s0 + $0x8] sm:$0xff]  ;;  %v660_v15 = vld [vmem:[%s1187_s0 + $0x38] sm:$0xff] }
   0x6   :  { %690 = vmatpush.bf16.msra.mxu2 %v684_v1  ;;  %691 = vmatpush.bf16.msra.mxu3 %v684_v1  ;;  %v673_v13 = vld [vmem:[%s1187_s0 + $0xa0] sm:$0xff]  ;;  %v667_v16 = vld [vmem:[%s1187_s0 + $0x70] sm:$0xff]  ;;  %v674_v17 = vld [vmem:[%s1187_s0 + $0xa8] sm:$0xff] }
   0x7   :  { %283 = vmatpush.bf16.msra.mxu0 %v684_v1  ;;  %689 = vmatpush.bf16.msra.mxu1 %v684_v1  ;;  %v655_v18 = vld [vmem:[%s1187_s0 + $0x10] sm:$0xff]  ;;  %v661_v19 = vld [vmem:[%s1187_s0 + $0x40] sm:$0xff]  ;;  %v668_v20 = vld [vmem:[%s1187_s0 + $0x78] sm:$0xff] }
   0x8   :  { %v675_v21 = vld [vmem:[%s1187_s0 + $0xb0] sm:$0xff]  ;;  %v656_v22 = vld [vmem:[%s1187_s0 + $0x18] sm:$0xff]  ;;  %v662_v23 = vld [vmem:[%s1187_s0 + $0x48] sm:$0xff] }
   0x9   :  { %v669_v24 = vld [vmem:[%s1187_s0 + $0x80] sm:$0xff]  ;;  %v676_v25 = vld [vmem:[%s1187_s0 + $0xb8] sm:$0xff]  ;;  %v663_v27 = vld [vmem:[%s1187_s0 + $0x50] sm:$0xff] }
   0xa   :  { %693 = vmatpush.bf16.msra.mxu2 %v683_v2  ;;  %694 = vmatpush.bf16.msra.mxu3 %v683_v2  ;;  %v657_v26 = vld [vmem:[%s1187_s0 + $0x20] sm:$0xff]  ;;  %v670_v28 = vld [vmem:[%s1187_s0 + $0x88] sm:$0xff]  ;;  %v664_v31 = vld [vmem:[%s1187_s0 + $0x58] sm:$0xff] }
   0xb   :  { %284 = vmatpush.bf16.msra.mxu0 %v683_v2  ;;  %692 = vmatpush.bf16.msra.mxu1 %v683_v2  ;;  %v677_v29 = vld [vmem:[%s1187_s0 + $0xc0] sm:$0xff]  ;;  %v658_v30 = vld [vmem:[%s1187_s0 + $0x28] sm:$0xff]  ;;  %v671_v32 = vld [vmem:[%s1187_s0 + $0x90] sm:$0xff] }
   0xc   :  { %v933_v33 = vld [vmem:[%s1186_s2] ss:$0 sm:$0xff] }
   0xe   :  { %696 = vmatpush.bf16.msra.mxu2 %v682_v3  ;;  %697 = vmatpush.bf16.msra.mxu3 %v682_v3 }
   0xf   :  { %285 = vmatpush.bf16.msra.mxu0 %v682_v3  ;;  %695 = vmatpush.bf16.msra.mxu1 %v682_v3 }
  0x12   :  { %699 = vmatpush.bf16.msra.mxu2 %v681_v4  ;;  %700 = vmatpush.bf16.msra.mxu3 %v681_v4 }
  0x13   :  { %286 = vmatpush.bf16.msra.mxu0 %v681_v4  ;;  %698 = vmatpush.bf16.msra.mxu1 %v681_v4 }
  0x16   :  { %702 = vmatpush.bf16.msra.mxu2 %v680_v5  ;;  %703 = vmatpush.bf16.msra.mxu3 %v680_v5 }
  0x17   :  { %287 = vmatpush.bf16.msra.mxu0 %v680_v5  ;;  %701 = vmatpush.bf16.msra.mxu1 %v680_v5 }
  0x1a   :  { %705 = vmatpush.bf16.msra.mxu2 %v679_v6  ;;  %706 = vmatpush.bf16.msra.mxu3 %v679_v6 }
  0x1b   :  { %288 = vmatpush.bf16.msra.mxu0 %v679_v6  ;;  %704 = vmatpush.bf16.msra.mxu1 %v679_v6 }
  0x1e   :  { %708 = vmatpush.bf16.msra.mxu2 %v678_v7  ;;  %709 = vmatpush.bf16.msra.mxu3 %v678_v7 }
  0x1f   :  { %289 = vmatpush.bf16.msra.mxu0 %v678_v7  ;;  %707 = vmatpush.bf16.msra.mxu1 %v678_v7 }
  0x21   :  { %350 = vmatmul.bf16.vlgmr.msra.gmra.mxu2 %v665_v8  ;;  %385 = vmatmul.bf16.vlgmr.msra.gmra.mxu3 %v672_v9 }
  0x22   :  { %290 = vmatmul.bf16.vlgmr.msra.gmra.mxu0 %v653_v10  ;;  %320 = vmatmul.bf16.vlgmr.msra.gmra.mxu1 %v659_v11 }
  0x31   :  { %355 = vmatmul.bf16.gmra.mxu2 %v666_v12  ;;  %390 = vmatmul.bf16.gmra.mxu3 %v673_v13 }
  0x32   :  { %295 = vmatmul.bf16.gmra.mxu0 %v654_v14  ;;  %325 = vmatmul.bf16.gmra.mxu1 %v660_v15 }
  0x41   :  { %360 = vmatmul.bf16.gmra.mxu2 %v667_v16  ;;  %395 = vmatmul.bf16.gmra.mxu3 %v674_v17 }
  0x42   :  { %300 = vmatmul.bf16.gmra.mxu0 %v655_v18  ;;  %330 = vmatmul.bf16.gmra.mxu1 %v661_v19 }
  0x51   :  { %365 = vmatmul.bf16.gmra.mxu2 %v668_v20  ;;  %400 = vmatmul.bf16.gmra.mxu3 %v675_v21 }
  0x52   :  { %305 = vmatmul.bf16.gmra.mxu0 %v656_v22  ;;  %335 = vmatmul.bf16.gmra.mxu1 %v662_v23 }
  0x61   :  { %370 = vmatmul.bf16.gmra.mxu2 %v669_v24  ;;  %405 = vmatmul.bf16.gmra.mxu3 %v676_v25 }
  0x62   :  { %310 = vmatmul.bf16.gmra.mxu0 %v657_v26  ;;  %340 = vmatmul.bf16.gmra.mxu1 %v663_v27 }
  0x71   :  { %375 = vmatmul.bf16.gmra.mxu2 %v670_v28  ;;  %410 = vmatmul.bf16.gmra.mxu3 %v677_v29 }
  0x72   :  { %315 = vmatmul.bf16.gmra.mxu0 %v658_v30  ;;  %345 = vmatmul.bf16.gmra.mxu1 %v664_v31 }
  0x81   :  { %380 = vmatmul.bf16.gmra.mxu2 %v671_v32 }
  0x9f   :  { %v291_v34 = vpop.f32.mrf.mxu0  ;;  %v321_v35 = vpop.f32.mrf.mxu1 }
  0xa0   :  { %v292_v36 = vadd.f32 %v933_v33, %v291_v34  ;;  %v322_v37 = vadd.f32 %v933_v33, %v321_v35 }
  0xa2   :  { %711 = vtanh.f32 %v292_v36 }
  0xa3   :  { %713 = vtanh.f32 %v322_v37 }
  0xa4   :  { %v351_v38 = vpop.f32.mrf.mxu2  ;;  %v386_v39 = vpop.f32.mrf.mxu3 }
  0xa5   :  { %v352_v40 = vadd.f32 %v933_v33, %v351_v38  ;;  %v387_v41 = vadd.f32 %v933_v33, %v386_v39 }
  0xa7   :  { %715 = vtanh.f32 %v352_v40  ;;  %v293_v42 = vpop.f32.mrf.mxu0  ;;  %v323_v43 = vpop.f32.mrf.mxu1 }
  0xa8   :  { %v712_v44 = vpop.eup %711  ;;  %717 = vtanh.f32 %v387_v41  ;;  %v294_v45 = vadd.f32 %v933_v33, %v293_v42  ;;  %v324_v46 = vadd.f32 %v933_v33, %v323_v43 }
  0xa9   :  { %v714_v47 = vpop.eup %713  ;;  %467 = vst.msk [vmem:[%s1188_s3] sm:$0xff] %vm466_vm0, %v712_v44 }
  0xaa   :  { %479 = vst.msk [vmem:[%s1188_s3 + $0x60] sm:$0xff] %vm466_vm0, %v714_v47  ;;  %719 = vtanh.f32 %v294_v45 }
  0xab   :  { %721 = vtanh.f32 %v324_v46 }
  0xac   :  { %v353_v48 = vpop.f32.mrf.mxu2  ;;  %v388_v49 = vpop.f32.mrf.mxu3 }
  0xad   :  { %v716_v50 = vpop.eup %715  ;;  %v354_v51 = vadd.f32 %v933_v33, %v353_v48  ;;  %v389_v52 = vadd.f32 %v933_v33, %v388_v49 }
  0xae   :  { %v718_v53 = vpop.eup %717  ;;  %491 = vst.msk [vmem:[%s1188_s3 + $0xc0] sm:$0xff] %vm466_vm0, %v716_v50 }
  0xaf   :  { %723 = vtanh.f32 %v354_v51  ;;  %505 = vst.msk [vmem:[%s1188_s3 + $0x130] sm:$0xff] %vm466_vm0, %v718_v53  ;;  %v296_v54 = vpop.f32.mrf.mxu0  ;;  %v326_v55 = vpop.f32.mrf.mxu1 }
  0xb0   :  { %v720_v56 = vpop.eup %719  ;;  %725 = vtanh.f32 %v389_v52  ;;  %v297_v57 = vadd.f32 %v933_v33, %v296_v54  ;;  %v327_v58 = vadd.f32 %v933_v33, %v326_v55 }
  0xb1   :  { %v722_v59 = vpop.eup %721  ;;  %468 = vst.msk [vmem:[%s1188_s3 + $0x8] sm:$0xff] %vm466_vm0, %v720_v56 }
  0xb2   :  { %480 = vst.msk [vmem:[%s1188_s3 + $0x68] sm:$0xff] %vm466_vm0, %v722_v59  ;;  %727 = vtanh.f32 %v297_v57 }
  0xb3   :  { %729 = vtanh.f32 %v327_v58 }
  0xb4   :  { %v356_v60 = vpop.f32.mrf.mxu2  ;;  %v391_v61 = vpop.f32.mrf.mxu3 }
  0xb5   :  { %v724_v62 = vpop.eup %723  ;;  %v357_v63 = vadd.f32 %v933_v33, %v356_v60  ;;  %v392_v0 = vadd.f32 %v933_v33, %v391_v61 }
  0xb6   :  { %v726_v1 = vpop.eup %725  ;;  %492 = vst.msk [vmem:[%s1188_s3 + $0xc8] sm:$0xff] %vm466_vm0, %v724_v62 }
  0xb7   :  { %731 = vtanh.f32 %v357_v63  ;;  %506 = vst.msk [vmem:[%s1188_s3 + $0x138] sm:$0xff] %vm466_vm0, %v726_v1  ;;  %v298_v2 = vpop.f32.mrf.mxu0  ;;  %v328_v3 = vpop.f32.mrf.mxu1 }
  0xb8   :  { %v728_v4 = vpop.eup %727  ;;  %733 = vtanh.f32 %v392_v0  ;;  %v299_v5 = vadd.f32 %v933_v33, %v298_v2  ;;  %v329_v6 = vadd.f32 %v933_v33, %v328_v3 }
  0xb9   :  { %v730_v7 = vpop.eup %729  ;;  %469 = vst.msk [vmem:[%s1188_s3 + $0x10] sm:$0xff] %vm466_vm0, %v728_v4 }
  0xba   :  { %481 = vst.msk [vmem:[%s1188_s3 + $0x70] sm:$0xff] %vm466_vm0, %v730_v7  ;;  %735 = vtanh.f32 %v299_v5 }
  0xbb   :  { %737 = vtanh.f32 %v329_v6 }
  0xbc   :  { %v358_v8 = vpop.f32.mrf.mxu2  ;;  %v393_v9 = vpop.f32.mrf.mxu3 }
  0xbd   :  { %v732_v10 = vpop.eup %731  ;;  %v359_v11 = vadd.f32 %v933_v33, %v358_v8  ;;  %v394_v12 = vadd.f32 %v933_v33, %v393_v9 }
  0xbe   :  { %v734_v13 = vpop.eup %733  ;;  %493 = vst.msk [vmem:[%s1188_s3 + $0xd0] sm:$0xff] %vm466_vm0, %v732_v10 }
  0xbf   :  { %739 = vtanh.f32 %v359_v11  ;;  %507 = vst.msk [vmem:[%s1188_s3 + $0x140] sm:$0xff] %vm466_vm0, %v734_v13  ;;  %v301_v14 = vpop.f32.mrf.mxu0  ;;  %v331_v15 = vpop.f32.mrf.mxu1 }
  0xc0   :  { %v736_v16 = vpop.eup %735  ;;  %741 = vtanh.f32 %v394_v12  ;;  %v302_v17 = vadd.f32 %v933_v33, %v301_v14  ;;  %v332_v18 = vadd.f32 %v933_v33, %v331_v15 }
  0xc1   :  { %v738_v19 = vpop.eup %737  ;;  %470 = vst.msk [vmem:[%s1188_s3 + $0x18] sm:$0xff] %vm466_vm0, %v736_v16 }
  0xc2   :  { %482 = vst.msk [vmem:[%s1188_s3 + $0x78] sm:$0xff] %vm466_vm0, %v738_v19  ;;  %743 = vtanh.f32 %v302_v17 }
  0xc3   :  { %745 = vtanh.f32 %v332_v18 }
  0xc4   :  { %v361_v20 = vpop.f32.mrf.mxu2  ;;  %v396_v21 = vpop.f32.mrf.mxu3 }
  0xc5   :  { %v740_v22 = vpop.eup %739  ;;  %v362_v23 = vadd.f32 %v933_v33, %v361_v20  ;;  %v397_v24 = vadd.f32 %v933_v33, %v396_v21 }
  0xc6   :  { %v742_v25 = vpop.eup %741  ;;  %494 = vst.msk [vmem:[%s1188_s3 + $0xd8] sm:$0xff] %vm466_vm0, %v740_v22 }
  0xc7   :  { %747 = vtanh.f32 %v362_v23  ;;  %508 = vst.msk [vmem:[%s1188_s3 + $0x148] sm:$0xff] %vm466_vm0, %v742_v25  ;;  %v303_v26 = vpop.f32.mrf.mxu0  ;;  %v333_v27 = vpop.f32.mrf.mxu1 }
  0xc8   :  { %v744_v28 = vpop.eup %743  ;;  %749 = vtanh.f32 %v397_v24  ;;  %v304_v29 = vadd.f32 %v933_v33, %v303_v26  ;;  %v334_v30 = vadd.f32 %v933_v33, %v333_v27 }
  0xc9   :  { %v746_v31 = vpop.eup %745  ;;  %471 = vst.msk [vmem:[%s1188_s3 + $0x20] sm:$0xff] %vm466_vm0, %v744_v28 }
  0xca   :  { %483 = vst.msk [vmem:[%s1188_s3 + $0x80] sm:$0xff] %vm466_vm0, %v746_v31  ;;  %751 = vtanh.f32 %v304_v29 }
  0xcb   :  { %753 = vtanh.f32 %v334_v30 }
  0xcc   :  { %v363_v32 = vpop.f32.mrf.mxu2  ;;  %v398_v34 = vpop.f32.mrf.mxu3 }
  0xcd   :  { %v748_v35 = vpop.eup %747  ;;  %v364_v36 = vadd.f32 %v933_v33, %v363_v32  ;;  %v399_v37 = vadd.f32 %v933_v33, %v398_v34 }
  0xce   :  { %v750_v38 = vpop.eup %749  ;;  %495 = vst.msk [vmem:[%s1188_s3 + $0xe0] sm:$0xff] %vm466_vm0, %v748_v35 }
  0xcf   :  { %755 = vtanh.f32 %v364_v36  ;;  %509 = vst.msk [vmem:[%s1188_s3 + $0x150] sm:$0xff] %vm466_vm0, %v750_v38  ;;  %v306_v39 = vpop.f32.mrf.mxu0  ;;  %v336_v40 = vpop.f32.mrf.mxu1 }
  0xd0   :  { %v752_v41 = vpop.eup %751  ;;  %757 = vtanh.f32 %v399_v37  ;;  %v307_v42 = vadd.f32 %v933_v33, %v306_v39  ;;  %v337_v43 = vadd.f32 %v933_v33, %v336_v40 }
  0xd1   :  { %v754_v44 = vpop.eup %753  ;;  %472 = vst.msk [vmem:[%s1188_s3 + $0x28] sm:$0xff] %vm466_vm0, %v752_v41 }
  0xd2   :  { %484 = vst.msk [vmem:[%s1188_s3 + $0x88] sm:$0xff] %vm466_vm0, %v754_v44  ;;  %759 = vtanh.f32 %v307_v42 }
  0xd3   :  { %761 = vtanh.f32 %v337_v43 }
  0xd4   :  { %v366_v45 = vpop.f32.mrf.mxu2  ;;  %v401_v46 = vpop.f32.mrf.mxu3 }
  0xd5   :  { %v756_v47 = vpop.eup %755  ;;  %v367_v48 = vadd.f32 %v933_v33, %v366_v45  ;;  %v402_v49 = vadd.f32 %v933_v33, %v401_v46 }
  0xd6   :  { %v758_v50 = vpop.eup %757  ;;  %496 = vst.msk [vmem:[%s1188_s3 + $0xe8] sm:$0xff] %vm466_vm0, %v756_v47 }
  0xd7   :  { %763 = vtanh.f32 %v367_v48  ;;  %510 = vst.msk [vmem:[%s1188_s3 + $0x158] sm:$0xff] %vm466_vm0, %v758_v50  ;;  %v308_v51 = vpop.f32.mrf.mxu0  ;;  %v338_v52 = vpop.f32.mrf.mxu1 }
  0xd8   :  { %v760_v53 = vpop.eup %759  ;;  %765 = vtanh.f32 %v402_v49  ;;  %v309_v54 = vadd.f32 %v933_v33, %v308_v51  ;;  %v339_v55 = vadd.f32 %v933_v33, %v338_v52 }
  0xd9   :  { %v762_v56 = vpop.eup %761  ;;  %473 = vst.msk [vmem:[%s1188_s3 + $0x30] sm:$0xff] %vm466_vm0, %v760_v53 }
  0xda   :  { %485 = vst.msk [vmem:[%s1188_s3 + $0x90] sm:$0xff] %vm466_vm0, %v762_v56  ;;  %767 = vtanh.f32 %v309_v54 }
  0xdb   :  { %769 = vtanh.f32 %v339_v55 }
  0xdc   :  { %v368_v57 = vpop.f32.mrf.mxu2  ;;  %v403_v58 = vpop.f32.mrf.mxu3 }
  0xdd   :  { %v764_v59 = vpop.eup %763  ;;  %v369_v60 = vadd.f32 %v933_v33, %v368_v57  ;;  %v404_v61 = vadd.f32 %v933_v33, %v403_v58 }
  0xde   :  { %v766_v62 = vpop.eup %765  ;;  %497 = vst.msk [vmem:[%s1188_s3 + $0xf0] sm:$0xff] %vm466_vm0, %v764_v59 }
  0xdf   :  { %771 = vtanh.f32 %v369_v60  ;;  %511 = vst.msk [vmem:[%s1188_s3 + $0x160] sm:$0xff] %vm466_vm0, %v766_v62  ;;  %v311_v63 = vpop.f32.mrf.mxu0  ;;  %v341_v0 = vpop.f32.mrf.mxu1 }
  0xe0   :  { %v768_v1 = vpop.eup %767  ;;  %773 = vtanh.f32 %v404_v61  ;;  %v312_v2 = vadd.f32 %v933_v33, %v311_v63  ;;  %v342_v3 = vadd.f32 %v933_v33, %v341_v0 }
  0xe1   :  { %v770_v4 = vpop.eup %769  ;;  %474 = vst.msk [vmem:[%s1188_s3 + $0x38] sm:$0xff] %vm466_vm0, %v768_v1 }
  0xe2   :  { %486 = vst.msk [vmem:[%s1188_s3 + $0x98] sm:$0xff] %vm466_vm0, %v770_v4  ;;  %775 = vtanh.f32 %v312_v2 }
  0xe3   :  { %777 = vtanh.f32 %v342_v3 }
  0xe4   :  { %v371_v5 = vpop.f32.mrf.mxu2  ;;  %v406_v6 = vpop.f32.mrf.mxu3 }
  0xe5   :  { %v772_v7 = vpop.eup %771  ;;  %v372_v8 = vadd.f32 %v933_v33, %v371_v5  ;;  %v407_v9 = vadd.f32 %v933_v33, %v406_v6 }
  0xe6   :  { %v774_v10 = vpop.eup %773  ;;  %498 = vst.msk [vmem:[%s1188_s3 + $0xf8] sm:$0xff] %vm466_vm0, %v772_v7 }
  0xe7   :  { %779 = vtanh.f32 %v372_v8  ;;  %512 = vst.msk [vmem:[%s1188_s3 + $0x168] sm:$0xff] %vm466_vm0, %v774_v10  ;;  %v313_v11 = vpop.f32.mrf.mxu0  ;;  %v343_v12 = vpop.f32.mrf.mxu1 }
  0xe8   :  { %v776_v13 = vpop.eup %775  ;;  %781 = vtanh.f32 %v407_v9  ;;  %v314_v14 = vadd.f32 %v933_v33, %v313_v11  ;;  %v344_v15 = vadd.f32 %v933_v33, %v343_v12 }
  0xe9   :  { %v778_v16 = vpop.eup %777  ;;  %475 = vst.msk [vmem:[%s1188_s3 + $0x40] sm:$0xff] %vm466_vm0, %v776_v13 }
  0xea   :  { %487 = vst.msk [vmem:[%s1188_s3 + $0xa0] sm:$0xff] %vm466_vm0, %v778_v16  ;;  %783 = vtanh.f32 %v314_v14 }
  0xeb   :  { %785 = vtanh.f32 %v344_v15 }
  0xec   :  { %v373_v17 = vpop.f32.mrf.mxu2  ;;  %v408_v18 = vpop.f32.mrf.mxu3 }
  0xed   :  { %v780_v19 = vpop.eup %779  ;;  %v374_v20 = vadd.f32 %v933_v33, %v373_v17  ;;  %v409_v21 = vadd.f32 %v933_v33, %v408_v18 }
  0xee   :  { %v782_v22 = vpop.eup %781  ;;  %499 = vst.msk [vmem:[%s1188_s3 + $0x100] sm:$0xff] %vm466_vm0, %v780_v19 }
  0xef   :  { %787 = vtanh.f32 %v374_v20  ;;  %513 = vst.msk [vmem:[%s1188_s3 + $0x170] sm:$0xff] %vm466_vm0, %v782_v22  ;;  %v316_v23 = vpop.f32.mrf.mxu0  ;;  %v346_v24 = vpop.f32.mrf.mxu1 }
  0xf0   :  { %v784_v25 = vpop.eup %783  ;;  %789 = vtanh.f32 %v409_v21  ;;  %v317_v26 = vadd.f32 %v933_v33, %v316_v23  ;;  %v347_v27 = vadd.f32 %v933_v33, %v346_v24 }
  0xf1   :  { %v786_v28 = vpop.eup %785  ;;  %476 = vst.msk [vmem:[%s1188_s3 + $0x48] sm:$0xff] %vm466_vm0, %v784_v25 }
  0xf2   :  { %488 = vst.msk [vmem:[%s1188_s3 + $0xa8] sm:$0xff] %vm466_vm0, %v786_v28  ;;  %791 = vtanh.f32 %v317_v26 }
  0xf3   :  { %793 = vtanh.f32 %v347_v27 }
  0xf4   :  { %v376_v29 = vpop.f32.mrf.mxu2  ;;  %v411_v30 = vpop.f32.mrf.mxu3 }
  0xf5   :  { %v788_v31 = vpop.eup %787  ;;  %v377_v32 = vadd.f32 %v933_v33, %v376_v29  ;;  %v412_v34 = vadd.f32 %v933_v33, %v411_v30 }
  0xf6   :  { %v790_v35 = vpop.eup %789  ;;  %500 = vst.msk [vmem:[%s1188_s3 + $0x108] sm:$0xff] %vm466_vm0, %v788_v31 }
  0xf7   :  { %795 = vtanh.f32 %v377_v32  ;;  %514 = vst.msk [vmem:[%s1188_s3 + $0x178] sm:$0xff] %vm466_vm0, %v790_v35  ;;  %v318_v36 = vpop.f32.mrf.mxu0  ;;  %v348_v37 = vpop.f32.mrf.mxu1 }
  0xf8   :  { %v792_v38 = vpop.eup %791  ;;  %797 = vtanh.f32 %v412_v34  ;;  %v319_v39 = vadd.f32 %v933_v33, %v318_v36  ;;  %v349_v40 = vadd.f32 %v933_v33, %v348_v37 }
  0xf9   :  { %v794_v41 = vpop.eup %793  ;;  %477 = vst.msk [vmem:[%s1188_s3 + $0x50] sm:$0xff] %vm466_vm0, %v792_v38 }
  0xfa   :  { %489 = vst.msk [vmem:[%s1188_s3 + $0xb0] sm:$0xff] %vm466_vm0, %v794_v41  ;;  %799 = vtanh.f32 %v319_v39 }
  0xfb   :  { %801 = vtanh.f32 %v349_v40 }
  0xfc   :  { %v378_v42 = vpop.f32.mrf.mxu2  ;;  %v413_v43 = vpop.f32.mrf.mxu3 }
  0xfd   :  { %v796_v44 = vpop.eup %795  ;;  %v379_v45 = vadd.f32 %v933_v33, %v378_v42  ;;  %v414_v46 = vadd.f32 %v933_v33, %v413_v43 }
  0xfe   :  { %v798_v47 = vpop.eup %797  ;;  %501 = vst.msk [vmem:[%s1188_s3 + $0x110] sm:$0xff] %vm466_vm0, %v796_v44 }
  0xff   :  { %803 = vtanh.f32 %v379_v45  ;;  %515 = vst.msk [vmem:[%s1188_s3 + $0x180] sm:$0xff] %vm466_vm0, %v798_v47 }
 0x100   :  { %v800_v48 = vpop.eup %799  ;;  %805 = vtanh.f32 %v414_v46 }
 0x101   :  { %v802_v49 = vpop.eup %801  ;;  %478 = vst.msk [vmem:[%s1188_s3 + $0x58] sm:$0xff] %vm466_vm0, %v800_v48 }
 0x102   :  { %490 = vst.msk [vmem:[%s1188_s3 + $0xb8] sm:$0xff] %vm466_vm0, %v802_v49 }
 0x104   :  { %v381_v50 = vpop.f32.mrf.mxu2 }
 0x105   :  { %v804_v51 = vpop.eup %803  ;;  %v382_v52 = vadd.f32 %v933_v33, %v381_v50 }
 0x106   :  { %v806_v53 = vpop.eup %805  ;;  %502 = vst.msk [vmem:[%s1188_s3 + $0x118] sm:$0xff] %vm466_vm0, %v804_v51 }
 0x107   :  { %807 = vtanh.f32 %v382_v52  ;;  %516 = vst.msk [vmem:[%s1188_s3 + $0x188] sm:$0xff] %vm466_vm0, %v806_v53 }
 0x10c   :  { %v383_v54 = vpop.f32.mrf.mxu2 }
 0x10d   :  { %v808_v55 = vpop.eup %807  ;;  %v384_v56 = vadd.f32 %v933_v33, %v383_v54 }
 0x10e   :  { %503 = vst.msk [vmem:[%s1188_s3 + $0x120] sm:$0xff] %vm466_vm0, %v808_v55 }
 0x10f   :  { %809 = vtanh.f32 %v384_v56 }
 0x115   :  { %v810_v57 = vpop.eup %809 }
 0x116   :  { %504 = vst.msk [vmem:[%s1188_s3 + $0x128] sm:$0xff] %vm466_vm0, %v810_v57 }

</bundles_post_ra>
